<compile_context>
chip_gen: v6e
topology: v6e:2x2x1
jax: 0.10.0
libtpu: 0.0.40
codegen_flags: <defaults>
</compile_context>

<pallas_src>
import functools

import jax
import jax.numpy as jnp
from jax.experimental import pallas as pl
from jax.experimental.pallas import tpu as pltpu


# ----------------------------------------------------------------------------
# Helpers
# ----------------------------------------------------------------------------
def _round_up(x, m):
    return (x + m - 1) // m * m


def _pick_tile(total, max_tile, granule):
    """Largest multiple of `granule` <= max_tile that divides `total`."""
    t = min(total, max_tile)
    t = max(granule, (t // granule) * granule)
    while total % t:
        t -= granule
    return t


@functools.lru_cache(maxsize=1)
def _vmem_limit_bytes():
    """Per-generation VMEM budget: ~3/4 of physical, capped at 96 MiB."""
    cap = 64 * 1024 * 1024
    try:
        cap = int(getattr(pltpu.get_tpu_info(), "vmem_capacity_bytes", cap))
    except Exception:
        pass
    return int(max(32 * 1024 * 1024, min((cap * 3) // 4, 96 * 1024 * 1024)))


# ----------------------------------------------------------------------------
# Pallas kernel: fused matmul(+bias) + InstanceNorm + LeakyReLU
#   p_ref: (TM, TK)   bf16 im2col patches
#   w_ref: (TK, TCO)  bf16 weights
#   b_ref: (1, TCO)   f32 bias (zeros for bias-free layers)
#   o_ref: (TM, TCO)  f32 output; doubles as the accumulator (its block index
#                     is constant across the K grid axis, so it stays resident)
# ----------------------------------------------------------------------------
def _fused_conv_kernel(p_ref, w_ref, b_ref, o_ref, *, p_true, use_in, use_lrelu):
    k = pl.program_id(2)

    @pl.when(k == 0)
    def _init():
        # Fold bias into accumulator init; removes a (TM, TCO) VPU pass from
        # the serial epilogue.
        o_ref[...] = jnp.zeros_like(o_ref) + b_ref[...]

    # bf16 operands on the MXU, f32 accumulation directly into the output block.
    o_ref[...] += jnp.dot(p_ref[...], w_ref[...],
                          preferred_element_type=jnp.float32)

    if use_in or use_lrelu:
        @pl.when(k == pl.num_programs(2) - 1)
        def _finalize():
            y = o_ref[...]
            if use_in:
                # InstanceNorm2d(affine=False, eps=1e-5).  For IN layers each
                # M tile is exactly one sample's padded spatial extent, so the
                # per-(n, c) statistics are block-local.  Mask the (<8) padded
                # rows explicitly and use a centered variance in f32.
                inv_p = 1.0 / float(p_true)
                rid = jax.lax.broadcasted_iota(jnp.int32, y.shape, 0)
                valid = rid < p_true
                mean = jnp.sum(jnp.where(valid, y, 0.0), axis=0,
                               keepdims=True) * inv_p
                d = jnp.where(valid, y - mean, 0.0)
                var = jnp.sum(d * d, axis=0, keepdims=True) * inv_p
                y = (y - mean) * jax.lax.rsqrt(var + 1e-5)
            if use_lrelu:
                y = jnp.where(y >= 0.0, y, 0.2 * y)
            o_ref[...] = y


# ----------------------------------------------------------------------------
# Glue: im2col (padded bf16, single materialization), layer wrapper
# ----------------------------------------------------------------------------
def _im2col_padded_bf16(x_nhwc, kh, kw, stride, pad, p_pad, k_pad):
    """im2col with (kh, kw, cin) K ordering emitted directly as a padded bf16
    (N, P_pad, K_pad) tensor (cast once, pad once).
    TODO(synk): fuse into the conv kernel via halo-tiled VMEM reads."""
    N, H, W, C = x_nhwc.shape
    OH = (H + 2 * pad - kh) // stride + 1
    OW = (W + 2 * pad - kw) // stride + 1
    P, K = OH * OW, kh * kw * C
    xp = jnp.pad(x_nhwc.astype(jnp.bfloat16),
                 ((0, 0), (pad, pad), (pad, pad), (0, 0)))
    cols = []
    for i in range(kh):
        for j in range(kw):
            cols.append(
                xp[:, i:i + stride * OH:stride, j:j + stride * OW:stride, :]
                .reshape(N, P, C))
    patches = jnp.concatenate(cols, axis=-1)                  # (N, P, K) bf16
    return jnp.pad(patches, ((0, 0), (0, p_pad - P), (0, k_pad - K)))


def conv_block(x_nhwc, w_oihw, bias, *, stride, pad, use_in, use_lrelu):
    Cout, Cin, KH, KW = w_oihw.shape
    N, H, W, C = x_nhwc.shape
    assert C == Cin

    OH = (H + 2 * pad - KH) // stride + 1
    OW = (W + 2 * pad - KW) // stride + 1
    P = OH * OW
    K = KH * KW * Cin

    K_pad = _round_up(K, 128)        # lane-dense MXU contraction
    Cout_pad = _round_up(Cout, 128)  # lane-dense stores
    P_pad = _round_up(P, 8)          # sublane-dense rows

    patches = _im2col_padded_bf16(x_nhwc, KH, KW, stride, pad, P_pad, K_pad)
    patches = patches.reshape(N * P_pad, K_pad)

    # 256-lane output tiles fill the 256-wide MXU on v6e/v7x when Cout allows;
    # Cout_pad == 128 layers stay at 128 (already matches v5e's MXU width).
    TCO = 256 if Cout_pad % 256 == 0 else 128

    if use_in:
        # One sample per M tile so InstanceNorm stats are block-local.
        # TODO(synk): two-pass IN to tile M below P_pad for very large images.
        TM = P_pad
        M_pad = N * P_pad
        tk_cap = max(128, ((8 * 1024 * 1024) // (2 * TM)) // 128 * 128)
        TK = _pick_tile(K_pad, min(2048, tk_cap), 128)
    else:
        TM = min(1024, N * P_pad)            # N * P_pad is a multiple of 8
        M_pad = _round_up(N * P_pad, TM)
        TK = _pick_tile(K_pad, 2048, 128)

    if M_pad > N * P_pad:
        patches = jnp.pad(patches, ((0, M_pad - N * P_pad), (0, 0)))

    # PyTorch (Cout, Cin, KH, KW) -> (KH*KW*Cin, Cout), matching the
    # (kh, kw, cin) ordering of the im2col K axis.
    w_mat = jnp.transpose(w_oihw, (2, 3, 1, 0)).reshape(K, Cout)
    w_mat = jnp.pad(w_mat, ((0, K_pad - K), (0, Cout_pad - Cout)))
    w_mat = w_mat.astype(jnp.bfloat16)

    b = bias if bias is not None else jnp.zeros((Cout,), jnp.float32)
    b = jnp.pad(b.astype(jnp.float32), (0, Cout_pad - Cout)).reshape(1, Cout_pad)

    grid = (M_pad // TM, Cout_pad // TCO, K_pad // TK)
    kern = functools.partial(_fused_conv_kernel, p_true=P,
                             use_in=use_in, use_lrelu=use_lrelu)

    out = pl.pallas_call(
        kern,
        out_shape=jax.ShapeDtypeStruct((M_pad, Cout_pad), jnp.float32),
        grid_spec=pltpu.PrefetchScalarGridSpec(
            num_scalar_prefetch=0,
            grid=grid,
            in_specs=[
                pl.BlockSpec((TM, TK), lambda m, j, k: (m, k)),    # patches
                pl.BlockSpec((TK, TCO), lambda m, j, k: (k, j)),   # weights
                pl.BlockSpec((1, TCO), lambda m, j, k: (0, j)),    # bias
            ],
            out_specs=pl.BlockSpec((TM, TCO), lambda m, j, k: (m, j)),
        ),
        compiler_params=pltpu.CompilerParams(
            dimension_semantics=("parallel", "parallel", "arbitrary"),
            vmem_limit_bytes=_vmem_limit_bytes(),
        ),
    )(patches, w_mat, b)

    out = out[:N * P_pad].reshape(N, P_pad, Cout_pad)[:, :P, :Cout]
    return out.reshape(N, OH, OW, Cout)


def spectral_normalize(w_oihw, n_iter=20):
    # Deterministic power-iteration estimate of the largest singular value of
    # the (Cout, Cin*KH*KW) matrix; weight divided by it (as spectral_norm).
    # TODO(synk): exact numerical parity with PyTorch depends on its randomly
    # initialized, stateful u buffer (1 iteration per training forward).
    Cout = w_oihw.shape[0]
    w_mat = w_oihw.reshape(Cout, -1).astype(jnp.float32)
    v = jnp.ones((w_mat.shape[1],), jnp.float32) / jnp.sqrt(float(w_mat.shape[1]))
    u = jnp.ones((Cout,), jnp.float32) / jnp.sqrt(float(Cout))
    for _ in range(n_iter):
        u = w_mat @ v
        u = u / (jnp.linalg.norm(u) + 1e-12)
        v = w_mat.T @ u
        v = v / (jnp.linalg.norm(v) + 1e-12)
    sigma = u @ (w_mat @ v)
    return w_oihw / sigma


# ----------------------------------------------------------------------------
# Parameter init (deterministic, PyTorch-default-style uniform bounds)
# ----------------------------------------------------------------------------
def init_params(key):
    ks = jax.random.split(key, 8)

    def conv_w(k, co, ci, kh, kw):
        bound = 1.0 / jnp.sqrt(float(ci * kh * kw))
        return jax.random.uniform(k, (co, ci, kh, kw), jnp.float32, -bound, bound)

    def conv_b(k, co, ci, kh, kw):
        bound = 1.0 / jnp.sqrt(float(ci * kh * kw))
        return jax.random.uniform(k, (co,), jnp.float32, -bound, bound)

    p = {}
    p["w1"] = conv_w(ks[0], 64, 22, 4, 4)
    p["b1"] = conv_b(ks[1], 64, 22, 4, 4)
    p["w2"] = spectral_normalize(conv_w(ks[2], 128, 64, 4, 4))   # bias=False
    p["w3"] = spectral_normalize(conv_w(ks[3], 256, 128, 4, 4))  # bias=False
    p["w4"] = conv_w(ks[4], 1, 256, 4, 4)
    p["b4"] = conv_b(ks[5], 1, 256, 4, 4)
    return p


# ----------------------------------------------------------------------------
# Forward pass (returns [out_1, out_2, out_3, out_4] in NCHW, like PyTorch)
# ----------------------------------------------------------------------------
def multiscale_discriminator(params, x_nchw):
    x = jnp.transpose(x_nchw, (0, 2, 3, 1))  # NHWC internal layout

    # Conv_1: Conv(22->64, k4, s2, p2) + LeakyReLU(0.2)
    o1 = conv_block(x, params["w1"], params["b1"],
                    stride=2, pad=2, use_in=False, use_lrelu=True)
    # Conv_2: SN-Conv(64->128, k4, s2, p2, no bias) + InstanceNorm + LeakyReLU
    o2 = conv_block(o1, params["w2"], None,
                    stride=2, pad=2, use_in=True, use_lrelu=True)
    # Conv_3: SN-Conv(128->256, k4, s2, p2, no bias) + InstanceNorm + LeakyReLU
    o3 = conv_block(o2, params["w3"], None,
                    stride=2, pad=2, use_in=True, use_lrelu=True)
    # Conv_4: Conv(256->1, k4, s1, p2), no activation
    o4 = conv_block(o3, params["w4"], params["b4"],
                    stride=1, pad=2, use_in=False, use_lrelu=False)

    to_nchw = lambda t: jnp.transpose(t, (0, 3, 1, 2))
    return [to_nchw(o1), to_nchw(o2), to_nchw(o3), to_nchw(o4)]


# ----------------------------------------------------------------------------
# Pure-JAX reference (f32) for correctness checking
# ----------------------------------------------------------------------------
def _conv_ref(x_nhwc, w_oihw, bias, stride, pad):
    out = jax.lax.conv_general_dilated(
        x_nhwc.astype(jnp.float32),
        jnp.transpose(w_oihw, (2, 3, 1, 0)).astype(jnp.float32),  # HWIO
        window_strides=(stride, stride),
        padding=((pad, pad), (pad, pad)),
        dimension_numbers=("NHWC", "HWIO", "NHWC"))
    if bias is not None:
        out = out + bias.reshape(1, 1, 1, -1)
    return out


def _ref_forward(params, x_nchw):
    x = jnp.transpose(x_nchw, (0, 2, 3, 1))
    lrelu = lambda t: jnp.where(t >= 0, t, 0.2 * t)

    def inorm(t):
        mean = jnp.mean(t, axis=(1, 2), keepdims=True)
        var = jnp.var(t, axis=(1, 2), keepdims=True)
        return (t - mean) * jax.lax.rsqrt(var + 1e-5)

    o1 = lrelu(_conv_ref(x, params["w1"], params["b1"], 2, 2))
    o2 = lrelu(inorm(_conv_ref(o1, params["w2"], None, 2, 2)))
    o3 = lrelu(inorm(_conv_ref(o2, params["w3"], None, 2, 2)))
    o4 = _conv_ref(o3, params["w4"], params["b4"], 1, 2)
    to_nchw = lambda t: jnp.transpose(t, (0, 3, 1, 2))
    return [to_nchw(o1), to_nchw(o2), to_nchw(o3), to_nchw(o4)]


if __name__ == "__main__":
    key = jax.random.PRNGKey(0)
    pkey, xkey = jax.random.split(key)
    params = init_params(pkey)

    # Small input consistent with the module: in_channels must be 22.
    x = jax.random.normal(xkey, (2, 22, 16, 16), dtype=jnp.float32)

    outs = jax.jit(multiscale_discriminator)(params, x)
    outs = jax.block_until_ready(outs)

    # Expected shapes: (2,64,9,9), (2,128,5,5), (2,256,3,3), (2,1,4,4)
    expected = [(2, 64, 9, 9), (2, 128, 5, 5), (2, 256, 3, 3), (2, 1, 4, 4)]
    assert [tuple(o.shape) for o in outs] == expected, [o.shape for o in outs]
    assert all(bool(jnp.all(jnp.isfinite(o))) for o in outs)

    # Loose tolerance: kernel uses bf16 MXU operands; bugs show up as O(1)
    # relative error, bf16 noise stays ~1-2%.
    refs = _ref_forward(params, x)
    for o, r in zip(outs, refs):
        err = float(jnp.max(jnp.abs(o.astype(jnp.float32) - r))
                    / (jnp.max(jnp.abs(r)) + 1e-6))
        assert err < 0.1, f"relative max error too large: {err}"

    print("KERNEL_OK")
</pallas_src>

<mosaic_0001>
module attributes {stable_mosaic.version = 11 : i64} {
  func.func @_fused_conv_kernel(%arg0: i32, %arg1: i32, %arg2: i32, %arg3: memref<176x384xbf16, #tpu.memory_space<vmem>>, %arg4: memref<384x128xbf16, #tpu.memory_space<vmem>>, %arg5: memref<1x128xf32, #tpu.memory_space<vmem>>, %arg6: memref<176x128xf32, #tpu.memory_space<vmem>>) attributes {dimension_semantics = [#tpu.dimension_semantics<parallel>, #tpu.dimension_semantics<parallel>, #tpu.dimension_semantics<arbitrary>], iteration_bounds = array<i64: 1, 1, 1>, scalar_prefetch = 0 : i64, scratch_operands = 0 : i64, tpu.core_type = #tpu.core_type<tc>, window_params = [{transform_indices = @transform_0, window_bounds = array<i64: 176, 384>}, {transform_indices = @transform_1, window_bounds = array<i64: 384, 128>}, {transform_indices = @transform_2, window_bounds = array<i64: 1, 128>}, {transform_indices = @transform_3, window_bounds = array<i64: 176, 128>}]} {
    %c0_i32 = arith.constant 0 : i32
    %0 = arith.cmpi eq, %arg2, %c0_i32 : i32
    %1 = arith.extui %0 : i1 to i32
    %c0_i32_0 = arith.constant 0 : i32
    %2 = arith.cmpi ne, %1, %c0_i32_0 : i32
    scf.if %2 {
      %cst_10 = arith.constant 0.000000e+00 : f32
      %12 = vector.broadcast %cst_10 : f32 to vector<176x128xf32>
      %c0_11 = arith.constant 0 : index
      %c0_12 = arith.constant 0 : index
      %13 = vector.load %arg5[%c0_11, %c0_12] : memref<1x128xf32, #tpu.memory_space<vmem>>, vector<1x128xf32>
      %14 = vector.broadcast %13 : vector<1x128xf32> to vector<176x128xf32>
      %15 = arith.addf %12, %14 : vector<176x128xf32>
      %c0_13 = arith.constant 0 : index
      %c0_14 = arith.constant 0 : index
      %16 = vector.load %arg6[%c0_13, %c0_14] : memref<176x128xf32, #tpu.memory_space<vmem>>, vector<176x128xf32>
      tpu.vector_store %arg6[%c0_13, %c0_14], %15 {strides = array<i32>} : memref<176x128xf32, #tpu.memory_space<vmem>>, vector<176x128xf32>,
    } else {
    }
    %c0 = arith.constant 0 : index
    %c0_1 = arith.constant 0 : index
    %3 = vector.load %arg6[%c0, %c0_1] : memref<176x128xf32, #tpu.memory_space<vmem>>, vector<176x128xf32>
    %c0_2 = arith.constant 0 : index
    %c0_3 = arith.constant 0 : index
    %4 = vector.load %arg3[%c0_2, %c0_3] : memref<176x384xbf16, #tpu.memory_space<vmem>>, vector<176x384xbf16>
    %c0_4 = arith.constant 0 : index
    %c0_5 = arith.constant 0 : index
    %5 = vector.load %arg4[%c0_4, %c0_5] : memref<384x128xbf16, #tpu.memory_space<vmem>>, vector<384x128xbf16>
    %cst = arith.constant dense<0.000000e+00> : vector<176x128xf32>
    %6 = tpu.matmul %4, %5, %cst {dimension_numbers = #tpu.dot_dimension_numbers<[1], [0], [0], [1], [0, 0, 1, 1], [], []>} : vector<176x384xbf16>, vector<384x128xbf16>, vector<176x128xf32> -> vector<176x128xf32>
    %7 = arith.addf %3, %6 : vector<176x128xf32>
    %c0_6 = arith.constant 0 : index
    %c0_7 = arith.constant 0 : index
    %8 = vector.load %arg6[%c0_6, %c0_7] : memref<176x128xf32, #tpu.memory_space<vmem>>, vector<176x128xf32>
    tpu.vector_store %arg6[%c0_6, %c0_7], %7 {strides = array<i32>} : memref<176x128xf32, #tpu.memory_space<vmem>>, vector<176x128xf32>,
    %c0_i32_8 = arith.constant 0 : i32
    %9 = arith.cmpi eq, %arg2, %c0_i32_8 : i32
    %10 = arith.extui %9 : i1 to i32
    %c0_i32_9 = arith.constant 0 : i32
    %11 = arith.cmpi ne, %10, %c0_i32_9 : i32
    scf.if %11 {
      %c0_10 = arith.constant 0 : index
      %c0_11 = arith.constant 0 : index
      %12 = vector.load %arg6[%c0_10, %c0_11] : memref<176x128xf32, #tpu.memory_space<vmem>>, vector<176x128xf32>
      %cst_12 = arith.constant 0.000000e+00 : f32
      %13 = vector.broadcast %cst_12 : f32 to vector<176x128xf32>
      %14 = arith.cmpf oge, %12, %13 : vector<176x128xf32>
      %cst_13 = arith.constant 2.000000e-01 : f32
      %15 = vector.broadcast %cst_13 : f32 to vector<176x128xf32>
      %16 = arith.mulf %15, %12 : vector<176x128xf32>
      %17 = arith.select %14, %12, %16 : vector<176x128xi1>, vector<176x128xf32>
      %c0_14 = arith.constant 0 : index
      %c0_15 = arith.constant 0 : index
      %18 = vector.load %arg6[%c0_14, %c0_15] : memref<176x128xf32, #tpu.memory_space<vmem>>, vector<176x128xf32>
      tpu.vector_store %arg6[%c0_14, %c0_15], %17 {strides = array<i32>} : memref<176x128xf32, #tpu.memory_space<vmem>>, vector<176x128xf32>,
    } else {
    }
    return
  }
  func.func @transform_0(%arg0: i32, %arg1: i32, %arg2: i32) -> (i32, i32) {
    %c0_i32 = arith.constant 0 : i32
    return %arg0, %arg2 : i32, i32
  }
  func.func @transform_1(%arg0: i32, %arg1: i32, %arg2: i32) -> (i32, i32) {
    %c0_i32 = arith.constant 0 : i32
    return %arg2, %arg1 : i32, i32
  }
  func.func @transform_2(%arg0: i32, %arg1: i32, %arg2: i32) -> (i32, i32) {
    %c0_i32 = arith.constant 0 : i32
    %c0_i32_0 = arith.constant 0 : i32
    return %c0_i32, %arg1 : i32, i32
  }
  func.func @transform_3(%arg0: i32, %arg1: i32, %arg2: i32) -> (i32, i32) {
    %c0_i32 = arith.constant 0 : i32
    return %arg0, %arg1 : i32, i32
  }
}

module attributes {stable_mosaic.version = 11 : i64} {
  func.func @_fused_conv_kernel(%arg0: i32, %arg1: i32, %arg2: i32, %arg3: memref<32x1024xbf16, #tpu.memory_space<vmem>>, %arg4: memref<1024x128xbf16, #tpu.memory_space<vmem>>, %arg5: memref<1x128xf32, #tpu.memory_space<vmem>>, %arg6: memref<32x128xf32, #tpu.memory_space<vmem>>) attributes {dimension_semantics = [#tpu.dimension_semantics<parallel>, #tpu.dimension_semantics<parallel>, #tpu.dimension_semantics<arbitrary>], iteration_bounds = array<i64: 2, 1, 1>, scalar_prefetch = 0 : i64, scratch_operands = 0 : i64, tpu.core_type = #tpu.core_type<tc>, window_params = [{transform_indices = @transform_0, window_bounds = array<i64: 32, 1024>}, {transform_indices = @transform_1, window_bounds = array<i64: 1024, 128>}, {transform_indices = @transform_2, window_bounds = array<i64: 1, 128>}, {transform_indices = @transform_3, window_bounds = array<i64: 32, 128>}]} {
    %c0_i32 = arith.constant 0 : i32
    %0 = arith.cmpi eq, %arg2, %c0_i32 : i32
    %1 = arith.extui %0 : i1 to i32
    %c0_i32_0 = arith.constant 0 : i32
    %2 = arith.cmpi ne, %1, %c0_i32_0 : i32
    scf.if %2 {
      %cst_10 = arith.constant 0.000000e+00 : f32
      %12 = vector.broadcast %cst_10 : f32 to vector<32x128xf32>
      %c0_11 = arith.constant 0 : index
      %c0_12 = arith.constant 0 : index
      %13 = vector.load %arg5[%c0_11, %c0_12] : memref<1x128xf32, #tpu.memory_space<vmem>>, vector<1x128xf32>
      %14 = vector.broadcast %13 : vector<1x128xf32> to vector<32x128xf32>
      %15 = arith.addf %12, %14 : vector<32x128xf32>
      %c0_13 = arith.constant 0 : index
      %c0_14 = arith.constant 0 : index
      %16 = vector.load %arg6[%c0_13, %c0_14] : memref<32x128xf32, #tpu.memory_space<vmem>>, vector<32x128xf32>
      tpu.vector_store %arg6[%c0_13, %c0_14], %15 {strides = array<i32>} : memref<32x128xf32, #tpu.memory_space<vmem>>, vector<32x128xf32>,
    } else {
    }
    %c0 = arith.constant 0 : index
    %c0_1 = arith.constant 0 : index
    %3 = vector.load %arg6[%c0, %c0_1] : memref<32x128xf32, #tpu.memory_space<vmem>>, vector<32x128xf32>
    %c0_2 = arith.constant 0 : index
    %c0_3 = arith.constant 0 : index
    %4 = vector.load %arg3[%c0_2, %c0_3] : memref<32x1024xbf16, #tpu.memory_space<vmem>>, vector<32x1024xbf16>
    %c0_4 = arith.constant 0 : index
    %c0_5 = arith.constant 0 : index
    %5 = vector.load %arg4[%c0_4, %c0_5] : memref<1024x128xbf16, #tpu.memory_space<vmem>>, vector<1024x128xbf16>
    %cst = arith.constant dense<0.000000e+00> : vector<32x128xf32>
    %6 = tpu.matmul %4, %5, %cst {dimension_numbers = #tpu.dot_dimension_numbers<[1], [0], [0], [1], [0, 0, 1, 1], [], []>} : vector<32x1024xbf16>, vector<1024x128xbf16>, vector<32x128xf32> -> vector<32x128xf32>
    %7 = arith.addf %3, %6 : vector<32x128xf32>
    %c0_6 = arith.constant 0 : index
    %c0_7 = arith.constant 0 : index
    %8 = vector.load %arg6[%c0_6, %c0_7] : memref<32x128xf32, #tpu.memory_space<vmem>>, vector<32x128xf32>
    tpu.vector_store %arg6[%c0_6, %c0_7], %7 {strides = array<i32>} : memref<32x128xf32, #tpu.memory_space<vmem>>, vector<32x128xf32>,
    %c0_i32_8 = arith.constant 0 : i32
    %9 = arith.cmpi eq, %arg2, %c0_i32_8 : i32
    %10 = arith.extui %9 : i1 to i32
    %c0_i32_9 = arith.constant 0 : i32
    %11 = arith.cmpi ne, %10, %c0_i32_9 : i32
    scf.if %11 {
      %c0_10 = arith.constant 0 : index
      %c0_11 = arith.constant 0 : index
      %12 = vector.load %arg6[%c0_10, %c0_11] : memref<32x128xf32, #tpu.memory_space<vmem>>, vector<32x128xf32>
      %13 = tpu.iota {dimensions = array<i32: 0>} : vector<32x128xi32>
      %c25_i32 = arith.constant 25 : i32
      %14 = vector.broadcast %c25_i32 : i32 to vector<32x128xi32>
      %15 = arith.cmpi slt, %13, %14 : vector<32x128xi32>
      %cst_12 = arith.constant 0.000000e+00 : f32
      %16 = vector.broadcast %cst_12 : f32 to vector<32x128xf32>
      %17 = arith.select %15, %12, %16 : vector<32x128xi1>, vector<32x128xf32>
      %cst_13 = arith.constant dense<0.000000e+00> : vector<128xf32>
      %18 = vector.multi_reduction <add>, %17, %cst_13 [0] : vector<32x128xf32> to vector<128xf32>
      %19 = vector.shape_cast %18 : vector<128xf32> to vector<1x128xf32>
      %cst_14 = arith.constant 4.000000e-02 : f32
      %20 = vector.broadcast %cst_14 : f32 to vector<1x128xf32>
      %21 = arith.mulf %19, %20 : vector<1x128xf32>
      %22 = vector.broadcast %21 : vector<1x128xf32> to vector<32x128xf32>
      %23 = arith.subf %12, %22 : vector<32x128xf32>
      %cst_15 = arith.constant 0.000000e+00 : f32
      %24 = vector.broadcast %cst_15 : f32 to vector<32x128xf32>
      %25 = arith.select %15, %23, %24 : vector<32x128xi1>, vector<32x128xf32>
      %26 = arith.mulf %25, %25 : vector<32x128xf32>
      %cst_16 = arith.constant dense<0.000000e+00> : vector<128xf32>
      %27 = vector.multi_reduction <add>, %26, %cst_16 [0] : vector<32x128xf32> to vector<128xf32>
      %28 = vector.shape_cast %27 : vector<128xf32> to vector<1x128xf32>
      %cst_17 = arith.constant 4.000000e-02 : f32
      %29 = vector.broadcast %cst_17 : f32 to vector<1x128xf32>
      %30 = arith.mulf %28, %29 : vector<1x128xf32>
      %31 = vector.broadcast %21 : vector<1x128xf32> to vector<32x128xf32>
      %32 = arith.subf %12, %31 : vector<32x128xf32>
      %cst_18 = arith.constant 9.99999974E-6 : f32
      %33 = vector.broadcast %cst_18 : f32 to vector<1x128xf32>
      %34 = arith.addf %30, %33 : vector<1x128xf32>
      %35 = math.rsqrt %34 : vector<1x128xf32>
      %36 = vector.broadcast %35 : vector<1x128xf32> to vector<32x128xf32>
      %37 = arith.mulf %32, %36 : vector<32x128xf32>
      %cst_19 = arith.constant 0.000000e+00 : f32
      %38 = vector.broadcast %cst_19 : f32 to vector<32x128xf32>
      %39 = arith.cmpf oge, %37, %38 : vector<32x128xf32>
      %cst_20 = arith.constant 2.000000e-01 : f32
      %40 = vector.broadcast %cst_20 : f32 to vector<32x128xf32>
      %41 = arith.mulf %40, %37 : vector<32x128xf32>
      %42 = arith.select %39, %37, %41 : vector<32x128xi1>, vector<32x128xf32>
      %c0_21 = arith.constant 0 : index
      %c0_22 = arith.constant 0 : index
      %43 = vector.load %arg6[%c0_21, %c0_22] : memref<32x128xf32, #tpu.memory_space<vmem>>, vector<32x128xf32>
      tpu.vector_store %arg6[%c0_21, %c0_22], %42 {strides = array<i32>} : memref<32x128xf32, #tpu.memory_space<vmem>>, vector<32x128xf32>,
    } else {
    }
    return
  }
  func.func @transform_0(%arg0: i32, %arg1: i32, %arg2: i32) -> (i32, i32) {
    %c0_i32 = arith.constant 0 : i32
    return %arg0, %arg2 : i32, i32
  }
  func.func @transform_1(%arg0: i32, %arg1: i32, %arg2: i32) -> (i32, i32) {
    %c0_i32 = arith.constant 0 : i32
    return %arg2, %arg1 : i32, i32
  }
  func.func @transform_2(%arg0: i32, %arg1: i32, %arg2: i32) -> (i32, i32) {
    %c0_i32 = arith.constant 0 : i32
    %c0_i32_0 = arith.constant 0 : i32
    return %c0_i32, %arg1 : i32, i32
  }
  func.func @transform_3(%arg0: i32, %arg1: i32, %arg2: i32) -> (i32, i32) {
    %c0_i32 = arith.constant 0 : i32
    return %arg0, %arg1 : i32, i32
  }
}

module attributes {stable_mosaic.version = 11 : i64} {
  func.func @_fused_conv_kernel(%arg0: i32, %arg1: i32, %arg2: i32, %arg3: memref<16x2048xbf16, #tpu.memory_space<vmem>>, %arg4: memref<2048x256xbf16, #tpu.memory_space<vmem>>, %arg5: memref<1x256xf32, #tpu.memory_space<vmem>>, %arg6: memref<16x256xf32, #tpu.memory_space<vmem>>) attributes {dimension_semantics = [#tpu.dimension_semantics<parallel>, #tpu.dimension_semantics<parallel>, #tpu.dimension_semantics<arbitrary>], iteration_bounds = array<i64: 2, 1, 1>, scalar_prefetch = 0 : i64, scratch_operands = 0 : i64, tpu.core_type = #tpu.core_type<tc>, window_params = [{transform_indices = @transform_0, window_bounds = array<i64: 16, 2048>}, {transform_indices = @transform_1, window_bounds = array<i64: 2048, 256>}, {transform_indices = @transform_2, window_bounds = array<i64: 1, 256>}, {transform_indices = @transform_3, window_bounds = array<i64: 16, 256>}]} {
    %c0_i32 = arith.constant 0 : i32
    %0 = arith.cmpi eq, %arg2, %c0_i32 : i32
    %1 = arith.extui %0 : i1 to i32
    %c0_i32_0 = arith.constant 0 : i32
    %2 = arith.cmpi ne, %1, %c0_i32_0 : i32
    scf.if %2 {
      %cst_10 = arith.constant 0.000000e+00 : f32
      %12 = vector.broadcast %cst_10 : f32 to vector<16x256xf32>
      %c0_11 = arith.constant 0 : index
      %c0_12 = arith.constant 0 : index
      %13 = vector.load %arg5[%c0_11, %c0_12] : memref<1x256xf32, #tpu.memory_space<vmem>>, vector<1x256xf32>
      %14 = vector.broadcast %13 : vector<1x256xf32> to vector<16x256xf32>
      %15 = arith.addf %12, %14 : vector<16x256xf32>
      %c0_13 = arith.constant 0 : index
      %c0_14 = arith.constant 0 : index
      %16 = vector.load %arg6[%c0_13, %c0_14] : memref<16x256xf32, #tpu.memory_space<vmem>>, vector<16x256xf32>
      tpu.vector_store %arg6[%c0_13, %c0_14], %15 {strides = array<i32>} : memref<16x256xf32, #tpu.memory_space<vmem>>, vector<16x256xf32>,
    } else {
    }
    %c0 = arith.constant 0 : index
    %c0_1 = arith.constant 0 : index
    %3 = vector.load %arg6[%c0, %c0_1] : memref<16x256xf32, #tpu.memory_space<vmem>>, vector<16x256xf32>
    %c0_2 = arith.constant 0 : index
    %c0_3 = arith.constant 0 : index
    %4 = vector.load %arg3[%c0_2, %c0_3] : memref<16x2048xbf16, #tpu.memory_space<vmem>>, vector<16x2048xbf16>
    %c0_4 = arith.constant 0 : index
    %c0_5 = arith.constant 0 : index
    %5 = vector.load %arg4[%c0_4, %c0_5] : memref<2048x256xbf16, #tpu.memory_space<vmem>>, vector<2048x256xbf16>
    %cst = arith.constant dense<0.000000e+00> : vector<16x256xf32>
    %6 = tpu.matmul %4, %5, %cst {dimension_numbers = #tpu.dot_dimension_numbers<[1], [0], [0], [1], [0, 0, 1, 1], [], []>} : vector<16x2048xbf16>, vector<2048x256xbf16>, vector<16x256xf32> -> vector<16x256xf32>
    %7 = arith.addf %3, %6 : vector<16x256xf32>
    %c0_6 = arith.constant 0 : index
    %c0_7 = arith.constant 0 : index
    %8 = vector.load %arg6[%c0_6, %c0_7] : memref<16x256xf32, #tpu.memory_space<vmem>>, vector<16x256xf32>
    tpu.vector_store %arg6[%c0_6, %c0_7], %7 {strides = array<i32>} : memref<16x256xf32, #tpu.memory_space<vmem>>, vector<16x256xf32>,
    %c0_i32_8 = arith.constant 0 : i32
    %9 = arith.cmpi eq, %arg2, %c0_i32_8 : i32
    %10 = arith.extui %9 : i1 to i32
    %c0_i32_9 = arith.constant 0 : i32
    %11 = arith.cmpi ne, %10, %c0_i32_9 : i32
    scf.if %11 {
      %c0_10 = arith.constant 0 : index
      %c0_11 = arith.constant 0 : index
      %12 = vector.load %arg6[%c0_10, %c0_11] : memref<16x256xf32, #tpu.memory_space<vmem>>, vector<16x256xf32>
      %13 = tpu.iota {dimensions = array<i32: 0>} : vector<16x256xi32>
      %c9_i32 = arith.constant 9 : i32
      %14 = vector.broadcast %c9_i32 : i32 to vector<16x256xi32>
      %15 = arith.cmpi slt, %13, %14 : vector<16x256xi32>
      %cst_12 = arith.constant 0.000000e+00 : f32
      %16 = vector.broadcast %cst_12 : f32 to vector<16x256xf32>
      %17 = arith.select %15, %12, %16 : vector<16x256xi1>, vector<16x256xf32>
      %cst_13 = arith.constant dense<0.000000e+00> : vector<256xf32>
      %18 = vector.multi_reduction <add>, %17, %cst_13 [0] : vector<16x256xf32> to vector<256xf32>
      %19 = vector.shape_cast %18 : vector<256xf32> to vector<1x256xf32>
      %cst_14 = arith.constant 0.111111112 : f32
      %20 = vector.broadcast %cst_14 : f32 to vector<1x256xf32>
      %21 = arith.mulf %19, %20 : vector<1x256xf32>
      %22 = vector.broadcast %21 : vector<1x256xf32> to vector<16x256xf32>
      %23 = arith.subf %12, %22 : vector<16x256xf32>
      %cst_15 = arith.constant 0.000000e+00 : f32
      %24 = vector.broadcast %cst_15 : f32 to vector<16x256xf32>
      %25 = arith.select %15, %23, %24 : vector<16x256xi1>, vector<16x256xf32>
      %26 = arith.mulf %25, %25 : vector<16x256xf32>
      %cst_16 = arith.constant dense<0.000000e+00> : vector<256xf32>
      %27 = vector.multi_reduction <add>, %26, %cst_16 [0] : vector<16x256xf32> to vector<256xf32>
      %28 = vector.shape_cast %27 : vector<256xf32> to vector<1x256xf32>
      %cst_17 = arith.constant 0.111111112 : f32
      %29 = vector.broadcast %cst_17 : f32 to vector<1x256xf32>
      %30 = arith.mulf %28, %29 : vector<1x256xf32>
      %31 = vector.broadcast %21 : vector<1x256xf32> to vector<16x256xf32>
      %32 = arith.subf %12, %31 : vector<16x256xf32>
      %cst_18 = arith.constant 9.99999974E-6 : f32
      %33 = vector.broadcast %cst_18 : f32 to vector<1x256xf32>
      %34 = arith.addf %30, %33 : vector<1x256xf32>
      %35 = math.rsqrt %34 : vector<1x256xf32>
      %36 = vector.broadcast %35 : vector<1x256xf32> to vector<16x256xf32>
      %37 = arith.mulf %32, %36 : vector<16x256xf32>
      %cst_19 = arith.constant 0.000000e+00 : f32
      %38 = vector.broadcast %cst_19 : f32 to vector<16x256xf32>
      %39 = arith.cmpf oge, %37, %38 : vector<16x256xf32>
      %cst_20 = arith.constant 2.000000e-01 : f32
      %40 = vector.broadcast %cst_20 : f32 to vector<16x256xf32>
      %41 = arith.mulf %40, %37 : vector<16x256xf32>
      %42 = arith.select %39, %37, %41 : vector<16x256xi1>, vector<16x256xf32>
      %c0_21 = arith.constant 0 : index
      %c0_22 = arith.constant 0 : index
      %43 = vector.load %arg6[%c0_21, %c0_22] : memref<16x256xf32, #tpu.memory_space<vmem>>, vector<16x256xf32>
      tpu.vector_store %arg6[%c0_21, %c0_22], %42 {strides = array<i32>} : memref<16x256xf32, #tpu.memory_space<vmem>>, vector<16x256xf32>,
    } else {
    }
    return
  }
  func.func @transform_0(%arg0: i32, %arg1: i32, %arg2: i32) -> (i32, i32) {
    %c0_i32 = arith.constant 0 : i32
    return %arg0, %arg2 : i32, i32
  }
  func.func @transform_1(%arg0: i32, %arg1: i32, %arg2: i32) -> (i32, i32) {
    %c0_i32 = arith.constant 0 : i32
    return %arg2, %arg1 : i32, i32
  }
  func.func @transform_2(%arg0: i32, %arg1: i32, %arg2: i32) -> (i32, i32) {
    %c0_i32 = arith.constant 0 : i32
    %c0_i32_0 = arith.constant 0 : i32
    return %c0_i32, %arg1 : i32, i32
  }
  func.func @transform_3(%arg0: i32, %arg1: i32, %arg2: i32) -> (i32, i32) {
    %c0_i32 = arith.constant 0 : i32
    return %arg0, %arg1 : i32, i32
  }
}

module attributes {stable_mosaic.version = 11 : i64} {
  func.func @_fused_conv_kernel(%arg0: i32, %arg1: i32, %arg2: i32, %arg3: memref<32x2048xbf16, #tpu.memory_space<vmem>>, %arg4: memref<2048x128xbf16, #tpu.memory_space<vmem>>, %arg5: memref<1x128xf32, #tpu.memory_space<vmem>>, %arg6: memref<32x128xf32, #tpu.memory_space<vmem>>) attributes {dimension_semantics = [#tpu.dimension_semantics<parallel>, #tpu.dimension_semantics<parallel>, #tpu.dimension_semantics<arbitrary>], iteration_bounds = array<i64: 1, 1, 2>, scalar_prefetch = 0 : i64, scratch_operands = 0 : i64, tpu.core_type = #tpu.core_type<tc>, window_params = [{transform_indices = @transform_0, window_bounds = array<i64: 32, 2048>}, {transform_indices = @transform_1, window_bounds = array<i64: 2048, 128>}, {transform_indices = @transform_2, window_bounds = array<i64: 1, 128>}, {transform_indices = @transform_3, window_bounds = array<i64: 32, 128>}]} {
    %c0_i32 = arith.constant 0 : i32
    %0 = arith.cmpi eq, %arg2, %c0_i32 : i32
    %1 = arith.extui %0 : i1 to i32
    %c0_i32_0 = arith.constant 0 : i32
    %2 = arith.cmpi ne, %1, %c0_i32_0 : i32
    scf.if %2 {
      %cst_8 = arith.constant 0.000000e+00 : f32
      %9 = vector.broadcast %cst_8 : f32 to vector<32x128xf32>
      %c0_9 = arith.constant 0 : index
      %c0_10 = arith.constant 0 : index
      %10 = vector.load %arg5[%c0_9, %c0_10] : memref<1x128xf32, #tpu.memory_space<vmem>>, vector<1x128xf32>
      %11 = vector.broadcast %10 : vector<1x128xf32> to vector<32x128xf32>
      %12 = arith.addf %9, %11 : vector<32x128xf32>
      %c0_11 = arith.constant 0 : index
      %c0_12 = arith.constant 0 : index
      %13 = vector.load %arg6[%c0_11, %c0_12] : memref<32x128xf32, #tpu.memory_space<vmem>>, vector<32x128xf32>
      tpu.vector_store %arg6[%c0_11, %c0_12], %12 {strides = array<i32>} : memref<32x128xf32, #tpu.memory_space<vmem>>, vector<32x128xf32>,
    } else {
    }
    %c0 = arith.constant 0 : index
    %c0_1 = arith.constant 0 : index
    %3 = vector.load %arg6[%c0, %c0_1] : memref<32x128xf32, #tpu.memory_space<vmem>>, vector<32x128xf32>
    %c0_2 = arith.constant 0 : index
    %c0_3 = arith.constant 0 : index
    %4 = vector.load %arg3[%c0_2, %c0_3] : memref<32x2048xbf16, #tpu.memory_space<vmem>>, vector<32x2048xbf16>
    %c0_4 = arith.constant 0 : index
    %c0_5 = arith.constant 0 : index
    %5 = vector.load %arg4[%c0_4, %c0_5] : memref<2048x128xbf16, #tpu.memory_space<vmem>>, vector<2048x128xbf16>
    %cst = arith.constant dense<0.000000e+00> : vector<32x128xf32>
    %6 = tpu.matmul %4, %5, %cst {dimension_numbers = #tpu.dot_dimension_numbers<[1], [0], [0], [1], [0, 0, 1, 1], [], []>} : vector<32x2048xbf16>, vector<2048x128xbf16>, vector<32x128xf32> -> vector<32x128xf32>
    %7 = arith.addf %3, %6 : vector<32x128xf32>
    %c0_6 = arith.constant 0 : index
    %c0_7 = arith.constant 0 : index
    %8 = vector.load %arg6[%c0_6, %c0_7] : memref<32x128xf32, #tpu.memory_space<vmem>>, vector<32x128xf32>
    tpu.vector_store %arg6[%c0_6, %c0_7], %7 {strides = array<i32>} : memref<32x128xf32, #tpu.memory_space<vmem>>, vector<32x128xf32>,
    return
  }
  func.func @transform_0(%arg0: i32, %arg1: i32, %arg2: i32) -> (i32, i32) {
    %c0_i32 = arith.constant 0 : i32
    return %arg0, %arg2 : i32, i32
  }
  func.func @transform_1(%arg0: i32, %arg1: i32, %arg2: i32) -> (i32, i32) {
    %c0_i32 = arith.constant 0 : i32
    return %arg2, %arg1 : i32, i32
  }
  func.func @transform_2(%arg0: i32, %arg1: i32, %arg2: i32) -> (i32, i32) {
    %c0_i32 = arith.constant 0 : i32
    %c0_i32_0 = arith.constant 0 : i32
    return %c0_i32, %arg1 : i32, i32
  }
  func.func @transform_3(%arg0: i32, %arg1: i32, %arg2: i32) -> (i32, i32) {
    %c0_i32 = arith.constant 0 : i32
    return %arg0, %arg1 : i32, i32
  }
}

</mosaic_0001>

<bundles_post_ra>
// kernel: multiscale_discriminator.4
= control target key start
LH: loop header
LB: loop body
LE: loop exit
PB: predicated region body
PF: predicated region fallthrough
CT: control target
= control target key end

     0   :  { %v1175_v0 = vmov 0.0   ;;  %vm1176_vm0 = vmmov 0   ;;  %s1491_s1 = inlined_call_operand.vmem [shape: bf16[384,128], index: 1, kind: input, shape index: {}]   ;;  %s1492_s0 = inlined_call_operand.vmem [shape: bf16[176,384], index: 0, kind: input, shape index: {}]   ;;  %s1493_s2 = inlined_call_operand.vmem [shape: f32[1,128], index: 2, kind: input, shape index: {}]   ;;  %s1494_s3 = inlined_call_operand.vmem [shape: f32[176,128], index: 3, kind: output, shape index: {}]  }
   0x1   :  { %1045 = vmatprep.subr.bf16.mxu1 %v1175_v0  ;;  %v1107_v1 = vld [vmem:[%s1491_s1 + $0x78] sm:$0xff]   ;;  %1061 = vmatprep.mubr.msk.bf16.mxu1 %vm1176_vm0, %v1175_v0  ;;  %v1110_v4 = vld [vmem:[%s1491_s1 + $0x70] sm:$0xff]   ;;  %v1113_v7 = vld [vmem:[%s1491_s1 + $0x68] sm:$0xff]  }
   0x2   :  { %v1108_v2 = vld [vmem:[%s1491_s1 + $0xb8] sm:$0xff]   ;;  %944 = vmatprep.subr.bf16.mxu0 %v1107_v1  ;;  %v1111_v5 = vld [vmem:[%s1491_s1 + $0xb0] sm:$0xff]   ;;  %v1114_v8 = vld [vmem:[%s1491_s1 + $0xa8] sm:$0xff]  }
   0x3   :  { %v1109_v3 = vld [vmem:[%s1491_s1 + $0x38] sm:$0xff]   ;;  %1046 = vmatpush3.bf16.msra.mxu1 %v1108_v2  ;;  %v1112_v6 = vld [vmem:[%s1491_s1 + $0x30] sm:$0xff]   ;;  %v1115_v9 = vld [vmem:[%s1491_s1 + $0x28] sm:$0xff]  }
   0x4   :  { %945 = vmatpush3.bf16.msra.mxu0 %v1109_v3  ;;  %1047 = vmatprep.subr.bf16.mxu1 %v1175_v0  ;;  %v1116_v10 = vld [vmem:[%s1491_s1 + $0x60] sm:$0xff]   ;;  %v1119_v13 = vld [vmem:[%s1491_s1 + $0x58] sm:$0xff]   ;;  %v1122_v16 = vld [vmem:[%s1491_s1 + $0x50] sm:$0xff]  }
   0x5   :  { %946 = vmatprep.subr.bf16.mxu0 %v1110_v4  ;;  %v1117_v11 = vld [vmem:[%s1491_s1 + $0xa0] sm:$0xff]   ;;  %v1120_v14 = vld [vmem:[%s1491_s1 + $0x98] sm:$0xff]   ;;  %v1123_v17 = vld [vmem:[%s1491_s1 + $0x90] sm:$0xff]  }
   0x6   :  { %v1118_v12 = vld [vmem:[%s1491_s1 + $0x20] sm:$0xff]   ;;  %v1121_v15 = vld [vmem:[%s1491_s1 + $0x18] sm:$0xff]   ;;  %v1124_v18 = vld [vmem:[%s1491_s1 + $0x10] sm:$0xff]  }
   0x7   :  { %1048 = vmatpush3.bf16.msra.mxu1 %v1111_v5  ;;  %v1125_v19 = vld [vmem:[%s1491_s1 + $0x48] sm:$0xff]   ;;  %v1128_v22 = vld [vmem:[%s1491_s1 + $0x40] sm:$0xff]   ;;  %v1142_v33 = vld [vmem:[%s1492_s0 + $0x30] ss:$12 sps:$4 sm:$0xff]  }
   0x8   :  { %947 = vmatpush3.bf16.msra.mxu0 %v1112_v6  ;;  %1049 = vmatprep.subr.bf16.mxu1 %v1175_v0  ;;  %v1126_v20 = vld [vmem:[%s1491_s1 + $0x88] sm:$0xff]   ;;  %v1133_v23 = vld [vmem:[%s1492_s0 + $0x4] ss:$12 sps:$4 sm:$0xff]   ;;  %v1139_v31 = vld [vmem:[%s1492_s0 + $0x34] ss:$12 sps:$4 sm:$0xff]  }
   0x9   :  { %948 = vmatprep.subr.bf16.mxu0 %v1113_v7  ;;  %v1127_v21 = vld [vmem:[%s1491_s1 + $0x8] sm:$0xff]   ;;  %v1129_v24 = vld [vmem:[%s1491_s1 + $0x80] sm:$0xff]   ;;  %515 = vmatprep.mubr.bf16.mxu0 %v1133_v23  ;;  %v1145_v35 = vld [vmem:[%s1492_s0 + $0x50] ss:$12 sps:$4 sm:$0xff]  }
   0xa   :  { %v1130_v25 = vld [vmem:[%s1491_s1] sm:$0xff]   ;;  %v1134_v26 = vld [vmem:[%s1492_s0 + $0x8] ss:$12 sps:$4 sm:$0xff]   ;;  %v1143_v34 = vld [vmem:[%s1492_s0 + $0x4c] ss:$12 sps:$4 sm:$0xff]  }
   0xb   :  { %1050 = vmatpush3.bf16.msra.mxu1 %v1114_v8  ;;  %v1131_v27 = vld [vmem:[%s1492_s0] ss:$12 sps:$4 sm:$0xff]   ;;  %v1135_v28 = vld [vmem:[%s1492_s0 + $0x1c] ss:$12 sps:$4 sm:$0xff]   ;;  %v1138_v30 = vld [vmem:[%s1492_s0 + $0x18] ss:$12 sps:$4 sm:$0xff]  }
   0xc   :  { %949 = vmatpush3.bf16.msra.mxu0 %v1115_v9  ;;  %1051 = vmatprep.subr.bf16.mxu1 %v1175_v0  ;;  %v1137_v29 = vld [vmem:[%s1492_s0 + $0x20] ss:$12 sps:$4 sm:$0xff]   ;;  %v1141_v32 = vld [vmem:[%s1492_s0 + $0x38] ss:$12 sps:$4 sm:$0xff]   ;;  %v1146_v36 = vld [vmem:[%s1492_s0 + $0x48] ss:$12 sps:$4 sm:$0xff]  }
   0xd   :  { %950 = vmatprep.subr.bf16.mxu0 %v1116_v10  ;;  %v1147_v37 = vld [vmem:[%s1492_s0 + $0x64] ss:$12 sps:$4 sm:$0xff]   ;;  %v1149_v38 = vld [vmem:[%s1492_s0 + $0x68] ss:$12 sps:$4 sm:$0xff]   ;;  %v1150_v39 = vld [vmem:[%s1492_s0 + $0x60] ss:$12 sps:$4 sm:$0xff]  }
   0xe   :  { %v1151_v40 = vld [vmem:[%s1492_s0 + $0x7c] ss:$12 sps:$4 sm:$0xff]   ;;  %v1153_v41 = vld [vmem:[%s1492_s0 + $0x80] ss:$12 sps:$4 sm:$0xff]   ;;  %v1154_v42 = vld [vmem:[%s1492_s0 + $0x78] ss:$12 sps:$4 sm:$0xff]  }
   0xf   :  { %1052 = vmatpush3.bf16.msra.mxu1 %v1117_v11  ;;  %v1155_v43 = vld [vmem:[%s1492_s0 + $0x94] ss:$12 sps:$4 sm:$0xff]   ;;  %v1157_v44 = vld [vmem:[%s1492_s0 + $0x98] ss:$12 sps:$4 sm:$0xff]   ;;  %v1158_v45 = vld [vmem:[%s1492_s0 + $0x90] ss:$12 sps:$4 sm:$0xff]  }
  0x10   :  { %951 = vmatpush3.bf16.msra.mxu0 %v1118_v12  ;;  %1053 = vmatprep.subr.bf16.mxu1 %v1175_v0  ;;  %v1159_v46 = vld [vmem:[%s1492_s0 + $0xac] ss:$12 sps:$4 sm:$0xff]   ;;  %v1161_v47 = vld [vmem:[%s1492_s0 + $0xb0] ss:$12 sps:$4 sm:$0xff]   ;;  %v1162_v48 = vld [vmem:[%s1492_s0 + $0xa8] ss:$12 sps:$4 sm:$0xff]  }
  0x11   :  { %952 = vmatprep.subr.bf16.mxu0 %v1119_v13  ;;  %v1163_v49 = vld [vmem:[%s1492_s0 + $0xc4] ss:$12 sps:$4 sm:$0xff]   ;;  %v1165_v50 = vld [vmem:[%s1492_s0 + $0xc8] ss:$12 sps:$4 sm:$0xff]   ;;  %v1166_v51 = vld [vmem:[%s1492_s0 + $0xc0] ss:$12 sps:$4 sm:$0xff]  }
  0x12   :  { %v1167_v52 = vld [vmem:[%s1492_s0 + $0xdc] ss:$12 sps:$4 sm:$0xff]   ;;  %v1169_v53 = vld [vmem:[%s1492_s0 + $0xe0] ss:$12 sps:$4 sm:$0xff]   ;;  %v1170_v54 = vld [vmem:[%s1492_s0 + $0xd8] ss:$12 sps:$4 sm:$0xff]  }
  0x13   :  { %1054 = vmatpush3.bf16.msra.mxu1 %v1120_v14  ;;  %v1171_v55 = vld [vmem:[%s1492_s0 + $0xf4] ss:$12 sps:$4 sm:$0xff]   ;;  %v1173_v56 = vld [vmem:[%s1492_s0 + $0xf8] ss:$12 sps:$4 sm:$0xff]   ;;  %v1174_v57 = vld [vmem:[%s1492_s0 + $0xf0] ss:$12 sps:$4 sm:$0xff]  }
  0x14   :  { %953 = vmatpush3.bf16.msra.mxu0 %v1121_v15  ;;  %1055 = vmatprep.subr.bf16.mxu1 %v1175_v0 }
  0x15   :  { %954 = vmatprep.subr.bf16.mxu0 %v1122_v16 }
  0x17   :  { %1056 = vmatpush3.bf16.msra.mxu1 %v1123_v17 }
  0x18   :  { %955 = vmatpush3.bf16.msra.mxu0 %v1124_v18  ;;  %1057 = vmatprep.subr.bf16.mxu1 %v1175_v0 }
  0x19   :  { %956 = vmatprep.subr.bf16.mxu0 %v1125_v19 }
  0x1b   :  { %1058 = vmatpush3.bf16.msra.mxu1 %v1126_v20 }
  0x1c   :  { %957 = vmatpush3.bf16.msra.mxu0 %v1127_v21  ;;  %1059 = vmatprep.subr.bf16.mxu1 %v1175_v0 }
  0x1d   :  { %958 = vmatprep.subr.bf16.mxu0 %v1128_v22 }
  0x1f   :  { %1060 = vmatpush3.bf16.msra.mxu1 %v1129_v24 }
  0x20   :  { %959 = vmatpush3.bf16.msra.mxu0 %v1130_v25 }
  0x22   :  { %1062 = vmatmul.mubr.bf16.vlgmr.msra.gmra.mxu1 %v1134_v26 }
  0x23   :  { %516 = vmatmul.mubr.bf16.vlgmr.msra.gmra.mxu0 %v1131_v27  ;;  %1065 = vmatprep.mubr.msk.bf16.mxu1 %vm1176_vm0, %v1175_v0 }
  0x24   :  { %523 = vmatprep.mubr.bf16.mxu0 %v1135_v28 }
  0x2a   :  { %1066 = vmatmul.mubr.bf16.gmra.mxu1 %v1137_v29 }
  0x2b   :  { %524 = vmatmul.mubr.bf16.gmra.mxu0 %v1138_v30  ;;  %1069 = vmatprep.mubr.msk.bf16.mxu1 %vm1176_vm0, %v1175_v0 }
  0x2c   :  { %531 = vmatprep.mubr.bf16.mxu0 %v1139_v31 }
  0x32   :  { %1070 = vmatmul.mubr.bf16.gmra.mxu1 %v1141_v32 }
  0x33   :  { %532 = vmatmul.mubr.bf16.gmra.mxu0 %v1142_v33  ;;  %1073 = vmatprep.mubr.msk.bf16.mxu1 %vm1176_vm0, %v1175_v0 }
  0x34   :  { %539 = vmatprep.mubr.bf16.mxu0 %v1143_v34 }
  0x3a   :  { %1074 = vmatmul.mubr.bf16.gmra.mxu1 %v1145_v35 }
  0x3b   :  { %540 = vmatmul.mubr.bf16.gmra.mxu0 %v1146_v36  ;;  %1077 = vmatprep.mubr.msk.bf16.mxu1 %vm1176_vm0, %v1175_v0 }
  0x3c   :  { %547 = vmatprep.mubr.bf16.mxu0 %v1147_v37 }
  0x42   :  { %1078 = vmatmul.mubr.bf16.gmra.mxu1 %v1149_v38 }
  0x43   :  { %548 = vmatmul.mubr.bf16.gmra.mxu0 %v1150_v39  ;;  %1081 = vmatprep.mubr.msk.bf16.mxu1 %vm1176_vm0, %v1175_v0 }
  0x44   :  { %555 = vmatprep.mubr.bf16.mxu0 %v1151_v40 }
  0x4a   :  { %1082 = vmatmul.mubr.bf16.gmra.mxu1 %v1153_v41 }
  0x4b   :  { %556 = vmatmul.mubr.bf16.gmra.mxu0 %v1154_v42  ;;  %1085 = vmatprep.mubr.msk.bf16.mxu1 %vm1176_vm0, %v1175_v0 }
  0x4c   :  { %563 = vmatprep.mubr.bf16.mxu0 %v1155_v43 }
  0x52   :  { %1086 = vmatmul.mubr.bf16.gmra.mxu1 %v1157_v44 }
  0x53   :  { %564 = vmatmul.mubr.bf16.gmra.mxu0 %v1158_v45  ;;  %1089 = vmatprep.mubr.msk.bf16.mxu1 %vm1176_vm0, %v1175_v0 }
  0x54   :  { %571 = vmatprep.mubr.bf16.mxu0 %v1159_v46 }
  0x5a   :  { %1090 = vmatmul.mubr.bf16.gmra.mxu1 %v1161_v47 }
  0x5b   :  { %572 = vmatmul.mubr.bf16.gmra.mxu0 %v1162_v48  ;;  %1093 = vmatprep.mubr.msk.bf16.mxu1 %vm1176_vm0, %v1175_v0 }
  0x5c   :  { %579 = vmatprep.mubr.bf16.mxu0 %v1163_v49 }
  0x62   :  { %1094 = vmatmul.mubr.bf16.gmra.mxu1 %v1165_v50 }
  0x63   :  { %580 = vmatmul.mubr.bf16.gmra.mxu0 %v1166_v51  ;;  %1097 = vmatprep.mubr.msk.bf16.mxu1 %vm1176_vm0, %v1175_v0 }
  0x64   :  { %587 = vmatprep.mubr.bf16.mxu0 %v1167_v52 }
  0x6a   :  { %1098 = vmatmul.mubr.bf16.gmra.mxu1 %v1169_v53 }
  0x6b   :  { %588 = vmatmul.mubr.bf16.gmra.mxu0 %v1170_v54  ;;  %1101 = vmatprep.mubr.msk.bf16.mxu1 %vm1176_vm0, %v1175_v0  ;;  %v1401_v0 = vld [vmem:[%s1493_s2] ss:$0 sm:$0xff] }
  0x6c   :  { %595 = vmatprep.mubr.bf16.mxu0 %v1171_v55 }
  0x72   :  { %1102 = vmatmul.mubr.bf16.gmra.mxu1 %v1173_v56 }
  0x73   :  { %596 = vmatmul.mubr.bf16.gmra.mxu0 %v1174_v57 }
  0xe2   :  { %v638_v58 = vpop.f32.mrf.mxu1 }
  0xe3   :  { %v960_v59 = vpop.f32.mrf.mxu0 }
  0xe4   :  { %v1063_v60 = vpop.f32.mrf.mxu1 }
  0xe5   :  { %v961_v61 = vpop.f32.mrf.mxu0 }
  0xe6   :  { %v962_v62 = vadd.f32 %v961_v61, %v960_v59  ;;  %v641_v63 = vpop.f32.mrf.mxu1 }
  0xe7   :  { %v963_v1 = vpop.f32.mrf.mxu0 }
  0xe8   :  { %v639_v2 = vadd.f32 %v962_v62, %v638_v58  ;;  %v1064_v3 = vpop.f32.mrf.mxu1 }
  0xe9   :  { %v964_v4 = vpop.f32.mrf.mxu0 }
  0xea   :  { %v725_v5 = vadd.f32 %v1401_v0, %v639_v2  ;;  %v965_v6 = vadd.f32 %v964_v4, %v963_v1  ;;  %v646_v7 = vpop.f32.mrf.mxu1 }
  0xeb   :  { %v966_v8 = vpop.f32.mrf.mxu0 }
  0xec   :  { %vm794_vm1 = vcmp.ge.f32.partialorder %v725_v5, 0.0  ;;  %v816_v9 = vmul.f32 0.2, %v725_v5  ;;  %v642_v10 = vadd.f32 %v965_v6, %v641_v63  ;;  %v1067_v11 = vpop.f32.mrf.mxu1 }
  0xed   :  { %v967_v12 = vpop.f32.mrf.mxu0 }
  0xee   :  { %v838_v13 = vsel %vm794_vm1, %v725_v5, %v816_v9  ;;  %v726_v14 = vadd.f32 %v1401_v0, %v642_v10  ;;  %v968_v15 = vadd.f32 %v967_v12, %v966_v8  ;;  %v649_v16 = vpop.f32.mrf.mxu1 }
  0xef   :  { %860 = vst [vmem:[%s1494_s3] sm:$0xff] %v838_v13  ;;  %v969_v17 = vpop.f32.mrf.mxu0 }
  0xf0   :  { %vm795_vm2 = vcmp.ge.f32.partialorder %v726_v14, 0.0  ;;  %v817_v18 = vmul.f32 0.2, %v726_v14  ;;  %v647_v19 = vadd.f32 %v968_v15, %v646_v7  ;;  %v1068_v20 = vpop.f32.mrf.mxu1 }
  0xf1   :  { %v970_v21 = vpop.f32.mrf.mxu0 }
  0xf2   :  { %v839_v22 = vsel %vm795_vm2, %v726_v14, %v817_v18  ;;  %v727_v23 = vadd.f32 %v1401_v0, %v647_v19  ;;  %v971_v24 = vadd.f32 %v970_v21, %v969_v17  ;;  %v654_v25 = vpop.f32.mrf.mxu1 }
  0xf3   :  { %861 = vst [vmem:[%s1494_s3 + $0x8] sm:$0xff] %v839_v22  ;;  %v972_v26 = vpop.f32.mrf.mxu0 }
  0xf4   :  { %vm796_vm3 = vcmp.ge.f32.partialorder %v727_v23, 0.0  ;;  %v818_v27 = vmul.f32 0.2, %v727_v23  ;;  %v650_v28 = vadd.f32 %v971_v24, %v649_v16  ;;  %v1071_v29 = vpop.f32.mrf.mxu1 }
  0xf5   :  { %v973_v30 = vpop.f32.mrf.mxu0 }
  0xf6   :  { %v840_v31 = vsel %vm796_vm3, %v727_v23, %v818_v27  ;;  %v728_v32 = vadd.f32 %v1401_v0, %v650_v28  ;;  %v974_v33 = vadd.f32 %v973_v30, %v972_v26  ;;  %v657_v34 = vpop.f32.mrf.mxu1 }
  0xf7   :  { %862 = vst [vmem:[%s1494_s3 + $0x10] sm:$0xff] %v840_v31  ;;  %v975_v35 = vpop.f32.mrf.mxu0 }
  0xf8   :  { %vm797_vm4 = vcmp.ge.f32.partialorder %v728_v32, 0.0  ;;  %v819_v36 = vmul.f32 0.2, %v728_v32  ;;  %v655_v37 = vadd.f32 %v974_v33, %v654_v25  ;;  %v1072_v38 = vpop.f32.mrf.mxu1 }
  0xf9   :  { %v976_v39 = vpop.f32.mrf.mxu0 }
  0xfa   :  { %v841_v40 = vsel %vm797_vm4, %v728_v32, %v819_v36  ;;  %v729_v41 = vadd.f32 %v1401_v0, %v655_v37  ;;  %v977_v42 = vadd.f32 %v976_v39, %v975_v35  ;;  %v662_v43 = vpop.f32.mrf.mxu1 }
  0xfb   :  { %863 = vst [vmem:[%s1494_s3 + $0x18] sm:$0xff] %v841_v40  ;;  %v978_v44 = vpop.f32.mrf.mxu0 }
  0xfc   :  { %vm798_vm5 = vcmp.ge.f32.partialorder %v729_v41, 0.0  ;;  %v820_v45 = vmul.f32 0.2, %v729_v41  ;;  %v658_v46 = vadd.f32 %v977_v42, %v657_v34  ;;  %v1075_v47 = vpop.f32.mrf.mxu1 }
  0xfd   :  { %v979_v48 = vpop.f32.mrf.mxu0 }
  0xfe   :  { %v842_v49 = vsel %vm798_vm5, %v729_v41, %v820_v45  ;;  %v730_v50 = vadd.f32 %v1401_v0, %v658_v46  ;;  %v980_v51 = vadd.f32 %v979_v48, %v978_v44  ;;  %v665_v52 = vpop.f32.mrf.mxu1 }
  0xff   :  { %864 = vst [vmem:[%s1494_s3 + $0x20] sm:$0xff] %v842_v49  ;;  %v981_v53 = vpop.f32.mrf.mxu0 }
 0x100   :  { %vm799_vm6 = vcmp.ge.f32.partialorder %v730_v50, 0.0  ;;  %v821_v54 = vmul.f32 0.2, %v730_v50  ;;  %v663_v55 = vadd.f32 %v980_v51, %v662_v43  ;;  %v1076_v56 = vpop.f32.mrf.mxu1 }
 0x101   :  { %v982_v57 = vpop.f32.mrf.mxu0 }
 0x102   :  { %v843_v58 = vsel %vm799_vm6, %v730_v50, %v821_v54  ;;  %v731_v59 = vadd.f32 %v1401_v0, %v663_v55  ;;  %v983_v60 = vadd.f32 %v982_v57, %v981_v53  ;;  %v670_v61 = vpop.f32.mrf.mxu1 }
 0x103   :  { %865 = vst [vmem:[%s1494_s3 + $0x28] sm:$0xff] %v843_v58  ;;  %v984_v62 = vpop.f32.mrf.mxu0 }
 0x104   :  { %vm800_vm7 = vcmp.ge.f32.partialorder %v731_v59, 0.0  ;;  %v822_v63 = vmul.f32 0.2, %v731_v59  ;;  %v666_v1 = vadd.f32 %v983_v60, %v665_v52  ;;  %v1079_v2 = vpop.f32.mrf.mxu1 }
 0x105   :  { %v985_v3 = vpop.f32.mrf.mxu0 }
 0x106   :  { %v844_v4 = vsel %vm800_vm7, %v731_v59, %v822_v63  ;;  %v732_v5 = vadd.f32 %v1401_v0, %v666_v1  ;;  %v986_v6 = vadd.f32 %v985_v3, %v984_v62  ;;  %v673_v7 = vpop.f32.mrf.mxu1 }
 0x107   :  { %866 = vst [vmem:[%s1494_s3 + $0x30] sm:$0xff] %v844_v4  ;;  %v987_v8 = vpop.f32.mrf.mxu0 }
 0x108   :  { %vm801_vm8 = vcmp.ge.f32.partialorder %v732_v5, 0.0  ;;  %v823_v9 = vmul.f32 0.2, %v732_v5  ;;  %v671_v10 = vadd.f32 %v986_v6, %v670_v61  ;;  %v1080_v11 = vpop.f32.mrf.mxu1 }
 0x109   :  { %v988_v12 = vpop.f32.mrf.mxu0 }
 0x10a   :  { %v845_v13 = vsel %vm801_vm8, %v732_v5, %v823_v9  ;;  %v733_v14 = vadd.f32 %v1401_v0, %v671_v10  ;;  %v989_v15 = vadd.f32 %v988_v12, %v987_v8  ;;  %v678_v16 = vpop.f32.mrf.mxu1 }
 0x10b   :  { %867 = vst [vmem:[%s1494_s3 + $0x38] sm:$0xff] %v845_v13  ;;  %v990_v17 = vpop.f32.mrf.mxu0 }
 0x10c   :  { %vm802_vm9 = vcmp.ge.f32.partialorder %v733_v14, 0.0  ;;  %v824_v18 = vmul.f32 0.2, %v733_v14  ;;  %v674_v19 = vadd.f32 %v989_v15, %v673_v7  ;;  %v1083_v20 = vpop.f32.mrf.mxu1 }
 0x10d   :  { %v991_v21 = vpop.f32.mrf.mxu0 }
 0x10e   :  { %v846_v22 = vsel %vm802_vm9, %v733_v14, %v824_v18  ;;  %v734_v23 = vadd.f32 %v1401_v0, %v674_v19  ;;  %v992_v24 = vadd.f32 %v991_v21, %v990_v17  ;;  %v681_v25 = vpop.f32.mrf.mxu1 }
 0x10f   :  { %868 = vst [vmem:[%s1494_s3 + $0x40] sm:$0xff] %v846_v22  ;;  %v993_v26 = vpop.f32.mrf.mxu0 }
 0x110   :  { %vm803_vm10 = vcmp.ge.f32.partialorder %v734_v23, 0.0  ;;  %v825_v27 = vmul.f32 0.2, %v734_v23  ;;  %v679_v28 = vadd.f32 %v992_v24, %v678_v16  ;;  %v1084_v29 = vpop.f32.mrf.mxu1 }
 0x111   :  { %v994_v30 = vpop.f32.mrf.mxu0 }
 0x112   :  { %v847_v31 = vsel %vm803_vm10, %v734_v23, %v825_v27  ;;  %v735_v32 = vadd.f32 %v1401_v0, %v679_v28  ;;  %v995_v33 = vadd.f32 %v994_v30, %v993_v26  ;;  %v686_v34 = vpop.f32.mrf.mxu1 }
 0x113   :  { %869 = vst [vmem:[%s1494_s3 + $0x48] sm:$0xff] %v847_v31  ;;  %v996_v35 = vpop.f32.mrf.mxu0 }
 0x114   :  { %vm804_vm11 = vcmp.ge.f32.partialorder %v735_v32, 0.0  ;;  %v826_v36 = vmul.f32 0.2, %v735_v32  ;;  %v682_v37 = vadd.f32 %v995_v33, %v681_v25  ;;  %v1087_v38 = vpop.f32.mrf.mxu1 }
 0x115   :  { %v997_v39 = vpop.f32.mrf.mxu0 }
 0x116   :  { %v848_v40 = vsel %vm804_vm11, %v735_v32, %v826_v36  ;;  %v736_v41 = vadd.f32 %v1401_v0, %v682_v37  ;;  %v998_v42 = vadd.f32 %v997_v39, %v996_v35  ;;  %v689_v43 = vpop.f32.mrf.mxu1 }
 0x117   :  { %870 = vst [vmem:[%s1494_s3 + $0x50] sm:$0xff] %v848_v40  ;;  %v999_v44 = vpop.f32.mrf.mxu0 }
 0x118   :  { %vm805_vm12 = vcmp.ge.f32.partialorder %v736_v41, 0.0  ;;  %v827_v45 = vmul.f32 0.2, %v736_v41  ;;  %v687_v46 = vadd.f32 %v998_v42, %v686_v34  ;;  %v1088_v47 = vpop.f32.mrf.mxu1 }
 0x119   :  { %v1000_v48 = vpop.f32.mrf.mxu0 }
 0x11a   :  { %v849_v49 = vsel %vm805_vm12, %v736_v41, %v827_v45  ;;  %v737_v50 = vadd.f32 %v1401_v0, %v687_v46  ;;  %v1001_v51 = vadd.f32 %v1000_v48, %v999_v44  ;;  %v694_v52 = vpop.f32.mrf.mxu1 }
 0x11b   :  { %871 = vst [vmem:[%s1494_s3 + $0x58] sm:$0xff] %v849_v49  ;;  %v1002_v53 = vpop.f32.mrf.mxu0 }
 0x11c   :  { %vm806_vm13 = vcmp.ge.f32.partialorder %v737_v50, 0.0  ;;  %v828_v54 = vmul.f32 0.2, %v737_v50  ;;  %v690_v55 = vadd.f32 %v1001_v51, %v689_v43  ;;  %v1091_v56 = vpop.f32.mrf.mxu1 }
 0x11d   :  { %v1003_v57 = vpop.f32.mrf.mxu0 }
 0x11e   :  { %v850_v58 = vsel %vm806_vm13, %v737_v50, %v828_v54  ;;  %v738_v59 = vadd.f32 %v1401_v0, %v690_v55  ;;  %v1004_v60 = vadd.f32 %v1003_v57, %v1002_v53  ;;  %v697_v61 = vpop.f32.mrf.mxu1 }
 0x11f   :  { %872 = vst [vmem:[%s1494_s3 + $0x60] sm:$0xff] %v850_v58  ;;  %v1005_v62 = vpop.f32.mrf.mxu0 }
 0x120   :  { %vm807_vm14 = vcmp.ge.f32.partialorder %v738_v59, 0.0  ;;  %v829_v63 = vmul.f32 0.2, %v738_v59  ;;  %v695_v1 = vadd.f32 %v1004_v60, %v694_v52  ;;  %v1092_v2 = vpop.f32.mrf.mxu1 }
 0x121   :  { %v1006_v3 = vpop.f32.mrf.mxu0 }
 0x122   :  { %v851_v4 = vsel %vm807_vm14, %v738_v59, %v829_v63  ;;  %v739_v5 = vadd.f32 %v1401_v0, %v695_v1  ;;  %v1007_v6 = vadd.f32 %v1006_v3, %v1005_v62  ;;  %v702_v7 = vpop.f32.mrf.mxu1 }
 0x123   :  { %873 = vst [vmem:[%s1494_s3 + $0x68] sm:$0xff] %v851_v4  ;;  %v1008_v8 = vpop.f32.mrf.mxu0 }
 0x124   :  { %vm808_vm15 = vcmp.ge.f32.partialorder %v739_v5, 0.0  ;;  %v830_v9 = vmul.f32 0.2, %v739_v5  ;;  %v698_v10 = vadd.f32 %v1007_v6, %v697_v61  ;;  %v1095_v11 = vpop.f32.mrf.mxu1 }
 0x125   :  { %v1009_v12 = vpop.f32.mrf.mxu0 }
 0x126   :  { %v852_v13 = vsel %vm808_vm15, %v739_v5, %v830_v9  ;;  %v740_v14 = vadd.f32 %v1401_v0, %v698_v10  ;;  %v1010_v15 = vadd.f32 %v1009_v12, %v1008_v8  ;;  %v705_v16 = vpop.f32.mrf.mxu1 }
 0x127   :  { %874 = vst [vmem:[%s1494_s3 + $0x70] sm:$0xff] %v852_v13  ;;  %v1011_v17 = vpop.f32.mrf.mxu0 }
 0x128   :  { %vm809_vm0 = vcmp.ge.f32.partialorder %v740_v14, 0.0  ;;  %v831_v18 = vmul.f32 0.2, %v740_v14  ;;  %v703_v19 = vadd.f32 %v1010_v15, %v702_v7  ;;  %v1096_v20 = vpop.f32.mrf.mxu1 }
 0x129   :  { %v1012_v21 = vpop.f32.mrf.mxu0 }
 0x12a   :  { %v853_v22 = vsel %vm809_vm0, %v740_v14, %v831_v18  ;;  %v741_v23 = vadd.f32 %v1401_v0, %v703_v19  ;;  %v1013_v24 = vadd.f32 %v1012_v21, %v1011_v17  ;;  %v710_v25 = vpop.f32.mrf.mxu1 }
 0x12b   :  { %875 = vst [vmem:[%s1494_s3 + $0x78] sm:$0xff] %v853_v22  ;;  %v1014_v26 = vpop.f32.mrf.mxu0 }
 0x12c   :  { %vm810_vm1 = vcmp.ge.f32.partialorder %v741_v23, 0.0  ;;  %v832_v27 = vmul.f32 0.2, %v741_v23  ;;  %v706_v28 = vadd.f32 %v1013_v24, %v705_v16  ;;  %v1099_v29 = vpop.f32.mrf.mxu1 }
 0x12d   :  { %v1015_v30 = vpop.f32.mrf.mxu0 }
 0x12e   :  { %v854_v31 = vsel %vm810_vm1, %v741_v23, %v832_v27  ;;  %v742_v32 = vadd.f32 %v1401_v0, %v706_v28  ;;  %v1016_v33 = vadd.f32 %v1015_v30, %v1014_v26  ;;  %v713_v34 = vpop.f32.mrf.mxu1 }
 0x12f   :  { %876 = vst [vmem:[%s1494_s3 + $0x80] sm:$0xff] %v854_v31  ;;  %v1017_v35 = vpop.f32.mrf.mxu0 }
 0x130   :  { %vm811_vm2 = vcmp.ge.f32.partialorder %v742_v32, 0.0  ;;  %v833_v36 = vmul.f32 0.2, %v742_v32  ;;  %v711_v37 = vadd.f32 %v1016_v33, %v710_v25  ;;  %v1100_v38 = vpop.f32.mrf.mxu1 }
 0x131   :  { %v1018_v39 = vpop.f32.mrf.mxu0 }
 0x132   :  { %v855_v40 = vsel %vm811_vm2, %v742_v32, %v833_v36  ;;  %v743_v41 = vadd.f32 %v1401_v0, %v711_v37  ;;  %v1019_v42 = vadd.f32 %v1018_v39, %v1017_v35  ;;  %v718_v43 = vpop.f32.mrf.mxu1 }
 0x133   :  { %877 = vst [vmem:[%s1494_s3 + $0x88] sm:$0xff] %v855_v40  ;;  %v1020_v44 = vpop.f32.mrf.mxu0 }
 0x134   :  { %vm812_vm3 = vcmp.ge.f32.partialorder %v743_v41, 0.0  ;;  %v834_v45 = vmul.f32 0.2, %v743_v41  ;;  %v714_v46 = vadd.f32 %v1019_v42, %v713_v34  ;;  %v1103_v47 = vpop.f32.mrf.mxu1 }
 0x135   :  { %v1021_v48 = vpop.f32.mrf.mxu0 }
 0x136   :  { %v856_v49 = vsel %vm812_vm3, %v743_v41, %v834_v45  ;;  %v744_v50 = vadd.f32 %v1401_v0, %v714_v46  ;;  %v1022_v51 = vadd.f32 %v1021_v48, %v1020_v44  ;;  %v721_v52 = vpop.f32.mrf.mxu1 }
 0x137   :  { %878 = vst [vmem:[%s1494_s3 + $0x90] sm:$0xff] %v856_v49  ;;  %v1023_v53 = vpop.f32.mrf.mxu0 }
 0x138   :  { %vm813_vm4 = vcmp.ge.f32.partialorder %v744_v50, 0.0  ;;  %v835_v54 = vmul.f32 0.2, %v744_v50  ;;  %v719_v55 = vadd.f32 %v1022_v51, %v718_v43  ;;  %v1104_v56 = vpop.f32.mrf.mxu1 }
 0x139   :  { %v1024_v57 = vpop.f32.mrf.mxu0 }
 0x13a   :  { %v857_v58 = vsel %vm813_vm4, %v744_v50, %v835_v54  ;;  %v745_v59 = vadd.f32 %v1401_v0, %v719_v55  ;;  %v1025_v60 = vadd.f32 %v1024_v57, %v1023_v53 }
 0x13b   :  { %879 = vst [vmem:[%s1494_s3 + $0x98] sm:$0xff] %v857_v58 }
 0x13c   :  { %vm814_vm5 = vcmp.ge.f32.partialorder %v745_v59, 0.0  ;;  %v836_v61 = vmul.f32 0.2, %v745_v59  ;;  %v722_v62 = vadd.f32 %v1025_v60, %v721_v52 }
 0x13e   :  { %v858_v63 = vsel %vm814_vm5, %v745_v59, %v836_v61  ;;  %v746_v1 = vadd.f32 %v1401_v0, %v722_v62 }
 0x13f   :  { %880 = vst [vmem:[%s1494_s3 + $0xa0] sm:$0xff] %v858_v63 }
 0x140   :  { %vm815_vm6 = vcmp.ge.f32.partialorder %v746_v1, 0.0  ;;  %v837_v2 = vmul.f32 0.2, %v746_v1 }
 0x142   :  { %v859_v3 = vsel %vm815_vm6, %v746_v1, %v837_v2 }
 0x143   :  { %881 = vst [vmem:[%s1494_s3 + $0xa8] sm:$0xff] %v859_v3 }

// kernel: multiscale_discriminator.5
= control target key start
LH: loop header
LB: loop body
LE: loop exit
PB: predicated region body
PF: predicated region fallthrough
CT: control target
= control target key end

     0   :  { %s1630_s12 = smov 0   ;;  %s1632_s13 = smov 0   ;;  %s1912_s0 = inlined_call_operand.vmem [shape: bf16[64,1024], index: 0, kind: input, shape index: {}]   ;;  %s1913_s1 = inlined_call_operand.vmem [shape: bf16[1024,128], index: 1, kind: input, shape index: {}]   ;;  %s1914_s2 = inlined_call_operand.vmem [shape: f32[1,128], index: 2, kind: input, shape index: {}]   ;;  %s1915_s3 = inlined_call_operand.vmem [shape: f32[64,128], index: 3, kind: output, shape index: {}]  }
   0x1   :  { %s1634_s14 = smov 0  }
   0x2 LB: > { %s32_s15 = sadd.s32 1, %s1604_s13  ;;  %p1294_p0 = scmp.ge.s32.totalorder %s1608_s14, 1  ;;  %s1608_s14 = sphi %s1634_s14, %s13_s14   ;;  %s1604_s13 = sphi %s1632_s13, %s1917_s13   ;;  %s1600_s12 = sphi %s1630_s12, %s1916_s12  }
   0x3   : > { %p34_p1 = scmp.ge.s32.totalorder %s32_s15, 2  ;;  %p191_p2 = scmp.lt.s32.totalorder %s1608_s14, 3 }
   0x5   : > { %s1919_s15 = smov (%p34_p1, %s32_s15), 0  ;;  %p192_p3 = pnand %p1294_p0, %p191_p2 }
   0x6   : > { %s1295_s25 = sshll.u32 (!%p192_p3), %s1600_s12, 2 }
   0x7   : > { %195 = sbr.rel (%p192_p3) target bundleno = 362 (0x16a), region = 32  ;;  %p236_p4 = scmp.lt.s32.totalorder (!%p192_p3), %s1295_s25, 7 }
   0xc   : > { %v1520_v0 = vld [vmem:[%s1913_s1 + $0x78] sm:$0xff]   ;;  %v1524_v4 = vld [vmem:[%s1913_s1 + $0x70] sm:$0xff]   ;;  %v1528_v8 = vld [vmem:[%s1913_s1 + $0x68] sm:$0xff]   ;;  %s1921_s25 = smov (!%p236_p4, %s1295_s25), 7 }
   0xd   : > { %v1521_v1 = vld [vmem:[%s1913_s1 + $0xf8] sm:$0xff]   ;;  %1384 = vmatprep.subr.bf16.mxu0 %v1520_v0  ;;  %v1525_v5 = vld [vmem:[%s1913_s1 + $0xf0] sm:$0xff]   ;;  %v1529_v9 = vld [vmem:[%s1913_s1 + $0xe8] sm:$0xff]   ;;  %s1383_s24 = sshll.u32 %s1921_s25, 5  ;;  %s1299_s9 = sshll.u32 %s1921_s25, 3 }
   0xe   : > { %v1522_v2 = vld [vmem:[%s1913_s1 + $0x38] sm:$0xff]   ;;  %1412 = vmatprep.subr.bf16.mxu1 %v1521_v1  ;;  %v1526_v6 = vld [vmem:[%s1913_s1 + $0x30] sm:$0xff]   ;;  %v1530_v10 = vld [vmem:[%s1913_s1 + $0x28] sm:$0xff]   ;;  %s1747_s12 = scalar_lea.vmem %s1912_s0, %s1383_s24  ;;  %s1871_s16 = scalar_lea.vmem %s1915_s3, %s1299_s9 }
   0xf   : > { %v1523_v3 = vld [vmem:[%s1913_s1 + $0xb8] sm:$0xff]   ;;  %1385 = vmatpush3.bf16.msra.mxu0 %v1522_v2  ;;  %v1527_v7 = vld [vmem:[%s1913_s1 + $0xb0] sm:$0xff]   ;;  %v1531_v11 = vld [vmem:[%s1913_s1 + $0xa8] sm:$0xff]  }
  0x10   : > { %1413 = vmatpush3.bf16.msra.mxu1 %v1523_v3  ;;  %1386 = vmatprep.subr.bf16.mxu0 %v1524_v4  ;;  %v1532_v12 = vld [vmem:[%s1913_s1 + $0x60] sm:$0xff]   ;;  %v1536_v16 = vld [vmem:[%s1913_s1 + $0x58] sm:$0xff]   ;;  %v1540_v20 = vld [vmem:[%s1913_s1 + $0x50] sm:$0xff]  }
  0x11   : > { %1414 = vmatprep.subr.bf16.mxu1 %v1525_v5  ;;  %v1533_v13 = vld [vmem:[%s1913_s1 + $0xe0] sm:$0xff]   ;;  %v1537_v17 = vld [vmem:[%s1913_s1 + $0xd8] sm:$0xff]   ;;  %v1541_v21 = vld [vmem:[%s1913_s1 + $0xd0] sm:$0xff]  }
  0x12   : > { %v1534_v14 = vld [vmem:[%s1913_s1 + $0x20] sm:$0xff]   ;;  %v1538_v18 = vld [vmem:[%s1913_s1 + $0x18] sm:$0xff]   ;;  %v1542_v22 = vld [vmem:[%s1913_s1 + $0x10] sm:$0xff]  }
  0x13   : > { %1387 = vmatpush3.bf16.msra.mxu0 %v1526_v6  ;;  %v1535_v15 = vld [vmem:[%s1913_s1 + $0xa0] sm:$0xff]   ;;  %v1539_v19 = vld [vmem:[%s1913_s1 + $0x98] sm:$0xff]   ;;  %v1543_v23 = vld [vmem:[%s1913_s1 + $0x90] sm:$0xff]  }
  0x14   : > { %1415 = vmatpush3.bf16.msra.mxu1 %v1527_v7  ;;  %1388 = vmatprep.subr.bf16.mxu0 %v1528_v8  ;;  %v1544_v24 = vld [vmem:[%s1913_s1 + $0x48] sm:$0xff]   ;;  %v1548_v28 = vld [vmem:[%s1913_s1 + $0x40] sm:$0xff]   ;;  %v1552_v40 = vld [vmem:[%s1913_s1 + $0x178] sm:$0xff]  }
  0x15   : > { %1416 = vmatprep.subr.bf16.mxu1 %v1529_v9  ;;  %v1545_v25 = vld [vmem:[%s1913_s1 + $0xc8] sm:$0xff]   ;;  %v1549_v29 = vld [vmem:[%s1913_s1 + $0xc0] sm:$0xff]   ;;  %v1553_v41 = vld [vmem:[%s1913_s1 + $0x1f8] sm:$0xff]  }
  0x16   : > { %v1546_v26 = vld [vmem:[%s1913_s1 + $0x8] sm:$0xff]   ;;  %v1550_v30 = vld [vmem:[%s1913_s1] sm:$0xff]   ;;  %v1554_v42 = vld [vmem:[%s1913_s1 + $0x138] sm:$0xff]  }
  0x17   : > { %1389 = vmatpush3.bf16.msra.mxu0 %v1530_v10  ;;  %v1547_v27 = vld [vmem:[%s1913_s1 + $0x88] sm:$0xff]   ;;  %v1551_v31 = vld [vmem:[%s1913_s1 + $0x80] sm:$0xff]   ;;  %v1555_v43 = vld [vmem:[%s1913_s1 + $0x1b8] sm:$0xff]  }
  0x18   : > { %1417 = vmatpush3.bf16.msra.mxu1 %v1531_v11  ;;  %1390 = vmatprep.subr.bf16.mxu0 %v1532_v12  ;;  %v288_v32 = vld [vmem:[%s1747_s12] sm:$0xff]  ;;  %v289_v34 = vld [vmem:[%s1747_s12 + $0x8] sm:$0xff]  ;;  %v1556_v44 = vld [vmem:[%s1913_s1 + $0x170] sm:$0xff]  }
  0x19   : > { %1418 = vmatprep.subr.bf16.mxu1 %v1533_v13  ;;  %v292_v33 = vld [vmem:[%s1747_s12 + $0x20] sm:$0xff]  ;;  %v293_v37 = vld [vmem:[%s1747_s12 + $0x28] sm:$0xff]  ;;  %v1557_v45 = vld [vmem:[%s1913_s1 + $0x1f0] sm:$0xff]  }
  0x1a   : > { %v1301_v35 = vcombine.low %v288_v32, %v292_v33  ;;  %v1302_v36 = vcombine.high %v288_v32, %v292_v33  ;;  %v1303_v38 = vcombine.low %v289_v34, %v293_v37  ;;  %v1304_v39 = vcombine.high %v289_v34, %v293_v37  ;;  %v1558_v46 = vld [vmem:[%s1913_s1 + $0x130] sm:$0xff]   ;;  %v1560_v48 = vld [vmem:[%s1913_s1 + $0x168] sm:$0xff]   ;;  %v1564_v52 = vld [vmem:[%s1913_s1 + $0x160] sm:$0xff]  }
  0x1b   : > { %1391 = vmatpush3.bf16.msra.mxu0 %v1534_v14  ;;  %v1559_v47 = vld [vmem:[%s1913_s1 + $0x1b0] sm:$0xff]   ;;  %v1561_v49 = vld [vmem:[%s1913_s1 + $0x1e8] sm:$0xff]   ;;  %v1565_v53 = vld [vmem:[%s1913_s1 + $0x1e0] sm:$0xff]  }
  0x1c   : > { %1419 = vmatpush3.bf16.msra.mxu1 %v1535_v15  ;;  %1392 = vmatprep.subr.bf16.mxu0 %v1536_v16  ;;  %v1562_v50 = vld [vmem:[%s1913_s1 + $0x128] sm:$0xff]   ;;  %v1566_v54 = vld [vmem:[%s1913_s1 + $0x120] sm:$0xff]   ;;  %v1568_v56 = vld [vmem:[%s1913_s1 + $0x158] sm:$0xff]  }
  0x1d   : > { %1420 = vmatprep.subr.bf16.mxu1 %v1537_v17  ;;  %928 = vmatprep.mubr.bf16.mxu0 %v1302_v36  ;;  %v1563_v51 = vld [vmem:[%s1913_s1 + $0x1a8] sm:$0xff]   ;;  %v1567_v55 = vld [vmem:[%s1913_s1 + $0x1a0] sm:$0xff]   ;;  %v1569_v57 = vld [vmem:[%s1913_s1 + $0x1d8] sm:$0xff]  }
  0x1e   : > { %977 = vmatprep.mubr.bf16.mxu1 %v1304_v39  ;;  %v296_v58 = vld [vmem:[%s1747_s12 + $0x40] sm:$0xff]  ;;  %v297_v61 = vld [vmem:[%s1747_s12 + $0x48] sm:$0xff]  ;;  %v1570_v1 = vld [vmem:[%s1913_s1 + $0x118] sm:$0xff]  }
  0x1f   : > { %1393 = vmatpush3.bf16.msra.mxu0 %v1538_v18  ;;  %v300_v59 = vld [vmem:[%s1747_s12 + $0x60] sm:$0xff]  ;;  %v301_v62 = vld [vmem:[%s1747_s12 + $0x68] sm:$0xff]  ;;  %v1571_v3 = vld [vmem:[%s1913_s1 + $0x198] sm:$0xff]  }
  0x20   : > { %1421 = vmatpush3.bf16.msra.mxu1 %v1539_v19  ;;  %1394 = vmatprep.subr.bf16.mxu0 %v1540_v20  ;;  %v1310_v60 = vcombine.high %v296_v58, %v300_v59  ;;  %v1309_v63 = vcombine.low %v296_v58, %v300_v59  ;;  %v1312_v0 = vcombine.high %v297_v61, %v301_v62  ;;  %v1572_v4 = vld [vmem:[%s1913_s1 + $0x150] sm:$0xff]   ;;  %v1576_v8 = vld [vmem:[%s1913_s1 + $0x148] sm:$0xff]   ;;  %v1580_v12 = vld [vmem:[%s1913_s1 + $0x140] sm:$0xff]  }
  0x21   : > { %1422 = vmatprep.subr.bf16.mxu1 %v1541_v21  ;;  %v1311_v2 = vcombine.low %v297_v61, %v301_v62  ;;  %v1573_v5 = vld [vmem:[%s1913_s1 + $0x1d0] sm:$0xff]   ;;  %v1577_v9 = vld [vmem:[%s1913_s1 + $0x1c8] sm:$0xff]   ;;  %v1581_v13 = vld [vmem:[%s1913_s1 + $0x1c0] sm:$0xff]  }
  0x22   : > { %v1574_v6 = vld [vmem:[%s1913_s1 + $0x110] sm:$0xff]   ;;  %v1578_v10 = vld [vmem:[%s1913_s1 + $0x108] sm:$0xff]   ;;  %v1582_v14 = vld [vmem:[%s1913_s1 + $0x100] sm:$0xff]  }
  0x23   : > { %1395 = vmatpush3.bf16.msra.mxu0 %v1542_v22  ;;  %v1575_v7 = vld [vmem:[%s1913_s1 + $0x190] sm:$0xff]   ;;  %v1579_v11 = vld [vmem:[%s1913_s1 + $0x188] sm:$0xff]   ;;  %v1583_v15 = vld [vmem:[%s1913_s1 + $0x180] sm:$0xff]  }
  0x24   : > { %1423 = vmatpush3.bf16.msra.mxu1 %v1543_v23  ;;  %1396 = vmatprep.subr.bf16.mxu0 %v1544_v24  ;;  %v290_v16 = vld [vmem:[%s1747_s12 + $0x10] sm:$0xff]  ;;  %v291_v18 = vld [vmem:[%s1747_s12 + $0x18] sm:$0xff]  ;;  %v1876_v32 = vld [vmem:[%s1914_s2] ss:$0 sm:$0xff] }
  0x25   : > { %1424 = vmatprep.subr.bf16.mxu1 %v1545_v25  ;;  %v294_v17 = vld [vmem:[%s1747_s12 + $0x30] sm:$0xff]  ;;  %v295_v19 = vld [vmem:[%s1747_s12 + $0x38] sm:$0xff]  ;;  %280 = vst [vmem:[%s1871_s16] sm:$0xff] %v1876_v32  ;;  %281 = vst [vmem:[%s1871_s16 + $0x8] sm:$0xff] %v1876_v32 }
  0x26   : > { %v1305_v20 = vcombine.low %v290_v16, %v294_v17  ;;  %v1306_v21 = vcombine.high %v290_v16, %v294_v17  ;;  %v1307_v22 = vcombine.low %v291_v18, %v295_v19  ;;  %v1308_v23 = vcombine.high %v291_v18, %v295_v19  ;;  %v298_v24 = vld [vmem:[%s1747_s12 + $0x50] sm:$0xff]  ;;  %282 = vst [vmem:[%s1871_s16 + $0x10] sm:$0xff] %v1876_v32 }
  0x27   : > { %1397 = vmatpush3.bf16.msra.mxu0 %v1546_v26  ;;  %v302_v25 = vld [vmem:[%s1747_s12 + $0x70] sm:$0xff]  ;;  %v299_v26 = vld [vmem:[%s1747_s12 + $0x58] sm:$0xff]  ;;  %283 = vst [vmem:[%s1871_s16 + $0x18] sm:$0xff] %v1876_v32 }
  0x28   : > { %1425 = vmatpush3.bf16.msra.mxu1 %v1547_v27  ;;  %1398 = vmatprep.subr.bf16.mxu0 %v1548_v28  ;;  %v1314_v27 = vcombine.high %v298_v24, %v302_v25  ;;  %v303_v28 = vld [vmem:[%s1747_s12 + $0x78] sm:$0xff] }
  0x29   : > { %1426 = vmatprep.subr.bf16.mxu1 %v1549_v29  ;;  %v1316_v29 = vcombine.high %v299_v26, %v303_v28 }
  0x2b   : > { %1399 = vmatpush3.bf16.msra.mxu0 %v1550_v30  ;;  %v1313_v30 = vcombine.low %v298_v24, %v302_v25 }
  0x2c   : > { %1427 = vmatpush3.bf16.msra.mxu1 %v1551_v31  ;;  %1440 = vmatprep.subr.bf16.mxu0 %v1552_v40  ;;  %v1315_v31 = vcombine.low %v299_v26, %v303_v28 }
  0x2d   : > { %1468 = vmatprep.subr.bf16.mxu1 %v1553_v41 }
  0x2e   : > { %929 = vmatmul.mubr.bf16.vlgmr.msra.gmra.mxu0 %v1301_v35 }
  0x2f   : > { %978 = vmatmul.mubr.bf16.vlgmr.msra.gmra.mxu1 %v1303_v38  ;;  %1441 = vmatpush3.bf16.msra.mxu0 %v1554_v42 }
  0x30   : > { %1469 = vmatpush3.bf16.msra.mxu1 %v1555_v43  ;;  %1442 = vmatprep.subr.bf16.mxu0 %v1556_v44 }
  0x31   : > { %1470 = vmatprep.subr.bf16.mxu1 %v1557_v45  ;;  %936 = vmatprep.mubr.bf16.mxu0 %v1310_v60 }
  0x32   : > { %985 = vmatprep.mubr.bf16.mxu1 %v1312_v0 }
  0x33   : > { %1443 = vmatpush3.bf16.msra.mxu0 %v1558_v46 }
  0x34   : > { %1471 = vmatpush3.bf16.msra.mxu1 %v1559_v47  ;;  %1444 = vmatprep.subr.bf16.mxu0 %v1560_v48 }
  0x35   : > { %1472 = vmatprep.subr.bf16.mxu1 %v1561_v49 }
  0x36   : > { %937 = vmatmul.mubr.bf16.gmra.mxu0 %v1309_v63 }
  0x37   : > { %1445 = vmatpush3.bf16.msra.mxu0 %v1562_v50  ;;  %986 = vmatmul.mubr.bf16.gmra.mxu1 %v1311_v2 }
  0x38   : > { %1473 = vmatpush3.bf16.msra.mxu1 %v1563_v51  ;;  %1446 = vmatprep.subr.bf16.mxu0 %v1564_v52 }
  0x39   : > { %1474 = vmatprep.subr.bf16.mxu1 %v1565_v53  ;;  %1026 = vmatprep.mubr.bf16.mxu0 %v1306_v21 }
  0x3a   : > { %1075 = vmatprep.mubr.bf16.mxu1 %v1308_v23 }
  0x3b   : > { %1447 = vmatpush3.bf16.msra.mxu0 %v1566_v54 }
  0x3c   : > { %1475 = vmatpush3.bf16.msra.mxu1 %v1567_v55  ;;  %1448 = vmatprep.subr.bf16.mxu0 %v1568_v56 }
  0x3d   : > { %1476 = vmatprep.subr.bf16.mxu1 %v1569_v57 }
  0x3f   : > { %1449 = vmatpush3.bf16.msra.mxu0 %v1570_v1  ;;  %v284_v1 = vld [vmem:[%s1871_s16] sm:$0xff] }
  0x40   : > { %1477 = vmatpush3.bf16.msra.mxu1 %v1571_v3  ;;  %1450 = vmatprep.subr.bf16.mxu0 %v1572_v4 }
  0x41   : > { %1478 = vmatprep.subr.bf16.mxu1 %v1573_v5 }
  0x43   : > { %1451 = vmatpush3.bf16.msra.mxu0 %v1574_v6 }
  0x44   : > { %1479 = vmatpush3.bf16.msra.mxu1 %v1575_v7  ;;  %1452 = vmatprep.subr.bf16.mxu0 %v1576_v8  ;;  %v285_v7 = vld [vmem:[%s1871_s16 + $0x8] sm:$0xff] }
  0x45   : > { %1480 = vmatprep.subr.bf16.mxu1 %v1577_v9 }
  0x47   : > { %1453 = vmatpush3.bf16.msra.mxu0 %v1578_v10  ;;  %v286_v10 = vld [vmem:[%s1871_s16 + $0x10] sm:$0xff] }
  0x48   : > { %1481 = vmatpush3.bf16.msra.mxu1 %v1579_v11  ;;  %1454 = vmatprep.subr.bf16.mxu0 %v1580_v12 }
  0x49   : > { %1482 = vmatprep.subr.bf16.mxu1 %v1581_v13 }
  0x4b   : > { %1455 = vmatpush3.bf16.msra.mxu0 %v1582_v14 }
  0x4c   : > { %1483 = vmatpush3.bf16.msra.mxu1 %v1583_v15 }
  0x4e   : > { %1027 = vmatmul.mubr.bf16.vlgmr.msra.gmra.mxu0 %v1305_v20 }
  0x4f   : > { %1076 = vmatmul.mubr.bf16.vlgmr.msra.gmra.mxu1 %v1307_v22  ;;  %1034 = vmatprep.mubr.bf16.mxu0 %v1314_v27 }
  0x50   : > { %1083 = vmatprep.mubr.bf16.mxu1 %v1316_v29 }
  0x56   : > { %1035 = vmatmul.mubr.bf16.gmra.mxu0 %v1313_v30 }
  0x57   : > { %1084 = vmatmul.mubr.bf16.gmra.mxu1 %v1315_v31 }
  0xee   : > { %v1400_v33 = vpop.f32.mrf.mxu0 }
  0xef   : > { %v1428_v34 = vpop.f32.mrf.mxu1 }
  0xf0   : > { %v1401_v35 = vpop.f32.mrf.mxu0 }
  0xf1   : > { %v1429_v36 = vpop.f32.mrf.mxu1  ;;  %v1402_v49 = vadd.f32 %v1401_v35, %v1400_v33 }
  0xf2   : > { %v1403_v37 = vpop.f32.mrf.mxu0  ;;  %v1430_v50 = vadd.f32 %v1429_v36, %v1428_v34  ;;  %v1107_v36 = vlaneseq }
  0xf3   : > { %v1431_v38 = vpop.f32.mrf.mxu1 }
  0xf4   : > { %v1404_v39 = vpop.f32.mrf.mxu0  ;;  %v980_v55 = vadd.f32 %v1430_v50, %v1402_v49 }
  0xf5   : > { %v1432_v40 = vpop.f32.mrf.mxu1  ;;  %v1405_v56 = vadd.f32 %v1404_v39, %v1403_v37 }
  0xf6   : > { %v1406_v41 = vpop.f32.mrf.mxu0  ;;  %v1433_v57 = vadd.f32 %v1432_v40, %v1431_v38  ;;  %v1108_v38 = vshrl.u32 %v1107_v36, 7 }
  0xf7   : > { %v1434_v42 = vpop.f32.mrf.mxu1 }
  0xf8   : > { %v1407_v43 = vpop.f32.mrf.mxu0  ;;  %v983_v4 = vadd.f32 %v1433_v57, %v1405_v56  ;;  %v1111_v39 = vadd.s32 24, %v1108_v38 }
  0xf9   : > { %v1435_v44 = vpop.f32.mrf.mxu1  ;;  %v1408_v63 = vadd.f32 %v1407_v43, %v1406_v41 }
  0xfa   : > { %v1409_v45 = vpop.f32.mrf.mxu0  ;;  %v1436_v0 = vadd.f32 %v1435_v44, %v1434_v42  ;;  %vm1115_vm0 = vcmp.lt.s32.totalorder %v1111_v39, 25 }
  0xfb   : > { %v1437_v46 = vpop.f32.mrf.mxu1 }
  0xfc   : > { %v1410_v47 = vpop.f32.mrf.mxu0  ;;  %v988_v14 = vadd.f32 %v1436_v0, %v1408_v63 }
  0xfd   : > { %v1438_v48 = vpop.f32.mrf.mxu1  ;;  %v1411_v17 = vadd.f32 %v1410_v47, %v1409_v45 }
  0xfe   : > { %v1439_v18 = vadd.f32 %v1438_v48, %v1437_v46 }
 0x100   : > { %v991_v28 = vadd.f32 %v1439_v18, %v1411_v17 }
 0x10e   : > { %v1456_v51 = vpop.f32.mrf.mxu0 }
 0x10f   : > { %v1484_v52 = vpop.f32.mrf.mxu1 }
 0x110   : > { %v1457_v53 = vpop.f32.mrf.mxu0 }
 0x111   : > { %v1485_v54 = vpop.f32.mrf.mxu1  ;;  %v1458_v58 = vadd.f32 %v1457_v53, %v1456_v51 }
 0x112   : > { %v1459_v59 = vpop.f32.mrf.mxu0  ;;  %v1486_v62 = vadd.f32 %v1485_v54, %v1484_v52 }
 0x113   : > { %v1487_v60 = vpop.f32.mrf.mxu1  ;;  %v1029_v61 = vadd.f32 %v1458_v58, %v980_v55 }
 0x114   : > { %v1460_v2 = vpop.f32.mrf.mxu0 }
 0x115   : > { %v1488_v3 = vpop.f32.mrf.mxu1  ;;  %v1078_v5 = vadd.f32 %v1486_v62, %v1029_v61  ;;  %v1461_v6 = vadd.f32 %v1460_v2, %v1459_v59 }
 0x116   : > { %v1462_v8 = vpop.f32.mrf.mxu0  ;;  %v1489_v13 = vadd.f32 %v1488_v3, %v1487_v60 }
 0x117   : > { %v1490_v9 = vpop.f32.mrf.mxu1  ;;  %v1092_v11 = vadd.f32 %v1078_v5, %v284_v1  ;;  %v1032_v12 = vadd.f32 %v1461_v6, %v983_v4 }
 0x118   : > { %v1463_v15 = vpop.f32.mrf.mxu0 }
 0x119   : > { %v1491_v16 = vpop.f32.mrf.mxu1  ;;  %v1081_v19 = vadd.f32 %v1489_v13, %v1032_v12  ;;  %v1464_v20 = vadd.f32 %v1463_v15, %v1462_v8  ;;  %1096 = vst [vmem:[%s1871_s16] sm:$0xff] %v1092_v11 }
 0x11a   : > { %v1465_v21 = vpop.f32.mrf.mxu0  ;;  %v1492_v25 = vadd.f32 %v1491_v16, %v1490_v9 }
 0x11b   : > { %v1493_v22 = vpop.f32.mrf.mxu1  ;;  %v1093_v23 = vadd.f32 %v1081_v19, %v285_v7  ;;  %v1037_v24 = vadd.f32 %v1464_v20, %v988_v14 }
 0x11c   : > { %v1466_v26 = vpop.f32.mrf.mxu0 }
 0x11d   : > { %v1494_v27 = vpop.f32.mrf.mxu1  ;;  %v1086_v29 = vadd.f32 %v1492_v25, %v1037_v24  ;;  %v1467_v30 = vadd.f32 %v1466_v26, %v1465_v21  ;;  %1097 = vst [vmem:[%s1871_s16 + $0x8] sm:$0xff] %v1093_v23 }
 0x11e   : > { %v1495_v34 = vadd.f32 %v1494_v27, %v1493_v22 }
 0x11f   : > { %v1094_v31 = vadd.f32 %v1086_v29, %v286_v10  ;;  %v1040_v33 = vadd.f32 %v1467_v30, %v991_v28 }
 0x120   : > { %v1103_v40 = vld [vmem:[%s1871_s16] sm:$0xff] }
 0x121   : > { %v1089_v35 = vadd.f32 %v1495_v34, %v1040_v33  ;;  %1098 = vst [vmem:[%s1871_s16 + $0x10] sm:$0xff] %v1094_v31 }
 0x123   : > { %v1095_v37 = vadd.f32 %v1876_v32, %v1089_v35 }
 0x124   : > { %v1104_v41 = vld [vmem:[%s1871_s16 + $0x8] sm:$0xff] }
 0x125   : > { %1099 = vst [vmem:[%s1871_s16 + $0x18] sm:$0xff] %v1095_v37  ;;  %v1120_v42 = vadd.f32 %v1104_v41, %v1103_v40  ;;  %v1119_v45 = vsel %vm1115_vm0, %v1095_v37, 0.0 }
 0x128   : > { %v1105_v43 = vld [vmem:[%s1871_s16 + $0x10] sm:$0xff] }
 0x129   : > { %v1121_v44 = vadd.f32 %v1120_v42, %v1105_v43 }
 0x12b   : > { %v1122_v46 = vadd.f32 %v1121_v44, %v1119_v45 }
 0x12d   : > { %v1123_v47 = vrot.slane %v1122_v46, 4 }
 0x12f   : > { %v1124_v48 = vadd.f32 %v1123_v47, %v1122_v46 }
 0x131   : > { %v1125_v49 = vrot.slane %v1124_v48, 2 }
 0x133   : > { %v1126_v50 = vadd.f32 %v1125_v49, %v1124_v48 }
 0x135   : > { %v1127_v51 = vrot.slane %v1126_v50, 1 }
 0x137   : > { %v1128_v52 = vadd.f32 %v1127_v51, %v1126_v50 }
 0x139   : > { %v1129_v53 = vmul.f32 0.04, %v1128_v52 }
 0x13b   : > { %v1130_v32 = vsub.f32 %v1103_v40, %v1129_v53  ;;  %v1131_v54 = vsub.f32 %v1104_v41, %v1129_v53  ;;  %v1132_v55 = vsub.f32 %v1105_v43, %v1129_v53  ;;  %v1133_v56 = vsub.f32 %v1095_v37, %v1129_v53 }
 0x13d   : > { %v1138_v57 = vmul.f32 %v1130_v32, %v1130_v32  ;;  %v1139_v58 = vmul.f32 %v1131_v54, %v1131_v54  ;;  %v1137_v59 = vsel %vm1115_vm0, %v1133_v56, 0.0  ;;  %v1140_v60 = vmul.f32 %v1132_v55, %v1132_v55 }
 0x13e   : > { %v1141_v62 = vmul.f32 %v1137_v59, %v1137_v59 }
 0x13f   : > { %v1142_v61 = vadd.f32 %v1139_v58, %v1138_v57 }
 0x141   : > { %v1143_v63 = vadd.f32 %v1142_v61, %v1140_v60 }
 0x143   : > { %v1144_v0 = vadd.f32 %v1143_v63, %v1141_v62 }
 0x145   : > { %v1145_v1 = vrot.slane %v1144_v0, 4 }
 0x147   : > { %v1146_v2 = vadd.f32 %v1145_v1, %v1144_v0 }
 0x149   : > { %v1147_v3 = vrot.slane %v1146_v2, 2 }
 0x14b   : > { %v1148_v4 = vadd.f32 %v1147_v3, %v1146_v2 }
 0x14d   : > { %v1149_v5 = vrot.slane %v1148_v4, 1 }
 0x14f   : > { %v1150_v6 = vadd.f32 %v1149_v5, %v1148_v4 }
 0x151   : > { %v1151_v7 = vmul.f32 0.04, %v1150_v6 }
 0x153   : > { %v1152_v8 = vadd.f32 1e-05, %v1151_v7 }
 0x155   : > { %1584 = vrsqrt.f32 %v1152_v8 }
 0x162   : > { %v1585_v9 = vpop.eup %1584 }
 0x163   : > { %v1154_v10 = vmul.f32 %v1585_v9, %v1130_v32  ;;  %v1155_v11 = vmul.f32 %v1585_v9, %v1131_v54  ;;  %v1156_v12 = vmul.f32 %v1585_v9, %v1132_v55  ;;  %v1157_v13 = vmul.f32 %v1585_v9, %v1133_v56 }
 0x165   : > { %vm1158_vm1 = vcmp.ge.f32.partialorder %v1154_v10, 0.0  ;;  %vm1159_vm2 = vcmp.ge.f32.partialorder %v1155_v11, 0.0  ;;  %v1162_v14 = vmul.f32 0.2, %v1154_v10  ;;  %v1163_v15 = vmul.f32 0.2, %v1155_v11 }
 0x166   : > { %v1164_v16 = vmul.f32 0.2, %v1156_v12  ;;  %vm1160_vm3 = vcmp.ge.f32.partialorder %v1156_v12, 0.0  ;;  %v1165_v17 = vmul.f32 0.2, %v1157_v13  ;;  %vm1161_vm4 = vcmp.ge.f32.partialorder %v1157_v13, 0.0 }
 0x167   : > { %v1166_v18 = vsel %vm1158_vm1, %v1154_v10, %v1162_v14  ;;  %v1167_v19 = vsel %vm1159_vm2, %v1155_v11, %v1163_v15 }
 0x168   : > { %1170 = vst [vmem:[%s1871_s16] sm:$0xff] %v1166_v18  ;;  %v1168_v20 = vsel %vm1160_vm3, %v1156_v12, %v1164_v16  ;;  %1171 = vst [vmem:[%s1871_s16 + $0x8] sm:$0xff] %v1167_v19  ;;  %v1169_v21 = vsel %vm1161_vm4, %v1157_v13, %v1165_v17 }
 0x169   : > { %1172 = vst [vmem:[%s1871_s16 + $0x10] sm:$0xff] %v1168_v20  ;;  %1173 = vst [vmem:[%s1871_s16 + $0x18] sm:$0xff] %v1169_v21 }
 0x16a PF: > { %s13_s14 = sadd.s32 1, %s1608_s14   ;;  %s1916_s12 = smov %s1604_s13 }
 0x16b   : > { %p10_p5 = scmp.ge.s32.totalorder %s13_s14, 4   ;;  %s1917_s13 = smov %s1919_s15 }
 0x16d   :  { %12 = sbr.rel (!%p10_p5) target bundleno = 2 (0x2), region = 76 }

// kernel: multiscale_discriminator.6
= control target key start
LH: loop header
LB: loop body
LE: loop exit
PB: predicated region body
PF: predicated region fallthrough
CT: control target
= control target key end

     0   :  { %s3250_s12 = smov 0   ;;  %s3252_s13 = smov 0   ;;  %s4164_s0 = inlined_call_operand.vmem [shape: bf16[32,2048], index: 0, kind: input, shape index: {}]   ;;  %s4165_s1 = inlined_call_operand.vmem [shape: bf16[2048,256], index: 1, kind: input, shape index: {}]   ;;  %s4166_s2 = inlined_call_operand.vmem [shape: f32[1,256], index: 2, kind: input, shape index: {}]   ;;  %s4167_s3 = inlined_call_operand.vmem [shape: f32[32,256], index: 3, kind: output, shape index: {}]  }
   0x1   :  { %s3254_s14 = smov 0  }
   0x2 LB: > { %s32_s15 = sadd.s32 1, %s3224_s13  ;;  %p2511_p0 = scmp.ge.s32.totalorder %s3228_s14, 1  ;;  %s3228_s14 = sphi %s3254_s14, %s13_s14   ;;  %s3224_s13 = sphi %s3252_s13, %s4169_s13   ;;  %s3220_s12 = sphi %s3250_s12, %s4168_s12  }
   0x3   : > { %p34_p1 = scmp.ge.s32.totalorder %s32_s15, 2  ;;  %p196_p2 = scmp.lt.s32.totalorder %s3228_s14, 3 }
   0x5   : > { %s4171_s15 = smov (%p34_p1, %s32_s15), 0  ;;  %p197_p3 = pnand %p2511_p0, %p196_p2 }
   0x6   : > { %s2512_s30 = sshll.u32 (!%p197_p3), %s3220_s12, 1 }
   0x7   : > { %200 = sbr.rel (%p197_p3) target bundleno = 538 (0x21a), region = 32  ;;  %p246_p4 = scmp.lt.s32.totalorder (!%p197_p3), %s2512_s30, 3 }
   0xc   : > { %v2818_v0 = vld [vmem:[%s4165_s1 + $0x74] ss:$8 sps:$4 sm:$0xff]   ;;  %v2822_v2 = vld [vmem:[%s4165_s1 + $0x70] ss:$8 sps:$4 sm:$0xff]   ;;  %v2824_v4 = vld [vmem:[%s4165_s1 + $0x64] ss:$8 sps:$4 sm:$0xff]  }
   0xd   : > { %v2820_v1 = vld [vmem:[%s4165_s1 + $0x174] ss:$8 sps:$4 sm:$0xff]   ;;  %1943 = vmatprep.subr.bf16.mxu0 %v2818_v0  ;;  %v2823_v3 = vld [vmem:[%s4165_s1 + $0x170] ss:$8 sps:$4 sm:$0xff]   ;;  %v2826_v5 = vld [vmem:[%s4165_s1 + $0x164] ss:$8 sps:$4 sm:$0xff]  }
   0xe   : > { %1986 = vmatprep.subr.bf16.mxu1 %v2820_v1  ;;  %1944 = vmatpush1.bf16.msra.mxu0 %v2822_v2  ;;  %v2828_v6 = vld [vmem:[%s4165_s1 + $0x60] ss:$8 sps:$4 sm:$0xff]   ;;  %v2830_v8 = vld [vmem:[%s4165_s1 + $0x54] ss:$8 sps:$4 sm:$0xff]   ;;  %v2834_v10 = vld [vmem:[%s4165_s1 + $0x50] ss:$8 sps:$4 sm:$0xff]  }
   0xf   : > { %1987 = vmatpush1.bf16.msra.mxu1 %v2823_v3  ;;  %1945 = vmatprep.subr.bf16.mxu0 %v2824_v4  ;;  %v2829_v7 = vld [vmem:[%s4165_s1 + $0x160] ss:$8 sps:$4 sm:$0xff]   ;;  %v2832_v9 = vld [vmem:[%s4165_s1 + $0x154] ss:$8 sps:$4 sm:$0xff]   ;;  %v2835_v11 = vld [vmem:[%s4165_s1 + $0x150] ss:$8 sps:$4 sm:$0xff]  }
  0x10   : > { %1988 = vmatprep.subr.bf16.mxu1 %v2826_v5  ;;  %v2836_v12 = vld [vmem:[%s4165_s1 + $0x44] ss:$8 sps:$4 sm:$0xff]   ;;  %v2840_v14 = vld [vmem:[%s4165_s1 + $0x40] ss:$8 sps:$4 sm:$0xff]   ;;  %v2842_v16 = vld [vmem:[%s4165_s1 + $0x34] ss:$8 sps:$4 sm:$0xff]  }
  0x11   : > { %v2838_v13 = vld [vmem:[%s4165_s1 + $0x144] ss:$8 sps:$4 sm:$0xff]   ;;  %v2841_v15 = vld [vmem:[%s4165_s1 + $0x140] ss:$8 sps:$4 sm:$0xff]   ;;  %v2844_v17 = vld [vmem:[%s4165_s1 + $0x134] ss:$8 sps:$4 sm:$0xff]  }
  0x12   : > { %1946 = vmatpush1.bf16.msra.mxu0 %v2828_v6  ;;  %v2846_v18 = vld [vmem:[%s4165_s1 + $0x30] ss:$8 sps:$4 sm:$0xff]   ;;  %v2848_v20 = vld [vmem:[%s4165_s1 + $0x24] ss:$8 sps:$4 sm:$0xff]   ;;  %v2852_v22 = vld [vmem:[%s4165_s1 + $0x20] ss:$8 sps:$4 sm:$0xff]  }
  0x13   : > { %1989 = vmatpush1.bf16.msra.mxu1 %v2829_v7  ;;  %1947 = vmatprep.subr.bf16.mxu0 %v2830_v8  ;;  %v2847_v19 = vld [vmem:[%s4165_s1 + $0x130] ss:$8 sps:$4 sm:$0xff]   ;;  %v2850_v21 = vld [vmem:[%s4165_s1 + $0x124] ss:$8 sps:$4 sm:$0xff]   ;;  %v2853_v23 = vld [vmem:[%s4165_s1 + $0x120] ss:$8 sps:$4 sm:$0xff]  }
  0x14   : > { %1990 = vmatprep.subr.bf16.mxu1 %v2832_v9  ;;  %v2854_v24 = vld [vmem:[%s4165_s1 + $0x14] ss:$8 sps:$4 sm:$0xff]   ;;  %v2858_v26 = vld [vmem:[%s4165_s1 + $0x10] ss:$8 sps:$4 sm:$0xff]   ;;  %v2860_v28 = vld [vmem:[%s4165_s1 + $0x4] ss:$8 sps:$4 sm:$0xff]  }
  0x15   : > { %v2856_v25 = vld [vmem:[%s4165_s1 + $0x114] ss:$8 sps:$4 sm:$0xff]   ;;  %v2859_v27 = vld [vmem:[%s4165_s1 + $0x110] ss:$8 sps:$4 sm:$0xff]   ;;  %v2862_v29 = vld [vmem:[%s4165_s1 + $0x104] ss:$8 sps:$4 sm:$0xff]  }
  0x16   : > { %1948 = vmatpush1.bf16.msra.mxu0 %v2834_v10  ;;  %v2864_v30 = vld [vmem:[%s4165_s1] ss:$8 sps:$4 sm:$0xff]   ;;  %v2866_v32 = vld [vmem:[%s4165_s1 + $0xf4] ss:$8 sps:$4 sm:$0xff]   ;;  %v2870_v34 = vld [vmem:[%s4165_s1 + $0xf0] ss:$8 sps:$4 sm:$0xff]  }
  0x17   : > { %1991 = vmatpush1.bf16.msra.mxu1 %v2835_v11  ;;  %1949 = vmatprep.subr.bf16.mxu0 %v2836_v12  ;;  %v2865_v31 = vld [vmem:[%s4165_s1 + $0x100] ss:$8 sps:$4 sm:$0xff]   ;;  %v2868_v33 = vld [vmem:[%s4165_s1 + $0x1f4] ss:$8 sps:$4 sm:$0xff]   ;;  %v2871_v35 = vld [vmem:[%s4165_s1 + $0x1f0] ss:$8 sps:$4 sm:$0xff]  }
  0x18   : > { %1992 = vmatprep.subr.bf16.mxu1 %v2838_v13  ;;  %v2872_v36 = vld [vmem:[%s4165_s1 + $0xe4] ss:$8 sps:$4 sm:$0xff]   ;;  %s4173_s30 = smov (!%p246_p4, %s2512_s30), 3  ;;  %v2876_v38 = vld [vmem:[%s4165_s1 + $0xe0] ss:$8 sps:$4 sm:$0xff]  }
  0x19   : > { %v2874_v37 = vld [vmem:[%s4165_s1 + $0x1e4] ss:$8 sps:$4 sm:$0xff]   ;;  %v2877_v39 = vld [vmem:[%s4165_s1 + $0x1e0] ss:$8 sps:$4 sm:$0xff]   ;;  %v2878_v40 = vld [vmem:[%s4165_s1 + $0xd4] ss:$8 sps:$4 sm:$0xff]  }
  0x1a   : > { %1950 = vmatpush1.bf16.msra.mxu0 %v2840_v14  ;;  %s2792_s29 = sshll.u32 %s4173_s30, 6  ;;  %v2880_v41 = vld [vmem:[%s4165_s1 + $0x1d4] ss:$8 sps:$4 sm:$0xff]   ;;  %v2882_v42 = vld [vmem:[%s4165_s1 + $0xd0] ss:$8 sps:$4 sm:$0xff]   ;;  %s2793_s16 = sshll.u32 %s4173_s30, 4 }
  0x1b   : > { %1993 = vmatpush1.bf16.msra.mxu1 %v2841_v15  ;;  %1951 = vmatprep.subr.bf16.mxu0 %v2842_v16  ;;  %v2883_v43 = vld [vmem:[%s4165_s1 + $0x1d0] ss:$8 sps:$4 sm:$0xff]   ;;  %s3409_s12 = scalar_lea.vmem %s4164_s0, %s2792_s29  ;;  %v2884_v44 = vld [vmem:[%s4165_s1 + $0xc4] ss:$8 sps:$4 sm:$0xff]   ;;  %v2888_v46 = vld [vmem:[%s4165_s1 + $0xc0] ss:$8 sps:$4 sm:$0xff]   ;;  %s4118_s19 = scalar_lea.vmem %s4167_s3, %s2793_s16 }
  0x1c   : > { %1994 = vmatprep.subr.bf16.mxu1 %v2844_v17  ;;  %v2886_v45 = vld [vmem:[%s4165_s1 + $0x1c4] ss:$8 sps:$4 sm:$0xff]   ;;  %v2889_v47 = vld [vmem:[%s4165_s1 + $0x1c0] ss:$8 sps:$4 sm:$0xff]   ;;  %v2890_v52 = vld [vmem:[%s4165_s1 + $0xb4] ss:$8 sps:$4 sm:$0xff]  }
  0x1d   : > { %v311_v48 = vld [vmem:[%s3409_s12] sm:$0xff]  ;;  %v312_v50 = vld [vmem:[%s3409_s12 + $0x8] sm:$0xff]  ;;  %v2892_v54 = vld [vmem:[%s4165_s1 + $0x1b4] ss:$8 sps:$4 sm:$0xff]  }
  0x1e   : > { %1952 = vmatpush1.bf16.msra.mxu0 %v2846_v18  ;;  %v319_v49 = vld [vmem:[%s3409_s12 + $0x40] sm:$0xff]  ;;  %v320_v51 = vld [vmem:[%s3409_s12 + $0x48] sm:$0xff]  ;;  %v2894_v56 = vld [vmem:[%s4165_s1 + $0xb0] ss:$8 sps:$4 sm:$0xff]  }
  0x1f   : > { %1995 = vmatpush1.bf16.msra.mxu1 %v2847_v19  ;;  %1953 = vmatprep.subr.bf16.mxu0 %v2848_v20  ;;  %v2519_v53 = vcombine.high %v311_v48, %v319_v49  ;;  %v2521_v55 = vcombine.high %v312_v50, %v320_v51  ;;  %v2895_v57 = vld [vmem:[%s4165_s1 + $0x1b0] ss:$8 sps:$4 sm:$0xff]   ;;  %v2896_v58 = vld [vmem:[%s4165_s1 + $0xa4] ss:$8 sps:$4 sm:$0xff]   ;;  %v2900_v60 = vld [vmem:[%s4165_s1 + $0xa0] ss:$8 sps:$4 sm:$0xff]   ;;  %v2518_v8 = vcombine.low %v311_v48, %v319_v49 }
  0x20   : > { %1996 = vmatprep.subr.bf16.mxu1 %v2850_v21  ;;  %v2898_v59 = vld [vmem:[%s4165_s1 + $0x1a4] ss:$8 sps:$4 sm:$0xff]   ;;  %v2901_v61 = vld [vmem:[%s4165_s1 + $0x1a0] ss:$8 sps:$4 sm:$0xff]   ;;  %v2902_v62 = vld [vmem:[%s4165_s1 + $0x94] ss:$8 sps:$4 sm:$0xff]   ;;  %v2520_v9 = vcombine.low %v312_v50, %v320_v51 }
  0x21   : > { %1975 = vmatprep.mubr.bf16.mxu0 %v2519_v53  ;;  %2018 = vmatprep.mubr.bf16.mxu1 %v2521_v55  ;;  %v2904_v63 = vld [vmem:[%s4165_s1 + $0x194] ss:$8 sps:$4 sm:$0xff]   ;;  %v2906_v0 = vld [vmem:[%s4165_s1 + $0x90] ss:$8 sps:$4 sm:$0xff]   ;;  %v2908_v2 = vld [vmem:[%s4165_s1 + $0x84] ss:$8 sps:$4 sm:$0xff]  }
  0x22   : > { %1954 = vmatpush1.bf16.msra.mxu0 %v2852_v22  ;;  %v2907_v1 = vld [vmem:[%s4165_s1 + $0x190] ss:$8 sps:$4 sm:$0xff]   ;;  %v2910_v3 = vld [vmem:[%s4165_s1 + $0x184] ss:$8 sps:$4 sm:$0xff]   ;;  %v2912_v4 = vld [vmem:[%s4165_s1 + $0x80] ss:$8 sps:$4 sm:$0xff]  }
  0x23   : > { %1997 = vmatpush1.bf16.msra.mxu1 %v2853_v23  ;;  %1955 = vmatprep.subr.bf16.mxu0 %v2854_v24  ;;  %v2913_v5 = vld [vmem:[%s4165_s1 + $0x180] ss:$8 sps:$4 sm:$0xff]   ;;  %v2916_v6 = vld [vmem:[%s4165_s1 + $0x274] ss:$8 sps:$4 sm:$0xff]   ;;  %v2914_v10 = vld [vmem:[%s4165_s1 + $0x270] ss:$8 sps:$4 sm:$0xff]  }
  0x24   : > { %1998 = vmatprep.subr.bf16.mxu1 %v2856_v25  ;;  %v2919_v7 = vld [vmem:[%s4165_s1 + $0x374] ss:$8 sps:$4 sm:$0xff]   ;;  %v2917_v11 = vld [vmem:[%s4165_s1 + $0x370] ss:$8 sps:$4 sm:$0xff]   ;;  %v2922_v12 = vld [vmem:[%s4165_s1 + $0x264] ss:$8 sps:$4 sm:$0xff]  }
  0x25   : > { %v2925_v13 = vld [vmem:[%s4165_s1 + $0x364] ss:$8 sps:$4 sm:$0xff]   ;;  %v2920_v14 = vld [vmem:[%s4165_s1 + $0x260] ss:$8 sps:$4 sm:$0xff]   ;;  %v2928_v16 = vld [vmem:[%s4165_s1 + $0x254] ss:$8 sps:$4 sm:$0xff]  }
  0x26   : > { %1956 = vmatpush1.bf16.msra.mxu0 %v2858_v26  ;;  %v2923_v15 = vld [vmem:[%s4165_s1 + $0x360] ss:$8 sps:$4 sm:$0xff]   ;;  %v2931_v17 = vld [vmem:[%s4165_s1 + $0x354] ss:$8 sps:$4 sm:$0xff]   ;;  %v2926_v18 = vld [vmem:[%s4165_s1 + $0x250] ss:$8 sps:$4 sm:$0xff]  }
  0x27   : > { %1999 = vmatpush1.bf16.msra.mxu1 %v2859_v27  ;;  %1957 = vmatprep.subr.bf16.mxu0 %v2860_v28  ;;  %v2929_v19 = vld [vmem:[%s4165_s1 + $0x350] ss:$8 sps:$4 sm:$0xff]   ;;  %v2934_v20 = vld [vmem:[%s4165_s1 + $0x244] ss:$8 sps:$4 sm:$0xff]   ;;  %v2932_v22 = vld [vmem:[%s4165_s1 + $0x240] ss:$8 sps:$4 sm:$0xff]  }
  0x28   : > { %2000 = vmatprep.subr.bf16.mxu1 %v2862_v29  ;;  %v2937_v21 = vld [vmem:[%s4165_s1 + $0x344] ss:$8 sps:$4 sm:$0xff]   ;;  %v2935_v23 = vld [vmem:[%s4165_s1 + $0x340] ss:$8 sps:$4 sm:$0xff]   ;;  %v2940_v24 = vld [vmem:[%s4165_s1 + $0x234] ss:$8 sps:$4 sm:$0xff]  }
  0x29   : > { %v2943_v25 = vld [vmem:[%s4165_s1 + $0x334] ss:$8 sps:$4 sm:$0xff]   ;;  %v2938_v26 = vld [vmem:[%s4165_s1 + $0x230] ss:$8 sps:$4 sm:$0xff]   ;;  %v2946_v28 = vld [vmem:[%s4165_s1 + $0x224] ss:$8 sps:$4 sm:$0xff]  }
  0x2a   : > { %1958 = vmatpush1.bf16.msra.mxu0 %v2864_v30  ;;  %v2941_v27 = vld [vmem:[%s4165_s1 + $0x330] ss:$8 sps:$4 sm:$0xff]   ;;  %v2949_v29 = vld [vmem:[%s4165_s1 + $0x324] ss:$8 sps:$4 sm:$0xff]   ;;  %v2944_v30 = vld [vmem:[%s4165_s1 + $0x220] ss:$8 sps:$4 sm:$0xff]  }
  0x2b   : > { %2001 = vmatpush1.bf16.msra.mxu1 %v2865_v31  ;;  %1959 = vmatprep.subr.bf16.mxu0 %v2866_v32  ;;  %v2947_v31 = vld [vmem:[%s4165_s1 + $0x320] ss:$8 sps:$4 sm:$0xff]   ;;  %v2952_v32 = vld [vmem:[%s4165_s1 + $0x214] ss:$8 sps:$4 sm:$0xff]   ;;  %v2962_v48 = vld [vmem:[%s4165_s1 + $0x2f0] ss:$8 sps:$4 sm:$0xff]  }
  0x2c   : > { %2002 = vmatprep.subr.bf16.mxu1 %v2868_v33  ;;  %v2955_v33 = vld [vmem:[%s4165_s1 + $0x314] ss:$8 sps:$4 sm:$0xff]   ;;  %v2965_v49 = vld [vmem:[%s4165_s1 + $0x3f0] ss:$8 sps:$4 sm:$0xff]   ;;  %v2970_v50 = vld [vmem:[%s4165_s1 + $0x2e4] ss:$8 sps:$4 sm:$0xff]  }
  0x2d   : > { %v2973_v51 = vld [vmem:[%s4165_s1 + $0x3e4] ss:$8 sps:$4 sm:$0xff]   ;;  %v2971_v53 = vld [vmem:[%s4165_s1 + $0x3e0] ss:$8 sps:$4 sm:$0xff]   ;;  %v2979_v55 = vld [vmem:[%s4165_s1 + $0x3d4] ss:$8 sps:$4 sm:$0xff]  }
  0x2e   : > { %1960 = vmatpush2.bf16.msra.mxu0 %v2870_v34  ;;  %v2950_v34 = vld [vmem:[%s4165_s1 + $0x210] ss:$8 sps:$4 sm:$0xff]  }
  0x2f   : > { %2003 = vmatpush2.bf16.msra.mxu1 %v2871_v35  ;;  %1961 = vmatprep.subr.bf16.mxu0 %v2872_v36  ;;  %v2953_v35 = vld [vmem:[%s4165_s1 + $0x310] ss:$8 sps:$4 sm:$0xff]  }
  0x30   : > { %2004 = vmatprep.subr.bf16.mxu1 %v2874_v37  ;;  %v3560_v36 = vld [vmem:[%s3409_s12 + $0x10] sm:$0xff] }
  0x31   : > { %v3563_v37 = vld [vmem:[%s3409_s12 + $0x50] sm:$0xff] }
  0x32   : > { %1962 = vmatpush2.bf16.msra.mxu0 %v2876_v38  ;;  %v3566_v38 = vld [vmem:[%s3409_s12 + $0x18] sm:$0xff] }
  0x33   : > { %2005 = vmatpush2.bf16.msra.mxu1 %v2877_v39  ;;  %1963 = vmatprep.subr.bf16.mxu0 %v2878_v40  ;;  %v3569_v39 = vld [vmem:[%s3409_s12 + $0x58] sm:$0xff]  ;;  %v2958_v40 = vld [vmem:[%s4165_s1 + $0x204] ss:$8 sps:$4 sm:$0xff]  }
  0x34   : > { %2006 = vmatprep.subr.bf16.mxu1 %v2880_v41  ;;  %v2523_v41 = vcombine.high %v3560_v36, %v3563_v37 }
  0x36   : > { %1964 = vmatpush2.bf16.msra.mxu0 %v2882_v42  ;;  %v2961_v42 = vld [vmem:[%s4165_s1 + $0x304] ss:$8 sps:$4 sm:$0xff]  }
  0x37   : > { %2007 = vmatpush2.bf16.msra.mxu1 %v2883_v43  ;;  %1965 = vmatprep.subr.bf16.mxu0 %v2884_v44  ;;  %v2525_v43 = vcombine.high %v3566_v38, %v3569_v39  ;;  %v2956_v44 = vld [vmem:[%s4165_s1 + $0x200] ss:$8 sps:$4 sm:$0xff]  }
  0x38   : > { %2008 = vmatprep.subr.bf16.mxu1 %v2886_v45  ;;  %v2959_v45 = vld [vmem:[%s4165_s1 + $0x300] ss:$8 sps:$4 sm:$0xff]  }
  0x3a   : > { %1966 = vmatpush2.bf16.msra.mxu0 %v2888_v46  ;;  %v2964_v46 = vld [vmem:[%s4165_s1 + $0x2f4] ss:$8 sps:$4 sm:$0xff]  }
  0x3b   : > { %2009 = vmatpush2.bf16.msra.mxu1 %v2889_v47  ;;  %1967 = vmatprep.subr.bf16.mxu0 %v2890_v52  ;;  %v2967_v47 = vld [vmem:[%s4165_s1 + $0x3f4] ss:$8 sps:$4 sm:$0xff]   ;;  %v2968_v52 = vld [vmem:[%s4165_s1 + $0x2e0] ss:$8 sps:$4 sm:$0xff]  }
  0x3c   : > { %2010 = vmatprep.subr.bf16.mxu1 %v2892_v54  ;;  %v2976_v54 = vld [vmem:[%s4165_s1 + $0x2d4] ss:$8 sps:$4 sm:$0xff]  }
  0x3e   : > { %1968 = vmatpush2.bf16.msra.mxu0 %v2894_v56  ;;  %v2974_v56 = vld [vmem:[%s4165_s1 + $0x2d0] ss:$8 sps:$4 sm:$0xff]  }
  0x3f   : > { %2011 = vmatpush2.bf16.msra.mxu1 %v2895_v57  ;;  %1969 = vmatprep.subr.bf16.mxu0 %v2896_v58  ;;  %v2977_v57 = vld [vmem:[%s4165_s1 + $0x3d0] ss:$8 sps:$4 sm:$0xff]   ;;  %v2982_v58 = vld [vmem:[%s4165_s1 + $0x2c4] ss:$8 sps:$4 sm:$0xff]  }
  0x40   : > { %2012 = vmatprep.subr.bf16.mxu1 %v2898_v59  ;;  %v2985_v59 = vld [vmem:[%s4165_s1 + $0x3c4] ss:$8 sps:$4 sm:$0xff]  }
  0x42   : > { %1970 = vmatpush2.bf16.msra.mxu0 %v2900_v60  ;;  %v2980_v60 = vld [vmem:[%s4165_s1 + $0x2c0] ss:$8 sps:$4 sm:$0xff]  }
  0x43   : > { %2013 = vmatpush2.bf16.msra.mxu1 %v2901_v61  ;;  %1971 = vmatprep.subr.bf16.mxu0 %v2902_v62  ;;  %v2983_v61 = vld [vmem:[%s4165_s1 + $0x3c0] ss:$8 sps:$4 sm:$0xff]   ;;  %v2988_v62 = vld [vmem:[%s4165_s1 + $0x2b4] ss:$8 sps:$4 sm:$0xff]  }
  0x44   : > { %2014 = vmatprep.subr.bf16.mxu1 %v2904_v63  ;;  %v2991_v63 = vld [vmem:[%s4165_s1 + $0x3b4] ss:$8 sps:$4 sm:$0xff]  }
  0x46   : > { %1972 = vmatpush2.bf16.msra.mxu0 %v2906_v0  ;;  %v2986_v0 = vld [vmem:[%s4165_s1 + $0x2b0] ss:$8 sps:$4 sm:$0xff]  }
  0x47   : > { %2015 = vmatpush2.bf16.msra.mxu1 %v2907_v1  ;;  %1973 = vmatprep.subr.bf16.mxu0 %v2908_v2  ;;  %v2989_v1 = vld [vmem:[%s4165_s1 + $0x3b0] ss:$8 sps:$4 sm:$0xff]   ;;  %v2994_v2 = vld [vmem:[%s4165_s1 + $0x2a4] ss:$8 sps:$4 sm:$0xff]  }
  0x48   : > { %2016 = vmatprep.subr.bf16.mxu1 %v2910_v3  ;;  %v2997_v3 = vld [vmem:[%s4165_s1 + $0x3a4] ss:$8 sps:$4 sm:$0xff]  }
  0x4a   : > { %1974 = vmatpush2.bf16.msra.mxu0 %v2912_v4  ;;  %v2992_v4 = vld [vmem:[%s4165_s1 + $0x2a0] ss:$8 sps:$4 sm:$0xff]  }
  0x4b   : > { %2017 = vmatpush2.bf16.msra.mxu1 %v2913_v5  ;;  %2029 = vmatprep.subr.bf16.mxu0 %v2916_v6  ;;  %v2995_v5 = vld [vmem:[%s4165_s1 + $0x3a0] ss:$8 sps:$4 sm:$0xff]   ;;  %v3000_v6 = vld [vmem:[%s4165_s1 + $0x294] ss:$8 sps:$4 sm:$0xff]  }
  0x4c   : > { %2072 = vmatprep.subr.bf16.mxu1 %v2919_v7  ;;  %v3003_v7 = vld [vmem:[%s4165_s1 + $0x394] ss:$8 sps:$4 sm:$0xff]  }
  0x4d   : > { %1976 = vmatmul.mubr.bf16.vlgmr.msra.gmra.mxu0 %v2518_v8  ;;  %v2998_v8 = vld [vmem:[%s4165_s1 + $0x290] ss:$8 sps:$4 sm:$0xff]  }
  0x4e   : > { %2019 = vmatmul.mubr.bf16.vlgmr.msra.gmra.mxu1 %v2520_v9  ;;  %2030 = vmatpush1.bf16.msra.mxu0 %v2914_v10  ;;  %v3001_v9 = vld [vmem:[%s4165_s1 + $0x390] ss:$8 sps:$4 sm:$0xff]   ;;  %v3006_v10 = vld [vmem:[%s4165_s1 + $0x284] ss:$8 sps:$4 sm:$0xff]  }
  0x4f   : > { %2073 = vmatpush1.bf16.msra.mxu1 %v2917_v11  ;;  %2031 = vmatprep.subr.bf16.mxu0 %v2922_v12  ;;  %v3009_v11 = vld [vmem:[%s4165_s1 + $0x384] ss:$8 sps:$4 sm:$0xff]   ;;  %v3004_v12 = vld [vmem:[%s4165_s1 + $0x280] ss:$8 sps:$4 sm:$0xff]  }
  0x50   : > { %2074 = vmatprep.subr.bf16.mxu1 %v2925_v13  ;;  %2061 = vmatprep.mubr.bf16.mxu0 %v2523_v41  ;;  %v3007_v13 = vld [vmem:[%s4165_s1 + $0x380] ss:$8 sps:$4 sm:$0xff]   ;;  %v3037_v41 = vld [vmem:[%s4165_s1 + $0x530] ss:$8 sps:$4 sm:$0xff]  }
  0x51   : > { %2104 = vmatprep.mubr.bf16.mxu1 %v2525_v43  ;;  %v3045_v43 = vld [vmem:[%s4165_s1 + $0x524] ss:$8 sps:$4 sm:$0xff]  }
  0x52   : > { %2032 = vmatpush1.bf16.msra.mxu0 %v2920_v14  ;;  %v3012_v14 = vld [vmem:[%s4165_s1 + $0x474] ss:$8 sps:$4 sm:$0xff]  }
  0x53   : > { %2075 = vmatpush1.bf16.msra.mxu1 %v2923_v15  ;;  %2033 = vmatprep.subr.bf16.mxu0 %v2928_v16  ;;  %v3015_v15 = vld [vmem:[%s4165_s1 + $0x574] ss:$8 sps:$4 sm:$0xff]   ;;  %v2522_v16 = vcombine.low %v3560_v36, %v3563_v37  ;;  %v3028_v36 = vld [vmem:[%s4165_s1 + $0x440] ss:$8 sps:$4 sm:$0xff]  }
  0x54   : > { %2076 = vmatprep.subr.bf16.mxu1 %v2931_v17  ;;  %v2524_v17 = vcombine.low %v3566_v38, %v3569_v39  ;;  %v3031_v37 = vld [vmem:[%s4165_s1 + $0x540] ss:$8 sps:$4 sm:$0xff]   ;;  %v3036_v38 = vld [vmem:[%s4165_s1 + $0x434] ss:$8 sps:$4 sm:$0xff]  }
  0x55   : > { %v3039_v39 = vld [vmem:[%s4165_s1 + $0x534] ss:$8 sps:$4 sm:$0xff]  }
  0x56   : > { %2034 = vmatpush1.bf16.msra.mxu0 %v2926_v18  ;;  %v3010_v18 = vld [vmem:[%s4165_s1 + $0x470] ss:$8 sps:$4 sm:$0xff]  }
  0x57   : > { %2077 = vmatpush1.bf16.msra.mxu1 %v2929_v19  ;;  %2035 = vmatprep.subr.bf16.mxu0 %v2934_v20  ;;  %v3013_v19 = vld [vmem:[%s4165_s1 + $0x570] ss:$8 sps:$4 sm:$0xff]   ;;  %v3018_v20 = vld [vmem:[%s4165_s1 + $0x464] ss:$8 sps:$4 sm:$0xff]  }
  0x58   : > { %2078 = vmatprep.subr.bf16.mxu1 %v2937_v21  ;;  %v3021_v21 = vld [vmem:[%s4165_s1 + $0x564] ss:$8 sps:$4 sm:$0xff]  }
  0x5a   : > { %2036 = vmatpush1.bf16.msra.mxu0 %v2932_v22  ;;  %v3016_v22 = vld [vmem:[%s4165_s1 + $0x460] ss:$8 sps:$4 sm:$0xff]  }
  0x5b   : > { %2079 = vmatpush1.bf16.msra.mxu1 %v2935_v23  ;;  %2037 = vmatprep.subr.bf16.mxu0 %v2940_v24  ;;  %v3019_v23 = vld [vmem:[%s4165_s1 + $0x560] ss:$8 sps:$4 sm:$0xff]  }
  0x5c   : > { %2080 = vmatprep.subr.bf16.mxu1 %v2943_v25  ;;  %v3712_v24 = vld [vmem:[%s3409_s12 + $0x20] sm:$0xff] }
  0x5d   : > { %v3715_v25 = vld [vmem:[%s3409_s12 + $0x60] sm:$0xff] }
  0x5e   : > { %2038 = vmatpush1.bf16.msra.mxu0 %v2938_v26  ;;  %v3718_v26 = vld [vmem:[%s3409_s12 + $0x28] sm:$0xff] }
  0x5f   : > { %2081 = vmatpush1.bf16.msra.mxu1 %v2941_v27  ;;  %2039 = vmatprep.subr.bf16.mxu0 %v2946_v28  ;;  %v3721_v27 = vld [vmem:[%s3409_s12 + $0x68] sm:$0xff]  ;;  %v3024_v28 = vld [vmem:[%s4165_s1 + $0x454] ss:$8 sps:$4 sm:$0xff]  }
  0x60   : > { %2082 = vmatprep.subr.bf16.mxu1 %v2949_v29  ;;  %v2527_v29 = vcombine.high %v3712_v24, %v3715_v25 }
  0x62   : > { %2040 = vmatpush1.bf16.msra.mxu0 %v2944_v30  ;;  %v3027_v30 = vld [vmem:[%s4165_s1 + $0x554] ss:$8 sps:$4 sm:$0xff]  }
  0x63   : > { %2083 = vmatpush1.bf16.msra.mxu1 %v2947_v31  ;;  %2041 = vmatprep.subr.bf16.mxu0 %v2952_v32  ;;  %v2529_v31 = vcombine.high %v3718_v26, %v3721_v27  ;;  %v3022_v32 = vld [vmem:[%s4165_s1 + $0x450] ss:$8 sps:$4 sm:$0xff]  }
  0x64   : > { %2084 = vmatprep.subr.bf16.mxu1 %v2955_v33  ;;  %v3025_v33 = vld [vmem:[%s4165_s1 + $0x550] ss:$8 sps:$4 sm:$0xff]  }
  0x66   : > { %2042 = vmatpush1.bf16.msra.mxu0 %v2950_v34  ;;  %v3030_v34 = vld [vmem:[%s4165_s1 + $0x444] ss:$8 sps:$4 sm:$0xff]  }
  0x67   : > { %2085 = vmatpush1.bf16.msra.mxu1 %v2953_v35  ;;  %2043 = vmatprep.subr.bf16.mxu0 %v2958_v40  ;;  %v3033_v35 = vld [vmem:[%s4165_s1 + $0x544] ss:$8 sps:$4 sm:$0xff]   ;;  %v3034_v40 = vld [vmem:[%s4165_s1 + $0x430] ss:$8 sps:$4 sm:$0xff]  }
  0x68   : > { %2086 = vmatprep.subr.bf16.mxu1 %v2961_v42  ;;  %v3042_v42 = vld [vmem:[%s4165_s1 + $0x424] ss:$8 sps:$4 sm:$0xff]  }
  0x6a   : > { %2044 = vmatpush1.bf16.msra.mxu0 %v2956_v44  ;;  %v3040_v44 = vld [vmem:[%s4165_s1 + $0x420] ss:$8 sps:$4 sm:$0xff]  }
  0x6b   : > { %2087 = vmatpush1.bf16.msra.mxu1 %v2959_v45  ;;  %2045 = vmatprep.subr.bf16.mxu0 %v2964_v46  ;;  %v3043_v45 = vld [vmem:[%s4165_s1 + $0x520] ss:$8 sps:$4 sm:$0xff]   ;;  %v3048_v46 = vld [vmem:[%s4165_s1 + $0x414] ss:$8 sps:$4 sm:$0xff]  }
  0x6c   : > { %2088 = vmatprep.subr.bf16.mxu1 %v2967_v47  ;;  %v3051_v47 = vld [vmem:[%s4165_s1 + $0x514] ss:$8 sps:$4 sm:$0xff]  }
  0x6e   : > { %2046 = vmatpush2.bf16.msra.mxu0 %v2962_v48  ;;  %v3046_v48 = vld [vmem:[%s4165_s1 + $0x410] ss:$8 sps:$4 sm:$0xff]  }
  0x6f   : > { %2089 = vmatpush2.bf16.msra.mxu1 %v2965_v49  ;;  %2047 = vmatprep.subr.bf16.mxu0 %v2970_v50  ;;  %v3049_v49 = vld [vmem:[%s4165_s1 + $0x510] ss:$8 sps:$4 sm:$0xff]   ;;  %v3054_v50 = vld [vmem:[%s4165_s1 + $0x404] ss:$8 sps:$4 sm:$0xff]  }
  0x70   : > { %2090 = vmatprep.subr.bf16.mxu1 %v2973_v51  ;;  %v3057_v51 = vld [vmem:[%s4165_s1 + $0x504] ss:$8 sps:$4 sm:$0xff]  }
  0x72   : > { %2048 = vmatpush2.bf16.msra.mxu0 %v2968_v52  ;;  %v3052_v52 = vld [vmem:[%s4165_s1 + $0x400] ss:$8 sps:$4 sm:$0xff]  }
  0x73   : > { %2091 = vmatpush2.bf16.msra.mxu1 %v2971_v53  ;;  %2049 = vmatprep.subr.bf16.mxu0 %v2976_v54  ;;  %v3055_v53 = vld [vmem:[%s4165_s1 + $0x500] ss:$8 sps:$4 sm:$0xff]   ;;  %v3060_v54 = vld [vmem:[%s4165_s1 + $0x4f4] ss:$8 sps:$4 sm:$0xff]  }
  0x74   : > { %2092 = vmatprep.subr.bf16.mxu1 %v2979_v55  ;;  %v3063_v55 = vld [vmem:[%s4165_s1 + $0x5f4] ss:$8 sps:$4 sm:$0xff]  }
  0x76   : > { %2050 = vmatpush2.bf16.msra.mxu0 %v2974_v56  ;;  %v3058_v56 = vld [vmem:[%s4165_s1 + $0x4f0] ss:$8 sps:$4 sm:$0xff]  }
  0x77   : > { %2093 = vmatpush2.bf16.msra.mxu1 %v2977_v57  ;;  %2051 = vmatprep.subr.bf16.mxu0 %v2982_v58  ;;  %v3061_v57 = vld [vmem:[%s4165_s1 + $0x5f0] ss:$8 sps:$4 sm:$0xff]   ;;  %v3066_v58 = vld [vmem:[%s4165_s1 + $0x4e4] ss:$8 sps:$4 sm:$0xff]  }
  0x78   : > { %2094 = vmatprep.subr.bf16.mxu1 %v2985_v59  ;;  %v3069_v59 = vld [vmem:[%s4165_s1 + $0x5e4] ss:$8 sps:$4 sm:$0xff]  }
  0x7a   : > { %2052 = vmatpush2.bf16.msra.mxu0 %v2980_v60  ;;  %v3064_v60 = vld [vmem:[%s4165_s1 + $0x4e0] ss:$8 sps:$4 sm:$0xff]  }
  0x7b   : > { %2095 = vmatpush2.bf16.msra.mxu1 %v2983_v61  ;;  %2053 = vmatprep.subr.bf16.mxu0 %v2988_v62  ;;  %v3067_v61 = vld [vmem:[%s4165_s1 + $0x5e0] ss:$8 sps:$4 sm:$0xff]   ;;  %v3072_v62 = vld [vmem:[%s4165_s1 + $0x4d4] ss:$8 sps:$4 sm:$0xff]  }
  0x7c   : > { %2096 = vmatprep.subr.bf16.mxu1 %v2991_v63  ;;  %v3075_v63 = vld [vmem:[%s4165_s1 + $0x5d4] ss:$8 sps:$4 sm:$0xff]  }
  0x7e   : > { %2054 = vmatpush2.bf16.msra.mxu0 %v2986_v0  ;;  %v3070_v0 = vld [vmem:[%s4165_s1 + $0x4d0] ss:$8 sps:$4 sm:$0xff]  }
  0x7f   : > { %2097 = vmatpush2.bf16.msra.mxu1 %v2989_v1  ;;  %2055 = vmatprep.subr.bf16.mxu0 %v2994_v2  ;;  %v3073_v1 = vld [vmem:[%s4165_s1 + $0x5d0] ss:$8 sps:$4 sm:$0xff]   ;;  %v3078_v2 = vld [vmem:[%s4165_s1 + $0x4c4] ss:$8 sps:$4 sm:$0xff]  }
  0x80   : > { %2098 = vmatprep.subr.bf16.mxu1 %v2997_v3  ;;  %v3081_v3 = vld [vmem:[%s4165_s1 + $0x5c4] ss:$8 sps:$4 sm:$0xff]  }
  0x82   : > { %2056 = vmatpush2.bf16.msra.mxu0 %v2992_v4  ;;  %v3076_v4 = vld [vmem:[%s4165_s1 + $0x4c0] ss:$8 sps:$4 sm:$0xff]  }
  0x83   : > { %2099 = vmatpush2.bf16.msra.mxu1 %v2995_v5  ;;  %2057 = vmatprep.subr.bf16.mxu0 %v3000_v6  ;;  %v3079_v5 = vld [vmem:[%s4165_s1 + $0x5c0] ss:$8 sps:$4 sm:$0xff]   ;;  %v3084_v6 = vld [vmem:[%s4165_s1 + $0x4b4] ss:$8 sps:$4 sm:$0xff]  }
  0x84   : > { %2100 = vmatprep.subr.bf16.mxu1 %v3003_v7  ;;  %v3087_v7 = vld [vmem:[%s4165_s1 + $0x5b4] ss:$8 sps:$4 sm:$0xff]  }
  0x86   : > { %2058 = vmatpush2.bf16.msra.mxu0 %v2998_v8  ;;  %v3082_v8 = vld [vmem:[%s4165_s1 + $0x4b0] ss:$8 sps:$4 sm:$0xff]  }
  0x87   : > { %2101 = vmatpush2.bf16.msra.mxu1 %v3001_v9  ;;  %2059 = vmatprep.subr.bf16.mxu0 %v3006_v10  ;;  %v3085_v9 = vld [vmem:[%s4165_s1 + $0x5b0] ss:$8 sps:$4 sm:$0xff]   ;;  %v3090_v10 = vld [vmem:[%s4165_s1 + $0x4a4] ss:$8 sps:$4 sm:$0xff]  }
  0x88   : > { %2102 = vmatprep.subr.bf16.mxu1 %v3009_v11  ;;  %v3093_v11 = vld [vmem:[%s4165_s1 + $0x5a4] ss:$8 sps:$4 sm:$0xff]  }
  0x8a   : > { %2060 = vmatpush2.bf16.msra.mxu0 %v3004_v12  ;;  %v3088_v12 = vld [vmem:[%s4165_s1 + $0x4a0] ss:$8 sps:$4 sm:$0xff]  }
  0x8b   : > { %2103 = vmatpush2.bf16.msra.mxu1 %v3007_v13  ;;  %2115 = vmatprep.subr.bf16.mxu0 %v3012_v14  ;;  %v3091_v13 = vld [vmem:[%s4165_s1 + $0x5a0] ss:$8 sps:$4 sm:$0xff]   ;;  %v3096_v14 = vld [vmem:[%s4165_s1 + $0x494] ss:$8 sps:$4 sm:$0xff]  }
  0x8c   : > { %2158 = vmatprep.subr.bf16.mxu1 %v3015_v15  ;;  %v3099_v15 = vld [vmem:[%s4165_s1 + $0x594] ss:$8 sps:$4 sm:$0xff]  }
  0x8d   : > { %2062 = vmatmul.mubr.bf16.vlgmr.msra.gmra.mxu0 %v2522_v16  ;;  %v3094_v16 = vld [vmem:[%s4165_s1 + $0x490] ss:$8 sps:$4 sm:$0xff]  }
  0x8e   : > { %2105 = vmatmul.mubr.bf16.vlgmr.msra.gmra.mxu1 %v2524_v17  ;;  %2116 = vmatpush1.bf16.msra.mxu0 %v3010_v18  ;;  %v3097_v17 = vld [vmem:[%s4165_s1 + $0x590] ss:$8 sps:$4 sm:$0xff]   ;;  %v3102_v18 = vld [vmem:[%s4165_s1 + $0x484] ss:$8 sps:$4 sm:$0xff]  }
  0x8f   : > { %2159 = vmatpush1.bf16.msra.mxu1 %v3013_v19  ;;  %2117 = vmatprep.subr.bf16.mxu0 %v3018_v20  ;;  %v3105_v19 = vld [vmem:[%s4165_s1 + $0x584] ss:$8 sps:$4 sm:$0xff]   ;;  %v3100_v20 = vld [vmem:[%s4165_s1 + $0x480] ss:$8 sps:$4 sm:$0xff]  }
  0x90   : > { %2160 = vmatprep.subr.bf16.mxu1 %v3021_v21  ;;  %2147 = vmatprep.mubr.bf16.mxu0 %v2527_v29  ;;  %v3103_v21 = vld [vmem:[%s4165_s1 + $0x580] ss:$8 sps:$4 sm:$0xff]   ;;  %v2526_v29 = vcombine.low %v3712_v24, %v3715_v25  ;;  %v3114_v24 = vld [vmem:[%s4165_s1 + $0x664] ss:$8 sps:$4 sm:$0xff]  }
  0x91   : > { %2190 = vmatprep.mubr.bf16.mxu1 %v2529_v31  ;;  %v3909_v31 = vld [vmem:[%s3409_s12 + $0x70] sm:$0xff]  ;;  %v3117_v25 = vld [vmem:[%s4165_s1 + $0x764] ss:$8 sps:$4 sm:$0xff]  }
  0x92   : > { %2118 = vmatpush1.bf16.msra.mxu0 %v3016_v22  ;;  %v3108_v22 = vld [vmem:[%s4165_s1 + $0x674] ss:$8 sps:$4 sm:$0xff]  }
  0x93   : > { %2161 = vmatpush1.bf16.msra.mxu1 %v3019_v23  ;;  %2119 = vmatprep.subr.bf16.mxu0 %v3024_v28  ;;  %v3111_v23 = vld [vmem:[%s4165_s1 + $0x774] ss:$8 sps:$4 sm:$0xff]  }
  0x94   : > { %2162 = vmatprep.subr.bf16.mxu1 %v3027_v30  ;;  %v3902_v28 = vld [vmem:[%s3409_s12 + $0x30] sm:$0xff]  ;;  %v2528_v30 = vcombine.low %v3718_v26, %v3721_v27 }
  0x95   : > { %v2531_v26 = vcombine.high %v3902_v28, %v3909_v31 }
  0x96   : > { %2120 = vmatpush1.bf16.msra.mxu0 %v3022_v32  ;;  %v3912_v32 = vld [vmem:[%s3409_s12 + $0x38] sm:$0xff] }
  0x97   : > { %2163 = vmatpush1.bf16.msra.mxu1 %v3025_v33  ;;  %2121 = vmatprep.subr.bf16.mxu0 %v3030_v34  ;;  %v3915_v33 = vld [vmem:[%s3409_s12 + $0x78] sm:$0xff] }
  0x98   : > { %2164 = vmatprep.subr.bf16.mxu1 %v3033_v35  ;;  %v3106_v34 = vld [vmem:[%s4165_s1 + $0x670] ss:$8 sps:$4 sm:$0xff]   ;;  %v2533_v27 = vcombine.high %v3912_v32, %v3915_v33 }
  0x99   : > { %v3109_v35 = vld [vmem:[%s4165_s1 + $0x770] ss:$8 sps:$4 sm:$0xff]  }
  0x9a   : > { %2122 = vmatpush1.bf16.msra.mxu0 %v3028_v36  ;;  %v3112_v36 = vld [vmem:[%s4165_s1 + $0x660] ss:$8 sps:$4 sm:$0xff]  }
  0x9b   : > { %2165 = vmatpush1.bf16.msra.mxu1 %v3031_v37  ;;  %2123 = vmatprep.subr.bf16.mxu0 %v3036_v38  ;;  %v3115_v37 = vld [vmem:[%s4165_s1 + $0x760] ss:$8 sps:$4 sm:$0xff]   ;;  %v3120_v38 = vld [vmem:[%s4165_s1 + $0x654] ss:$8 sps:$4 sm:$0xff]  }
  0x9c   : > { %2166 = vmatprep.subr.bf16.mxu1 %v3039_v39  ;;  %v3123_v39 = vld [vmem:[%s4165_s1 + $0x754] ss:$8 sps:$4 sm:$0xff]  }
  0x9e   : > { %2124 = vmatpush1.bf16.msra.mxu0 %v3034_v40  ;;  %v3118_v40 = vld [vmem:[%s4165_s1 + $0x650] ss:$8 sps:$4 sm:$0xff]  }
  0x9f   : > { %2167 = vmatpush1.bf16.msra.mxu1 %v3037_v41  ;;  %2125 = vmatprep.subr.bf16.mxu0 %v3042_v42  ;;  %v3121_v41 = vld [vmem:[%s4165_s1 + $0x750] ss:$8 sps:$4 sm:$0xff]   ;;  %v3126_v42 = vld [vmem:[%s4165_s1 + $0x644] ss:$8 sps:$4 sm:$0xff]  }
  0xa0   : > { %2168 = vmatprep.subr.bf16.mxu1 %v3045_v43  ;;  %v3129_v43 = vld [vmem:[%s4165_s1 + $0x744] ss:$8 sps:$4 sm:$0xff]  }
  0xa2   : > { %2126 = vmatpush1.bf16.msra.mxu0 %v3040_v44  ;;  %v3124_v44 = vld [vmem:[%s4165_s1 + $0x640] ss:$8 sps:$4 sm:$0xff]  }
  0xa3   : > { %2169 = vmatpush1.bf16.msra.mxu1 %v3043_v45  ;;  %2127 = vmatprep.subr.bf16.mxu0 %v3048_v46  ;;  %v3127_v45 = vld [vmem:[%s4165_s1 + $0x740] ss:$8 sps:$4 sm:$0xff]   ;;  %v3132_v46 = vld [vmem:[%s4165_s1 + $0x634] ss:$8 sps:$4 sm:$0xff]  }
  0xa4   : > { %2170 = vmatprep.subr.bf16.mxu1 %v3051_v47  ;;  %v3135_v47 = vld [vmem:[%s4165_s1 + $0x734] ss:$8 sps:$4 sm:$0xff]  }
  0xa6   : > { %2128 = vmatpush1.bf16.msra.mxu0 %v3046_v48  ;;  %v3130_v48 = vld [vmem:[%s4165_s1 + $0x630] ss:$8 sps:$4 sm:$0xff]  }
  0xa7   : > { %2171 = vmatpush1.bf16.msra.mxu1 %v3049_v49  ;;  %2129 = vmatprep.subr.bf16.mxu0 %v3054_v50  ;;  %v3133_v49 = vld [vmem:[%s4165_s1 + $0x730] ss:$8 sps:$4 sm:$0xff]   ;;  %v3138_v50 = vld [vmem:[%s4165_s1 + $0x624] ss:$8 sps:$4 sm:$0xff]  }
  0xa8   : > { %2172 = vmatprep.subr.bf16.mxu1 %v3057_v51  ;;  %v3141_v51 = vld [vmem:[%s4165_s1 + $0x724] ss:$8 sps:$4 sm:$0xff]  }
  0xaa   : > { %2130 = vmatpush1.bf16.msra.mxu0 %v3052_v52  ;;  %v3136_v52 = vld [vmem:[%s4165_s1 + $0x620] ss:$8 sps:$4 sm:$0xff]  }
  0xab   : > { %2173 = vmatpush1.bf16.msra.mxu1 %v3055_v53  ;;  %2131 = vmatprep.subr.bf16.mxu0 %v3060_v54  ;;  %v3139_v53 = vld [vmem:[%s4165_s1 + $0x720] ss:$8 sps:$4 sm:$0xff]   ;;  %v3144_v54 = vld [vmem:[%s4165_s1 + $0x614] ss:$8 sps:$4 sm:$0xff]  }
  0xac   : > { %2174 = vmatprep.subr.bf16.mxu1 %v3063_v55  ;;  %v3147_v55 = vld [vmem:[%s4165_s1 + $0x714] ss:$8 sps:$4 sm:$0xff]  }
  0xae   : > { %2132 = vmatpush2.bf16.msra.mxu0 %v3058_v56  ;;  %v3142_v56 = vld [vmem:[%s4165_s1 + $0x610] ss:$8 sps:$4 sm:$0xff]  }
  0xaf   : > { %2175 = vmatpush2.bf16.msra.mxu1 %v3061_v57  ;;  %2133 = vmatprep.subr.bf16.mxu0 %v3066_v58  ;;  %v3145_v57 = vld [vmem:[%s4165_s1 + $0x710] ss:$8 sps:$4 sm:$0xff]   ;;  %v3150_v58 = vld [vmem:[%s4165_s1 + $0x604] ss:$8 sps:$4 sm:$0xff]  }
  0xb0   : > { %2176 = vmatprep.subr.bf16.mxu1 %v3069_v59  ;;  %v3153_v59 = vld [vmem:[%s4165_s1 + $0x704] ss:$8 sps:$4 sm:$0xff]  }
  0xb2   : > { %2134 = vmatpush2.bf16.msra.mxu0 %v3064_v60  ;;  %v3148_v60 = vld [vmem:[%s4165_s1 + $0x600] ss:$8 sps:$4 sm:$0xff]  }
  0xb3   : > { %2177 = vmatpush2.bf16.msra.mxu1 %v3067_v61  ;;  %2135 = vmatprep.subr.bf16.mxu0 %v3072_v62  ;;  %v3151_v61 = vld [vmem:[%s4165_s1 + $0x700] ss:$8 sps:$4 sm:$0xff]   ;;  %v3156_v62 = vld [vmem:[%s4165_s1 + $0x6f4] ss:$8 sps:$4 sm:$0xff]  }
  0xb4   : > { %2178 = vmatprep.subr.bf16.mxu1 %v3075_v63  ;;  %v3159_v63 = vld [vmem:[%s4165_s1 + $0x7f4] ss:$8 sps:$4 sm:$0xff]  }
  0xb6   : > { %2136 = vmatpush2.bf16.msra.mxu0 %v3070_v0  ;;  %v3154_v0 = vld [vmem:[%s4165_s1 + $0x6f0] ss:$8 sps:$4 sm:$0xff]  }
  0xb7   : > { %2179 = vmatpush2.bf16.msra.mxu1 %v3073_v1  ;;  %2137 = vmatprep.subr.bf16.mxu0 %v3078_v2  ;;  %v3157_v1 = vld [vmem:[%s4165_s1 + $0x7f0] ss:$8 sps:$4 sm:$0xff]   ;;  %v3162_v2 = vld [vmem:[%s4165_s1 + $0x6e4] ss:$8 sps:$4 sm:$0xff]  }
  0xb8   : > { %2180 = vmatprep.subr.bf16.mxu1 %v3081_v3  ;;  %v3165_v3 = vld [vmem:[%s4165_s1 + $0x7e4] ss:$8 sps:$4 sm:$0xff]  }
  0xba   : > { %2138 = vmatpush2.bf16.msra.mxu0 %v3076_v4  ;;  %v3160_v4 = vld [vmem:[%s4165_s1 + $0x6e0] ss:$8 sps:$4 sm:$0xff]  }
  0xbb   : > { %2181 = vmatpush2.bf16.msra.mxu1 %v3079_v5  ;;  %2139 = vmatprep.subr.bf16.mxu0 %v3084_v6  ;;  %v3163_v5 = vld [vmem:[%s4165_s1 + $0x7e0] ss:$8 sps:$4 sm:$0xff]   ;;  %v3168_v6 = vld [vmem:[%s4165_s1 + $0x6d4] ss:$8 sps:$4 sm:$0xff]  }
  0xbc   : > { %2182 = vmatprep.subr.bf16.mxu1 %v3087_v7  ;;  %v3171_v7 = vld [vmem:[%s4165_s1 + $0x7d4] ss:$8 sps:$4 sm:$0xff]  }
  0xbe   : > { %2140 = vmatpush2.bf16.msra.mxu0 %v3082_v8  ;;  %v3166_v8 = vld [vmem:[%s4165_s1 + $0x6d0] ss:$8 sps:$4 sm:$0xff]  }
  0xbf   : > { %2183 = vmatpush2.bf16.msra.mxu1 %v3085_v9  ;;  %2141 = vmatprep.subr.bf16.mxu0 %v3090_v10  ;;  %v3169_v9 = vld [vmem:[%s4165_s1 + $0x7d0] ss:$8 sps:$4 sm:$0xff]   ;;  %v3174_v10 = vld [vmem:[%s4165_s1 + $0x6c4] ss:$8 sps:$4 sm:$0xff]  }
  0xc0   : > { %2184 = vmatprep.subr.bf16.mxu1 %v3093_v11  ;;  %v3177_v11 = vld [vmem:[%s4165_s1 + $0x7c4] ss:$8 sps:$4 sm:$0xff]  }
  0xc2   : > { %2142 = vmatpush2.bf16.msra.mxu0 %v3088_v12  ;;  %v3172_v12 = vld [vmem:[%s4165_s1 + $0x6c0] ss:$8 sps:$4 sm:$0xff]  }
  0xc3   : > { %2185 = vmatpush2.bf16.msra.mxu1 %v3091_v13  ;;  %2143 = vmatprep.subr.bf16.mxu0 %v3096_v14  ;;  %v3175_v13 = vld [vmem:[%s4165_s1 + $0x7c0] ss:$8 sps:$4 sm:$0xff]   ;;  %v3180_v14 = vld [vmem:[%s4165_s1 + $0x6b4] ss:$8 sps:$4 sm:$0xff]  }
  0xc4   : > { %2186 = vmatprep.subr.bf16.mxu1 %v3099_v15  ;;  %v3183_v15 = vld [vmem:[%s4165_s1 + $0x7b4] ss:$8 sps:$4 sm:$0xff]  }
  0xc6   : > { %2144 = vmatpush2.bf16.msra.mxu0 %v3094_v16  ;;  %v3178_v16 = vld [vmem:[%s4165_s1 + $0x6b0] ss:$8 sps:$4 sm:$0xff]  }
  0xc7   : > { %2187 = vmatpush2.bf16.msra.mxu1 %v3097_v17  ;;  %2145 = vmatprep.subr.bf16.mxu0 %v3102_v18  ;;  %v3181_v17 = vld [vmem:[%s4165_s1 + $0x7b0] ss:$8 sps:$4 sm:$0xff]   ;;  %v3186_v18 = vld [vmem:[%s4165_s1 + $0x6a4] ss:$8 sps:$4 sm:$0xff]  }
  0xc8   : > { %2188 = vmatprep.subr.bf16.mxu1 %v3105_v19  ;;  %v3189_v19 = vld [vmem:[%s4165_s1 + $0x7a4] ss:$8 sps:$4 sm:$0xff]  }
  0xca   : > { %2146 = vmatpush2.bf16.msra.mxu0 %v3100_v20  ;;  %v3184_v20 = vld [vmem:[%s4165_s1 + $0x6a0] ss:$8 sps:$4 sm:$0xff]  }
  0xcb   : > { %2189 = vmatpush2.bf16.msra.mxu1 %v3103_v21  ;;  %2201 = vmatprep.subr.bf16.mxu0 %v3108_v22  ;;  %v3187_v21 = vld [vmem:[%s4165_s1 + $0x7a0] ss:$8 sps:$4 sm:$0xff]   ;;  %v3192_v22 = vld [vmem:[%s4165_s1 + $0x694] ss:$8 sps:$4 sm:$0xff]  }
  0xcc   : > { %2244 = vmatprep.subr.bf16.mxu1 %v3111_v23  ;;  %v3195_v23 = vld [vmem:[%s4165_s1 + $0x794] ss:$8 sps:$4 sm:$0xff]  }
  0xcd   : > { %2148 = vmatmul.mubr.bf16.vlgmr.msra.gmra.mxu0 %v2526_v29  ;;  %v3190_v29 = vld [vmem:[%s4165_s1 + $0x690] ss:$8 sps:$4 sm:$0xff]  }
  0xce   : > { %2191 = vmatmul.mubr.bf16.vlgmr.msra.gmra.mxu1 %v2528_v30  ;;  %2202 = vmatpush1.bf16.msra.mxu0 %v3106_v34  ;;  %v3193_v30 = vld [vmem:[%s4165_s1 + $0x790] ss:$8 sps:$4 sm:$0xff]   ;;  %v3198_v34 = vld [vmem:[%s4165_s1 + $0x684] ss:$8 sps:$4 sm:$0xff]  }
  0xcf   : > { %2245 = vmatpush1.bf16.msra.mxu1 %v3109_v35  ;;  %2203 = vmatprep.subr.bf16.mxu0 %v3114_v24  ;;  %v3201_v35 = vld [vmem:[%s4165_s1 + $0x784] ss:$8 sps:$4 sm:$0xff]   ;;  %v3196_v24 = vld [vmem:[%s4165_s1 + $0x680] ss:$8 sps:$4 sm:$0xff]  }
  0xd0   : > { %2246 = vmatprep.subr.bf16.mxu1 %v3117_v25  ;;  %2233 = vmatprep.mubr.bf16.mxu0 %v2531_v26  ;;  %v3199_v25 = vld [vmem:[%s4165_s1 + $0x780] ss:$8 sps:$4 sm:$0xff]   ;;  %v2530_v26 = vcombine.low %v3902_v28, %v3909_v31 }
  0xd1   : > { %2276 = vmatprep.mubr.bf16.mxu1 %v2533_v27  ;;  %v2532_v27 = vcombine.low %v3912_v32, %v3915_v33  ;;  %v289_v28 = vld [vmem:[%s4166_s2] sm:$0x3] }
  0xd2   : > { %2204 = vmatpush1.bf16.msra.mxu0 %v3112_v36  ;;  %v291_v36 = vlaneseq }
  0xd3   : > { %2247 = vmatpush1.bf16.msra.mxu1 %v3115_v37  ;;  %2205 = vmatprep.subr.bf16.mxu0 %v3120_v38 }
  0xd4   : > { %2248 = vmatprep.subr.bf16.mxu1 %v3123_v39  ;;  %v4112_v37 = vshrl.u32 %v291_v36, 7 }
  0xd6   : > { %2206 = vmatpush1.bf16.msra.mxu0 %v3118_v40  ;;  %v293_v38 = vsub.s32 0, %v4112_v37  ;;  %v297_v32 = vsub.s32 1, %v4112_v37 }
  0xd7   : > { %2249 = vmatpush1.bf16.msra.mxu1 %v3121_v41  ;;  %2207 = vmatprep.subr.bf16.mxu0 %v3126_v42 }
  0xd8   : > { %2250 = vmatprep.subr.bf16.mxu1 %v3129_v43  ;;  %v4123_v31 = vrot.slane %v289_v28, %v293_v38  ;;  %v4128_v33 = vrot.slane %v289_v28, %v297_v32 }
  0xda   : > { %2208 = vmatpush1.bf16.msra.mxu0 %v3124_v44  ;;  %303 = vst [vmem:[%s4118_s19] sm:$0xff] %v4123_v31  ;;  %305 = vst [vmem:[%s4118_s19 + $0x10] sm:$0xff] %v4123_v31 }
  0xdb   : > { %2251 = vmatpush1.bf16.msra.mxu1 %v3127_v45  ;;  %2209 = vmatprep.subr.bf16.mxu0 %v3132_v46  ;;  %304 = vst [vmem:[%s4118_s19 + $0x8] sm:$0xff] %v4128_v33  ;;  %306 = vst [vmem:[%s4118_s19 + $0x18] sm:$0xff] %v4128_v33 }
  0xdc   : > { %2252 = vmatprep.subr.bf16.mxu1 %v3135_v47 }
  0xde   : > { %2210 = vmatpush1.bf16.msra.mxu0 %v3130_v48 }
  0xdf   : > { %2253 = vmatpush1.bf16.msra.mxu1 %v3133_v49  ;;  %2211 = vmatprep.subr.bf16.mxu0 %v3138_v50 }
  0xe0   : > { %2254 = vmatprep.subr.bf16.mxu1 %v3141_v51 }
  0xe2   : > { %2212 = vmatpush1.bf16.msra.mxu0 %v3136_v52 }
  0xe3   : > { %2255 = vmatpush1.bf16.msra.mxu1 %v3139_v53  ;;  %2213 = vmatprep.subr.bf16.mxu0 %v3144_v54 }
  0xe4   : > { %2256 = vmatprep.subr.bf16.mxu1 %v3147_v55 }
  0xe6   : > { %2214 = vmatpush1.bf16.msra.mxu0 %v3142_v56 }
  0xe7   : > { %2257 = vmatpush1.bf16.msra.mxu1 %v3145_v57  ;;  %2215 = vmatprep.subr.bf16.mxu0 %v3150_v58 }
  0xe8   : > { %2258 = vmatprep.subr.bf16.mxu1 %v3153_v59 }
  0xea   : > { %2216 = vmatpush1.bf16.msra.mxu0 %v3148_v60 }
  0xeb   : > { %2259 = vmatpush1.bf16.msra.mxu1 %v3151_v61  ;;  %2217 = vmatprep.subr.bf16.mxu0 %v3156_v62 }
  0xec   : > { %2260 = vmatprep.subr.bf16.mxu1 %v3159_v63 }
  0xee   : > { %2218 = vmatpush2.bf16.msra.mxu0 %v3154_v0 }
  0xef   : > { %2261 = vmatpush2.bf16.msra.mxu1 %v3157_v1  ;;  %2219 = vmatprep.subr.bf16.mxu0 %v3162_v2 }
  0xf0   : > { %2262 = vmatprep.subr.bf16.mxu1 %v3165_v3 }
  0xf2   : > { %2220 = vmatpush2.bf16.msra.mxu0 %v3160_v4 }
  0xf3   : > { %2263 = vmatpush2.bf16.msra.mxu1 %v3163_v5  ;;  %2221 = vmatprep.subr.bf16.mxu0 %v3168_v6 }
  0xf4   : > { %2264 = vmatprep.subr.bf16.mxu1 %v3171_v7 }
  0xf6   : > { %2222 = vmatpush2.bf16.msra.mxu0 %v3166_v8 }
  0xf7   : > { %2265 = vmatpush2.bf16.msra.mxu1 %v3169_v9  ;;  %2223 = vmatprep.subr.bf16.mxu0 %v3174_v10 }
  0xf8   : > { %2266 = vmatprep.subr.bf16.mxu1 %v3177_v11 }
  0xfa   : > { %2224 = vmatpush2.bf16.msra.mxu0 %v3172_v12 }
  0xfb   : > { %2267 = vmatpush2.bf16.msra.mxu1 %v3175_v13  ;;  %2225 = vmatprep.subr.bf16.mxu0 %v3180_v14 }
  0xfc   : > { %2268 = vmatprep.subr.bf16.mxu1 %v3183_v15 }
  0xfe   : > { %2226 = vmatpush2.bf16.msra.mxu0 %v3178_v16 }
  0xff   : > { %2269 = vmatpush2.bf16.msra.mxu1 %v3181_v17  ;;  %2227 = vmatprep.subr.bf16.mxu0 %v3186_v18 }
 0x100   : > { %2270 = vmatprep.subr.bf16.mxu1 %v3189_v19 }
 0x102   : > { %2228 = vmatpush2.bf16.msra.mxu0 %v3184_v20  ;;  %v307_v20 = vld [vmem:[%s4118_s19] sm:$0xff] }
 0x103   : > { %2271 = vmatpush2.bf16.msra.mxu1 %v3187_v21  ;;  %2229 = vmatprep.subr.bf16.mxu0 %v3192_v22 }
 0x104   : > { %2272 = vmatprep.subr.bf16.mxu1 %v3195_v23 }
 0x106   : > { %2230 = vmatpush2.bf16.msra.mxu0 %v3190_v29 }
 0x107   : > { %2273 = vmatpush2.bf16.msra.mxu1 %v3193_v30  ;;  %2231 = vmatprep.subr.bf16.mxu0 %v3198_v34  ;;  %v308_v34 = vld [vmem:[%s4118_s19 + $0x8] sm:$0xff] }
 0x108   : > { %2274 = vmatprep.subr.bf16.mxu1 %v3201_v35 }
 0x10a   : > { %2232 = vmatpush2.bf16.msra.mxu0 %v3196_v24 }
 0x10b   : > { %2275 = vmatpush2.bf16.msra.mxu1 %v3199_v25 }
 0x10d   : > { %2234 = vmatmul.mubr.bf16.vlgmr.msra.gmra.mxu0 %v2530_v26  ;;  %v1977_v39 = vpop.f32.mrf.mxu0 }
 0x10e   : > { %2277 = vmatmul.mubr.bf16.vlgmr.msra.gmra.mxu1 %v2532_v27  ;;  %v2020_v40 = vpop.f32.mrf.mxu1 }
 0x10f   : > { %v1979_v41 = vpop.f32.mrf.mxu0  ;;  %v2021_v57 = vadd.f32 %v2020_v40, %v1977_v39 }
 0x110   : > { %v2022_v42 = vpop.f32.mrf.mxu1 }
 0x111   : > { %v1981_v43 = vpop.f32.mrf.mxu0  ;;  %v2023_v58 = vadd.f32 %v2022_v42, %v1979_v41 }
 0x112   : > { %v2024_v44 = vpop.f32.mrf.mxu1 }
 0x113   : > { %v1983_v45 = vpop.f32.mrf.mxu0  ;;  %v2025_v62 = vadd.f32 %v2024_v44, %v1981_v43  ;;  %v2304_v43 = vadd.s32 8, %v4112_v37 }
 0x114   : > { %v2026_v46 = vpop.f32.mrf.mxu1 }
 0x115   : > { %v2027_v0 = vadd.f32 %v2026_v46, %v1983_v45  ;;  %vm2306_vm0 = vcmp.lt.s32.totalorder %v2304_v43, 9 }
 0x14d   : > { %v2063_v47 = vpop.f32.mrf.mxu0 }
 0x14e   : > { %v2106_v48 = vpop.f32.mrf.mxu1  ;;  %v2064_v59 = vadd.f32 %v2063_v47, %v2021_v57 }
 0x14f   : > { %v2065_v49 = vpop.f32.mrf.mxu0 }
 0x150   : > { %v2108_v50 = vpop.f32.mrf.mxu1  ;;  %v2066_v63 = vadd.f32 %v2065_v49, %v2023_v58  ;;  %v2107_v1 = vadd.f32 %v2106_v48, %v2064_v59 }
 0x151   : > { %v2067_v51 = vpop.f32.mrf.mxu0 }
 0x152   : > { %v2110_v52 = vpop.f32.mrf.mxu1  ;;  %v2068_v2 = vadd.f32 %v2067_v51, %v2025_v62  ;;  %v2109_v5 = vadd.f32 %v2108_v50, %v2066_v63 }
 0x153   : > { %v2069_v53 = vpop.f32.mrf.mxu0 }
 0x154   : > { %v2112_v54 = vpop.f32.mrf.mxu1  ;;  %v2070_v6 = vadd.f32 %v2069_v53, %v2027_v0  ;;  %v2111_v8 = vadd.f32 %v2110_v52, %v2068_v2 }
 0x156   : > { %v2113_v12 = vadd.f32 %v2112_v54, %v2070_v6 }
 0x18d   : > { %v2149_v55 = vpop.f32.mrf.mxu0 }
 0x18e   : > { %v2192_v56 = vpop.f32.mrf.mxu1  ;;  %v2150_v7 = vadd.f32 %v2149_v55, %v2107_v1 }
 0x18f   : > { %v2151_v60 = vpop.f32.mrf.mxu0 }
 0x190   : > { %v2194_v61 = vpop.f32.mrf.mxu1  ;;  %v2152_v9 = vadd.f32 %v2151_v60, %v2109_v5  ;;  %v2193_v13 = vadd.f32 %v2192_v56, %v2150_v7 }
 0x191   : > { %v2153_v3 = vpop.f32.mrf.mxu0 }
 0x192   : > { %v2196_v4 = vpop.f32.mrf.mxu1  ;;  %v2154_v14 = vadd.f32 %v2153_v3, %v2111_v8  ;;  %v2195_v17 = vadd.f32 %v2194_v61, %v2152_v9 }
 0x193   : > { %v2155_v10 = vpop.f32.mrf.mxu0 }
 0x194   : > { %v2198_v11 = vpop.f32.mrf.mxu1  ;;  %v2156_v18 = vadd.f32 %v2155_v10, %v2113_v12  ;;  %v2197_v23 = vadd.f32 %v2196_v4, %v2154_v14 }
 0x196   : > { %v2199_v25 = vadd.f32 %v2198_v11, %v2156_v18 }
 0x1cd   : > { %v2235_v15 = vpop.f32.mrf.mxu0 }
 0x1ce   : > { %v2278_v16 = vpop.f32.mrf.mxu1  ;;  %v2236_v19 = vadd.f32 %v2235_v15, %v2193_v13 }
 0x1cf   : > { %v2237_v21 = vpop.f32.mrf.mxu0 }
 0x1d0   : > { %v2280_v22 = vpop.f32.mrf.mxu1  ;;  %v2279_v29 = vadd.f32 %v2278_v16, %v2236_v19  ;;  %v2238_v30 = vadd.f32 %v2237_v21, %v2195_v17 }
 0x1d1   : > { %v2239_v35 = vpop.f32.mrf.mxu0 }
 0x1d2   : > { %v2282_v24 = vpop.f32.mrf.mxu1  ;;  %v2287_v26 = vadd.f32 %v2279_v29, %v307_v20  ;;  %v2281_v27 = vadd.f32 %v2280_v22, %v2238_v30  ;;  %v2240_v36 = vadd.f32 %v2239_v35, %v2197_v23 }
 0x1d3   : > { %v2241_v38 = vpop.f32.mrf.mxu0 }
 0x1d4   : > { %v2288_v28 = vadd.f32 %v2281_v27, %v308_v34  ;;  %v2283_v32 = vadd.f32 %v2282_v24, %v2240_v36  ;;  %2291 = vst [vmem:[%s4118_s19] sm:$0xff] %v2287_v26  ;;  %v2242_v39 = vadd.f32 %v2241_v38, %v2199_v25  ;;  %v2284_v40 = vpop.f32.mrf.mxu1 }
 0x1d6   : > { %v2289_v41 = vadd.f32 %v2283_v32, %v4123_v31  ;;  %v2285_v42 = vadd.f32 %v2284_v40, %v2242_v39  ;;  %2292 = vst [vmem:[%s4118_s19 + $0x8] sm:$0xff] %v2288_v28 }
 0x1d8   : > { %2293 = vst [vmem:[%s4118_s19 + $0x10] sm:$0xff] %v2289_v41  ;;  %v2290_v44 = vadd.f32 %v2285_v42, %v4128_v33  ;;  %v2309_v46 = vsel %vm2306_vm0, %v2289_v41, 0.0 }
 0x1da   : > { %2294 = vst [vmem:[%s4118_s19 + $0x18] sm:$0xff] %v2290_v44  ;;  %v2310_v49 = vsel %vm2306_vm0, %v2290_v44, 0.0 }
 0x1db   : > { %v2298_v45 = vld [vmem:[%s4118_s19] sm:$0xff] }
 0x1dc   : > { %v2311_v47 = vadd.f32 %v2309_v46, %v2298_v45 }
 0x1dd   : > { %v2299_v48 = vld [vmem:[%s4118_s19 + $0x8] sm:$0xff] }
 0x1de   : > { %v2312_v50 = vrot.slane %v2311_v47, 4  ;;  %v2318_v51 = vadd.f32 %v2310_v49, %v2299_v48 }
 0x1e0   : > { %v2313_v52 = vadd.f32 %v2312_v50, %v2311_v47  ;;  %v2319_v31 = vrot.slane %v2318_v51, 4 }
 0x1e2   : > { %v2314_v53 = vrot.slane %v2313_v52, 2  ;;  %v2320_v54 = vadd.f32 %v2319_v31, %v2318_v51 }
 0x1e4   : > { %v2315_v55 = vadd.f32 %v2314_v53, %v2313_v52  ;;  %v2321_v56 = vrot.slane %v2320_v54, 2 }
 0x1e6   : > { %v2316_v37 = vrot.slane %v2315_v55, 1  ;;  %v2322_v57 = vadd.f32 %v2321_v56, %v2320_v54 }
 0x1e8   : > { %v2317_v33 = vadd.f32 %v2316_v37, %v2315_v55  ;;  %v2323_v58 = vrot.slane %v2322_v57, 1 }
 0x1ea   : > { %v2325_v59 = vmul.f32 0.11111111, %v2317_v33  ;;  %v2324_v60 = vadd.f32 %v2323_v58, %v2322_v57 }
 0x1ec   : > { %v2327_v61 = vsub.f32 %v2298_v45, %v2325_v59  ;;  %v2329_v62 = vsub.f32 %v2289_v41, %v2325_v59  ;;  %v2326_v63 = vmul.f32 0.11111111, %v2324_v60 }
 0x1ee   : > { %v2333_v0 = vsel %vm2306_vm0, %v2329_v62, 0.0  ;;  %v2335_v1 = vmul.f32 %v2327_v61, %v2327_v61  ;;  %v2328_v2 = vsub.f32 %v2299_v48, %v2326_v63  ;;  %v2330_v3 = vsub.f32 %v2290_v44, %v2326_v63 }
 0x1ef   : > { %v2337_v4 = vmul.f32 %v2333_v0, %v2333_v0 }
 0x1f0   : > { %v2334_v5 = vsel %vm2306_vm0, %v2330_v3, 0.0  ;;  %v2336_v6 = vmul.f32 %v2328_v2, %v2328_v2 }
 0x1f1   : > { %v2339_v7 = vadd.f32 %v2337_v4, %v2335_v1  ;;  %v2338_v8 = vmul.f32 %v2334_v5, %v2334_v5 }
 0x1f3   : > { %v2340_v9 = vrot.slane %v2339_v7, 4  ;;  %v2346_v10 = vadd.f32 %v2338_v8, %v2336_v6 }
 0x1f5   : > { %v2341_v11 = vadd.f32 %v2340_v9, %v2339_v7  ;;  %v2347_v12 = vrot.slane %v2346_v10, 4 }
 0x1f7   : > { %v2342_v13 = vrot.slane %v2341_v11, 2  ;;  %v2348_v14 = vadd.f32 %v2347_v12, %v2346_v10 }
 0x1f9   : > { %v2343_v15 = vadd.f32 %v2342_v13, %v2341_v11  ;;  %v2349_v16 = vrot.slane %v2348_v14, 2 }
 0x1fb   : > { %v2344_v17 = vrot.slane %v2343_v15, 1  ;;  %v2350_v18 = vadd.f32 %v2349_v16, %v2348_v14 }
 0x1fd   : > { %v2345_v19 = vadd.f32 %v2344_v17, %v2343_v15  ;;  %v2351_v20 = vrot.slane %v2350_v18, 1 }
 0x1ff   : > { %v2353_v21 = vmul.f32 0.11111111, %v2345_v19  ;;  %v2352_v22 = vadd.f32 %v2351_v20, %v2350_v18 }
 0x201   : > { %v2355_v23 = vadd.f32 1e-05, %v2353_v21  ;;  %v2354_v29 = vmul.f32 0.11111111, %v2352_v22 }
 0x203   : > { %3202 = vrsqrt.f32 %v2355_v23  ;;  %v2356_v30 = vadd.f32 1e-05, %v2354_v29 }
 0x205   : > { %3204 = vrsqrt.f32 %v2356_v30 }
 0x210   : > { %v3203_v34 = vpop.eup %3202 }
 0x211   : > { %v2359_v35 = vmul.f32 %v3203_v34, %v2327_v61  ;;  %v2361_v24 = vmul.f32 %v3203_v34, %v2329_v62 }
 0x212   : > { %v3205_v25 = vpop.eup %3204 }
 0x213   : > { %vm2363_vm1 = vcmp.ge.f32.partialorder %v2359_v35, 0.0  ;;  %vm2365_vm2 = vcmp.ge.f32.partialorder %v2361_v24, 0.0  ;;  %v2367_v26 = vmul.f32 0.2, %v2359_v35  ;;  %v2369_v27 = vmul.f32 0.2, %v2361_v24 }
 0x214   : > { %v2360_v36 = vmul.f32 %v3205_v25, %v2328_v2  ;;  %v2362_v38 = vmul.f32 %v3205_v25, %v2330_v3 }
 0x215   : > { %v2371_v28 = vsel %vm2363_vm1, %v2359_v35, %v2367_v26  ;;  %v2373_v32 = vsel %vm2365_vm2, %v2361_v24, %v2369_v27 }
 0x216   : > { %2375 = vst [vmem:[%s4118_s19] sm:$0xff] %v2371_v28  ;;  %vm2364_vm3 = vcmp.ge.f32.partialorder %v2360_v36, 0.0  ;;  %vm2366_vm4 = vcmp.ge.f32.partialorder %v2362_v38, 0.0  ;;  %v2368_v39 = vmul.f32 0.2, %v2360_v36  ;;  %v2370_v40 = vmul.f32 0.2, %v2362_v38 }
 0x217   : > { %2377 = vst [vmem:[%s4118_s19 + $0x10] sm:$0xff] %v2373_v32 }
 0x218   : > { %v2372_v41 = vsel %vm2364_vm3, %v2360_v36, %v2368_v39  ;;  %v2374_v42 = vsel %vm2366_vm4, %v2362_v38, %v2370_v40 }
 0x219   : > { %2376 = vst [vmem:[%s4118_s19 + $0x8] sm:$0xff] %v2372_v41  ;;  %2378 = vst [vmem:[%s4118_s19 + $0x18] sm:$0xff] %v2374_v42 }
 0x21a PF: > { %s13_s14 = sadd.s32 1, %s3228_s14   ;;  %s4168_s12 = smov %s3224_s13 }
 0x21b   : > { %p10_p5 = scmp.ge.s32.totalorder %s13_s14, 4   ;;  %s4169_s13 = smov %s4171_s15 }
 0x21d   :  { %12 = sbr.rel (!%p10_p5) target bundleno = 2 (0x2), region = 76 }

// kernel: multiscale_discriminator.7
= control target key start
LH: loop header
LB: loop body
LE: loop exit
PB: predicated region body
PF: predicated region fallthrough
CT: control target
= control target key end

     0   :  { %s2713_s12 = smov 0   ;;  %s2715_s13 = smov 0   ;;  %s3050_s0 = inlined_call_operand.vmem [shape: bf16[32,4096], index: 0, kind: input, shape index: {}]   ;;  %s3051_s1 = inlined_call_operand.vmem [shape: bf16[4096,128], index: 1, kind: input, shape index: {}]   ;;  %s3052_s2 = inlined_call_operand.vmem [shape: f32[1,128], index: 2, kind: input, shape index: {}]   ;;  %s3053_s3 = inlined_call_operand.vmem [shape: f32[32,128], index: 3, kind: output, shape index: {}]  }
   0x1   :  { %s2717_s14 = smov 0   ;;  %s2719_s15 = smov 0  }
   0x2   :  { %s2721_s16 = smov 0  }
   0x3 LB: > { %s25_s17 = sadd.s32 1, %s2687_s15  ;;  %p48_p1 = scmp.ne.s32.totalorder %s2679_s13, %s2675_s12  ;;  %s2691_s16 = sphi %s2721_s16, %s13_s16   ;;  %s2687_s15 = sphi %s2719_s15, %s3057_s15   ;;  %s2683_s14 = sphi %s2717_s14, %s3056_s14   ;;  %s2679_s13 = sphi %s2715_s13, %s3055_s13   ;;  %s2675_s12 = sphi %s2713_s12, %s3054_s12  }
   0x4   : > { %p26_p0 = scmp.ge.s32.totalorder %s25_s17, 2  ;;  %p49_p2 = scmp.eq.s32.totalorder %s2691_s16, 0 }
   0x5   : > { %s41_s19 = sadd.s32 1, %s2679_s13  ;;  %p2086_p5 = scmp.ge.s32.totalorder %s2691_s16, 2 }
   0x6   : > { %s3059_s17 = smov (%p26_p0, %s25_s17), 0  ;;  %p50_p3 = por %p49_p2, %p48_p1 }
   0x7   : > { %s37_s18 = ssub.s32 %s2687_s15, %s3059_s17  ;;  %162 = sbr.rel (%p2086_p5) target bundleno = 32 (0x20), region = 20 }
   0x8   : > { %p39_p4 = scmp.eq.s32.totalorder %s37_s18, 0 }
   0xa   : > { %s2748_s20 = scalar_select %p39_p4, %s2679_s13, %s41_s19  }
   0xc   : > { %165 = sbr.rel (!%p50_p3) target bundleno = 32 (0x20), region = 24  ;;  %s167_s21 = sand.u32 (%p50_p3), 1, %s2679_s13  }
   0xd   : > { %s2260_s22 = sshll.u32 (%p50_p3), %s2687_s15, 6  ;;  %s2087_s23 = sshll.u32 (%p50_p3), %s167_s21, 8 }
   0xe   : > { %s2756_s26 = scalar_lea.vmem (%p50_p3), %s3050_s0, %s2260_s22  ;;  %s2761_s27 = scalar_lea.vmem (%p50_p3), [#allocation2], %s2087_s23 }
   0xf   : > { %v188_v0 = vld [vmem:[%s2756_s26] sm:$0xff] (%p50_p3)  ;;  %v190_v1 = vld [vmem:[%s2756_s26 + $0x8] sm:$0xff] (%p50_p3)  ;;  %v192_v2 = vld [vmem:[%s2756_s26 + $0x10] sm:$0xff] (%p50_p3) }
  0x10   : > { %189 = vst [vmem:[%s2761_s27] sm:$0xff] (%p50_p3), %v188_v0  ;;  %191 = vst [vmem:[%s2761_s27 + $0x8] sm:$0xff] (%p50_p3), %v190_v1  ;;  %v194_v3 = vld [vmem:[%s2756_s26 + $0x18] sm:$0xff] (%p50_p3)  ;;  %v196_v4 = vld [vmem:[%s2756_s26 + $0x20] sm:$0xff] (%p50_p3) }
  0x11   : > { %193 = vst [vmem:[%s2761_s27 + $0x10] sm:$0xff] %v192_v2  ;;  %v198_v5 = vld [vmem:[%s2756_s26 + $0x28] sm:$0xff]  ;;  %195 = vst [vmem:[%s2761_s27 + $0x18] sm:$0xff] %v194_v3  ;;  %v200_v6 = vld [vmem:[%s2756_s26 + $0x30] sm:$0xff] }
  0x12   : > { %197 = vst [vmem:[%s2761_s27 + $0x20] sm:$0xff] %v196_v4  ;;  %199 = vst [vmem:[%s2761_s27 + $0x28] sm:$0xff] %v198_v5  ;;  %v202_v7 = vld [vmem:[%s2756_s26 + $0x38] sm:$0xff]  ;;  %v204_v8 = vld [vmem:[%s2756_s26 + $0x80] sm:$0xff] }
  0x13   : > { %201 = vst [vmem:[%s2761_s27 + $0x30] sm:$0xff] %v200_v6  ;;  %203 = vst [vmem:[%s2761_s27 + $0x38] sm:$0xff] %v202_v7  ;;  %v206_v9 = vld [vmem:[%s2756_s26 + $0x88] sm:$0xff]  ;;  %v208_v10 = vld [vmem:[%s2756_s26 + $0x90] sm:$0xff] }
  0x14   : > { %205 = vst [vmem:[%s2761_s27 + $0x40] sm:$0xff] %v204_v8  ;;  %v210_v11 = vld [vmem:[%s2756_s26 + $0x98] sm:$0xff]  ;;  %207 = vst [vmem:[%s2761_s27 + $0x48] sm:$0xff] %v206_v9  ;;  %v212_v12 = vld [vmem:[%s2756_s26 + $0xa0] sm:$0xff] }
  0x15   : > { %209 = vst [vmem:[%s2761_s27 + $0x50] sm:$0xff] %v208_v10  ;;  %211 = vst [vmem:[%s2761_s27 + $0x58] sm:$0xff] %v210_v11  ;;  %v214_v13 = vld [vmem:[%s2756_s26 + $0xa8] sm:$0xff]  ;;  %v216_v14 = vld [vmem:[%s2756_s26 + $0xb0] sm:$0xff] }
  0x16   : > { %213 = vst [vmem:[%s2761_s27 + $0x60] sm:$0xff] %v212_v12  ;;  %215 = vst [vmem:[%s2761_s27 + $0x68] sm:$0xff] %v214_v13  ;;  %v218_v15 = vld [vmem:[%s2756_s26 + $0xb8] sm:$0xff]  ;;  %v220_v16 = vld [vmem:[%s2756_s26 + $0x100] sm:$0xff] }
  0x17   : > { %217 = vst [vmem:[%s2761_s27 + $0x70] sm:$0xff] %v216_v14  ;;  %v222_v17 = vld [vmem:[%s2756_s26 + $0x108] sm:$0xff]  ;;  %219 = vst [vmem:[%s2761_s27 + $0x78] sm:$0xff] %v218_v15  ;;  %v224_v18 = vld [vmem:[%s2756_s26 + $0x110] sm:$0xff] }
  0x18   : > { %221 = vst [vmem:[%s2761_s27 + $0x80] sm:$0xff] %v220_v16  ;;  %223 = vst [vmem:[%s2761_s27 + $0x88] sm:$0xff] %v222_v17  ;;  %v226_v19 = vld [vmem:[%s2756_s26 + $0x118] sm:$0xff]  ;;  %v228_v20 = vld [vmem:[%s2756_s26 + $0x120] sm:$0xff] }
  0x19   : > { %225 = vst [vmem:[%s2761_s27 + $0x90] sm:$0xff] %v224_v18  ;;  %227 = vst [vmem:[%s2761_s27 + $0x98] sm:$0xff] %v226_v19  ;;  %v230_v21 = vld [vmem:[%s2756_s26 + $0x128] sm:$0xff]  ;;  %v232_v22 = vld [vmem:[%s2756_s26 + $0x130] sm:$0xff] }
  0x1a   : > { %229 = vst [vmem:[%s2761_s27 + $0xa0] sm:$0xff] %v228_v20  ;;  %v234_v23 = vld [vmem:[%s2756_s26 + $0x138] sm:$0xff]  ;;  %231 = vst [vmem:[%s2761_s27 + $0xa8] sm:$0xff] %v230_v21  ;;  %v236_v24 = vld [vmem:[%s2756_s26 + $0x180] sm:$0xff] }
  0x1b   : > { %233 = vst [vmem:[%s2761_s27 + $0xb0] sm:$0xff] %v232_v22  ;;  %235 = vst [vmem:[%s2761_s27 + $0xb8] sm:$0xff] %v234_v23  ;;  %v238_v25 = vld [vmem:[%s2756_s26 + $0x188] sm:$0xff]  ;;  %v240_v26 = vld [vmem:[%s2756_s26 + $0x190] sm:$0xff] }
  0x1c   : > { %237 = vst [vmem:[%s2761_s27 + $0xc0] sm:$0xff] %v236_v24  ;;  %239 = vst [vmem:[%s2761_s27 + $0xc8] sm:$0xff] %v238_v25  ;;  %v242_v27 = vld [vmem:[%s2756_s26 + $0x198] sm:$0xff]  ;;  %v244_v28 = vld [vmem:[%s2756_s26 + $0x1a0] sm:$0xff] }
  0x1d   : > { %241 = vst [vmem:[%s2761_s27 + $0xd0] sm:$0xff] %v240_v26  ;;  %v246_v29 = vld [vmem:[%s2756_s26 + $0x1a8] sm:$0xff]  ;;  %243 = vst [vmem:[%s2761_s27 + $0xd8] sm:$0xff] %v242_v27  ;;  %v248_v30 = vld [vmem:[%s2756_s26 + $0x1b0] sm:$0xff] }
  0x1e   : > { %245 = vst [vmem:[%s2761_s27 + $0xe0] sm:$0xff] %v244_v28  ;;  %247 = vst [vmem:[%s2761_s27 + $0xe8] sm:$0xff] %v246_v29  ;;  %v250_v31 = vld [vmem:[%s2756_s26 + $0x1b8] sm:$0xff] }
  0x1f   : > { %249 = vst [vmem:[%s2761_s27 + $0xf0] sm:$0xff] %v248_v30  ;;  %251 = vst [vmem:[%s2761_s27 + $0xf8] sm:$0xff] %v250_v31 }
  0x20 PF: > { %p2090_p6 = scmp.ge.s32.totalorder %s2691_s16, 1  ;;  %p268_p7 = scmp.lt.s32.totalorder %s2691_s16, 3 }
  0x22   : > { %p269_p8 = pnand %p2090_p6, %p268_p7 }
  0x23   : > { %s275_s28 = sand.u32 (!%p269_p8), 1, %s2675_s12   ;;  %s2092_s29 = sshll.u32 (!%p269_p8), %s2683_s14, 8 }
  0x24   : > { %272 = sbr.rel (%p269_p8) target bundleno = 395 (0x18b), region = 51  ;;  %s2091_s30 = sshll.u32 (!%p269_p8), %s275_s28, 8 }
  0x25   : > { %p315_p9 = scmp.lt.s32.totalorder (!%p269_p8), %s2092_s29, 511  ;;  %s2833_s8 = scalar_lea.vmem (!%p269_p8), [#allocation2], %s2091_s30 }
  0x26   : > { %p2094_p10 = scmp.ne.s32.totalorder (!%p269_p8), %s2683_s14, 0 }
  0x29   : > { %s3061_s29 = smov (!%p315_p9, %s2092_s29), 511  ;;  %339 = sbr.rel (%p2094_p10) target bundleno = 49 (0x31), region = 59 }
  0x2a   : > { %s2093_s4 = sshll.u32 %s3061_s29, 2 }
  0x2b   : > { %s2831_s7 = scalar_lea.vmem %s3051_s1, %s2093_s4 }
  0x2e   : > { %v2095_v32 = vld [vmem:[%s3052_s2] ss:$0 sm:$0xff] }
  0x2f   : > { %348 = vst [vmem:[%s3053_s3] sm:$0xff] %v2095_v32  ;;  %349 = vst [vmem:[%s3053_s3 + $0x8] sm:$0xff] %v2095_v32 }
  0x30   : > { %350 = vst [vmem:[%s3053_s3 + $0x10] sm:$0xff] %v2095_v32  ;;  %351 = vst [vmem:[%s3053_s3 + $0x18] sm:$0xff] %v2095_v32 }
  0x31 PF: > { %v2525_v33 = vld [vmem:[%s2831_s7 + $0x78] sm:$0xff]   ;;  %v2529_v37 = vld [vmem:[%s2831_s7 + $0x70] sm:$0xff]   ;;  %v2533_v41 = vld [vmem:[%s2831_s7 + $0x68] sm:$0xff]  }
  0x32   : > { %v2526_v34 = vld [vmem:[%s2831_s7 + $0xf8] sm:$0xff]   ;;  %2261 = vmatprep.subr.bf16.mxu0 %v2525_v33  ;;  %v2530_v38 = vld [vmem:[%s2831_s7 + $0xf0] sm:$0xff]   ;;  %v2534_v42 = vld [vmem:[%s2831_s7 + $0xe8] sm:$0xff]  }
  0x33   : > { %v2527_v35 = vld [vmem:[%s2831_s7 + $0x38] sm:$0xff]   ;;  %2289 = vmatprep.subr.bf16.mxu1 %v2526_v34  ;;  %v2531_v39 = vld [vmem:[%s2831_s7 + $0x30] sm:$0xff]   ;;  %v2535_v43 = vld [vmem:[%s2831_s7 + $0x28] sm:$0xff]  }
  0x34   : > { %v2528_v36 = vld [vmem:[%s2831_s7 + $0xb8] sm:$0xff]   ;;  %2262 = vmatpush3.bf16.msra.mxu0 %v2527_v35  ;;  %v2532_v40 = vld [vmem:[%s2831_s7 + $0xb0] sm:$0xff]   ;;  %v2536_v44 = vld [vmem:[%s2831_s7 + $0xa8] sm:$0xff]  }
  0x35   : > { %2290 = vmatpush3.bf16.msra.mxu1 %v2528_v36  ;;  %2263 = vmatprep.subr.bf16.mxu0 %v2529_v37  ;;  %v2537_v45 = vld [vmem:[%s2831_s7 + $0x60] sm:$0xff]   ;;  %v2541_v49 = vld [vmem:[%s2831_s7 + $0x58] sm:$0xff]   ;;  %v2545_v53 = vld [vmem:[%s2831_s7 + $0x50] sm:$0xff]  }
  0x36   : > { %2291 = vmatprep.subr.bf16.mxu1 %v2530_v38  ;;  %v2538_v46 = vld [vmem:[%s2831_s7 + $0xe0] sm:$0xff]   ;;  %v2542_v50 = vld [vmem:[%s2831_s7 + $0xd8] sm:$0xff]   ;;  %v2546_v54 = vld [vmem:[%s2831_s7 + $0xd0] sm:$0xff]  }
  0x37   : > { %v2539_v47 = vld [vmem:[%s2831_s7 + $0x20] sm:$0xff]   ;;  %v2543_v51 = vld [vmem:[%s2831_s7 + $0x18] sm:$0xff]   ;;  %v2547_v55 = vld [vmem:[%s2831_s7 + $0x10] sm:$0xff]  }
  0x38   : > { %2264 = vmatpush3.bf16.msra.mxu0 %v2531_v39  ;;  %v2540_v48 = vld [vmem:[%s2831_s7 + $0xa0] sm:$0xff]   ;;  %v2544_v52 = vld [vmem:[%s2831_s7 + $0x98] sm:$0xff]   ;;  %v2548_v56 = vld [vmem:[%s2831_s7 + $0x90] sm:$0xff]  }
  0x39   : > { %2292 = vmatpush3.bf16.msra.mxu1 %v2532_v40  ;;  %2265 = vmatprep.subr.bf16.mxu0 %v2533_v41  ;;  %v2549_v57 = vld [vmem:[%s2831_s7 + $0x48] sm:$0xff]   ;;  %v2553_v61 = vld [vmem:[%s2831_s7 + $0x40] sm:$0xff]   ;;  %v2557_v9 = vld [vmem:[%s2831_s7 + $0x178] sm:$0xff]  }
  0x3a   : > { %2293 = vmatprep.subr.bf16.mxu1 %v2534_v42  ;;  %v2550_v58 = vld [vmem:[%s2831_s7 + $0xc8] sm:$0xff]   ;;  %v2554_v62 = vld [vmem:[%s2831_s7 + $0xc0] sm:$0xff]   ;;  %v2558_v10 = vld [vmem:[%s2831_s7 + $0x1f8] sm:$0xff]  }
  0x3b   : > { %v2551_v59 = vld [vmem:[%s2831_s7 + $0x8] sm:$0xff]   ;;  %v2555_v63 = vld [vmem:[%s2831_s7] sm:$0xff]   ;;  %v2559_v11 = vld [vmem:[%s2831_s7 + $0x138] sm:$0xff]  }
  0x3c   : > { %2266 = vmatpush3.bf16.msra.mxu0 %v2535_v43  ;;  %v2552_v60 = vld [vmem:[%s2831_s7 + $0x88] sm:$0xff]   ;;  %v2556_v0 = vld [vmem:[%s2831_s7 + $0x80] sm:$0xff]   ;;  %v2560_v12 = vld [vmem:[%s2831_s7 + $0x1b8] sm:$0xff]  }
  0x3d   : > { %2294 = vmatpush3.bf16.msra.mxu1 %v2536_v44  ;;  %2267 = vmatprep.subr.bf16.mxu0 %v2537_v45  ;;  %v356_v1 = vld [vmem:[%s2833_s8] sm:$0xff]  ;;  %v357_v3 = vld [vmem:[%s2833_s8 + $0x8] sm:$0xff]  ;;  %v2561_v13 = vld [vmem:[%s2831_s7 + $0x170] sm:$0xff]  }
  0x3e   : > { %2295 = vmatprep.subr.bf16.mxu1 %v2538_v46  ;;  %v364_v2 = vld [vmem:[%s2833_s8 + $0x40] sm:$0xff]  ;;  %v365_v6 = vld [vmem:[%s2833_s8 + $0x48] sm:$0xff]  ;;  %v2562_v14 = vld [vmem:[%s2831_s7 + $0x1f0] sm:$0xff]  }
  0x3f   : > { %v2096_v4 = vcombine.low %v356_v1, %v364_v2  ;;  %v2097_v5 = vcombine.high %v356_v1, %v364_v2  ;;  %v2098_v7 = vcombine.low %v357_v3, %v365_v6  ;;  %v2099_v8 = vcombine.high %v357_v3, %v365_v6  ;;  %v2563_v15 = vld [vmem:[%s2831_s7 + $0x130] sm:$0xff]   ;;  %v2565_v17 = vld [vmem:[%s2831_s7 + $0x168] sm:$0xff]   ;;  %v2569_v21 = vld [vmem:[%s2831_s7 + $0x160] sm:$0xff]  }
  0x40   : > { %2268 = vmatpush3.bf16.msra.mxu0 %v2539_v47  ;;  %v2564_v16 = vld [vmem:[%s2831_s7 + $0x1b0] sm:$0xff]   ;;  %v2566_v18 = vld [vmem:[%s2831_s7 + $0x1e8] sm:$0xff]   ;;  %v2570_v22 = vld [vmem:[%s2831_s7 + $0x1e0] sm:$0xff]  }
  0x41   : > { %2296 = vmatpush3.bf16.msra.mxu1 %v2540_v48  ;;  %2269 = vmatprep.subr.bf16.mxu0 %v2541_v49  ;;  %v2567_v19 = vld [vmem:[%s2831_s7 + $0x128] sm:$0xff]   ;;  %v2571_v23 = vld [vmem:[%s2831_s7 + $0x120] sm:$0xff]   ;;  %v2573_v25 = vld [vmem:[%s2831_s7 + $0x158] sm:$0xff]  }
  0x42   : > { %2297 = vmatprep.subr.bf16.mxu1 %v2542_v50  ;;  %1604 = vmatprep.mubr.bf16.mxu0 %v2097_v5  ;;  %v2568_v20 = vld [vmem:[%s2831_s7 + $0x1a8] sm:$0xff]   ;;  %v2572_v24 = vld [vmem:[%s2831_s7 + $0x1a0] sm:$0xff]   ;;  %v2574_v26 = vld [vmem:[%s2831_s7 + $0x1d8] sm:$0xff]  }
  0x43   : > { %1653 = vmatprep.mubr.bf16.mxu1 %v2099_v8  ;;  %v2575_v27 = vld [vmem:[%s2831_s7 + $0x118] sm:$0xff]   ;;  %v372_v29 = vld [vmem:[%s2833_s8 + $0x80] sm:$0xff]  ;;  %v373_v32 = vld [vmem:[%s2833_s8 + $0x88] sm:$0xff] }
  0x44   : > { %2270 = vmatpush3.bf16.msra.mxu0 %v2543_v51  ;;  %v2576_v28 = vld [vmem:[%s2831_s7 + $0x198] sm:$0xff]   ;;  %v380_v30 = vld [vmem:[%s2833_s8 + $0xc0] sm:$0xff]  ;;  %v381_v33 = vld [vmem:[%s2833_s8 + $0xc8] sm:$0xff] }
  0x45   : > { %2298 = vmatpush3.bf16.msra.mxu1 %v2544_v52  ;;  %2271 = vmatprep.subr.bf16.mxu0 %v2545_v53  ;;  %v2113_v31 = vcombine.high %v372_v29, %v380_v30  ;;  %v2112_v34 = vcombine.low %v372_v29, %v380_v30  ;;  %v2115_v35 = vcombine.high %v373_v32, %v381_v33  ;;  %v2577_v37 = vld [vmem:[%s2831_s7 + $0x150] sm:$0xff]   ;;  %v2581_v41 = vld [vmem:[%s2831_s7 + $0x148] sm:$0xff]   ;;  %v2585_v45 = vld [vmem:[%s2831_s7 + $0x140] sm:$0xff]  }
  0x46   : > { %2299 = vmatprep.subr.bf16.mxu1 %v2546_v54  ;;  %v2114_v36 = vcombine.low %v373_v32, %v381_v33  ;;  %v2578_v38 = vld [vmem:[%s2831_s7 + $0x1d0] sm:$0xff]   ;;  %v2582_v42 = vld [vmem:[%s2831_s7 + $0x1c8] sm:$0xff]   ;;  %v2586_v46 = vld [vmem:[%s2831_s7 + $0x1c0] sm:$0xff]  }
  0x47   : > { %v2579_v39 = vld [vmem:[%s2831_s7 + $0x110] sm:$0xff]   ;;  %v2583_v43 = vld [vmem:[%s2831_s7 + $0x108] sm:$0xff]   ;;  %v2587_v47 = vld [vmem:[%s2831_s7 + $0x100] sm:$0xff]  }
  0x48   : > { %2272 = vmatpush3.bf16.msra.mxu0 %v2547_v55  ;;  %v2580_v40 = vld [vmem:[%s2831_s7 + $0x190] sm:$0xff]   ;;  %v2584_v44 = vld [vmem:[%s2831_s7 + $0x188] sm:$0xff]   ;;  %v2588_v48 = vld [vmem:[%s2831_s7 + $0x180] sm:$0xff]  }
  0x49   : > { %2300 = vmatpush3.bf16.msra.mxu1 %v2548_v56  ;;  %2273 = vmatprep.subr.bf16.mxu0 %v2549_v57  ;;  %v358_v49 = vld [vmem:[%s2833_s8 + $0x10] sm:$0xff]  ;;  %v359_v51 = vld [vmem:[%s2833_s8 + $0x18] sm:$0xff]  ;;  %v2597_v5 = vld [vmem:[%s2831_s7 + $0x268] sm:$0xff]  }
  0x4a   : > { %2301 = vmatprep.subr.bf16.mxu1 %v2550_v58  ;;  %v366_v50 = vld [vmem:[%s2833_s8 + $0x50] sm:$0xff]  ;;  %v367_v52 = vld [vmem:[%s2833_s8 + $0x58] sm:$0xff]  ;;  %v2598_v6 = vld [vmem:[%s2831_s7 + $0x2e8] sm:$0xff]  }
  0x4b   : > { %v2100_v53 = vcombine.low %v358_v49, %v366_v50  ;;  %v2101_v54 = vcombine.high %v358_v49, %v366_v50  ;;  %v2102_v55 = vcombine.low %v359_v51, %v367_v52  ;;  %v2103_v56 = vcombine.high %v359_v51, %v367_v52  ;;  %v2589_v57 = vld [vmem:[%s2831_s7 + $0x278] sm:$0xff]   ;;  %v374_v1 = vld [vmem:[%s2833_s8 + $0x90] sm:$0xff]  ;;  %v2617_v29 = vld [vmem:[%s2831_s7 + $0x240] sm:$0xff]  }
  0x4c   : > { %2274 = vmatpush3.bf16.msra.mxu0 %v2551_v59  ;;  %v2590_v58 = vld [vmem:[%s2831_s7 + $0x2f8] sm:$0xff]   ;;  %v382_v2 = vld [vmem:[%s2833_s8 + $0xd0] sm:$0xff]  ;;  %v2618_v30 = vld [vmem:[%s2831_s7 + $0x2c0] sm:$0xff]  }
  0x4d   : > { %2302 = vmatpush3.bf16.msra.mxu1 %v2552_v60  ;;  %2275 = vmatprep.subr.bf16.mxu0 %v2553_v61  ;;  %v2591_v59 = vld [vmem:[%s2831_s7 + $0x238] sm:$0xff]   ;;  %v2593_v61 = vld [vmem:[%s2831_s7 + $0x270] sm:$0xff]   ;;  %v2117_v3 = vcombine.high %v374_v1, %v382_v2  ;;  %v2620_v32 = vld [vmem:[%s2831_s7 + $0x280] sm:$0xff]  }
  0x4e   : > { %2303 = vmatprep.subr.bf16.mxu1 %v2554_v62  ;;  %v2592_v60 = vld [vmem:[%s2831_s7 + $0x2b8] sm:$0xff]   ;;  %v2594_v62 = vld [vmem:[%s2831_s7 + $0x2f0] sm:$0xff]   ;;  %v360_v33 = vld [vmem:[%s2833_s8 + $0x20] sm:$0xff] }
  0x4f   : > { %v383_v8 = vld [vmem:[%s2833_s8 + $0xd8] sm:$0xff]  ;;  %v376_v49 = vld [vmem:[%s2833_s8 + $0xa0] sm:$0xff] }
  0x50   : > { %2276 = vmatpush3.bf16.msra.mxu0 %v2555_v63  ;;  %v2595_v63 = vld [vmem:[%s2831_s7 + $0x230] sm:$0xff]   ;;  %v384_v50 = vld [vmem:[%s2833_s8 + $0xe0] sm:$0xff] }
  0x51   : > { %2304 = vmatpush3.bf16.msra.mxu1 %v2556_v0  ;;  %2317 = vmatprep.subr.bf16.mxu0 %v2557_v9  ;;  %v2596_v0 = vld [vmem:[%s2831_s7 + $0x2b0] sm:$0xff]   ;;  %v2121_v51 = vcombine.high %v376_v49, %v384_v50  ;;  %v2120_v52 = vcombine.low %v376_v49, %v384_v50 }
  0x52   : > { %2345 = vmatprep.subr.bf16.mxu1 %v2558_v10  ;;  %v2599_v10 = vld [vmem:[%s2831_s7 + $0x228] sm:$0xff]  }
  0x53   : > { %1605 = vmatmul.mubr.bf16.vlgmr.msra.gmra.mxu0 %v2096_v4  ;;  %v2116_v4 = vcombine.low %v374_v1, %v382_v2  ;;  %v2637_v1 = vld [vmem:[%s2831_s7 + $0x358] sm:$0xff]  }
  0x54   : > { %1654 = vmatmul.mubr.bf16.vlgmr.msra.gmra.mxu1 %v2098_v7  ;;  %2318 = vmatpush3.bf16.msra.mxu0 %v2559_v11  ;;  %v375_v7 = vld [vmem:[%s2833_s8 + $0x98] sm:$0xff] }
  0x55   : > { %2346 = vmatpush3.bf16.msra.mxu1 %v2560_v12  ;;  %2319 = vmatprep.subr.bf16.mxu0 %v2561_v13  ;;  %v2119_v9 = vcombine.high %v375_v7, %v383_v8  ;;  %v2118_v11 = vcombine.low %v375_v7, %v383_v8  ;;  %v2600_v12 = vld [vmem:[%s2831_s7 + $0x2a8] sm:$0xff]   ;;  %v2601_v13 = vld [vmem:[%s2831_s7 + $0x260] sm:$0xff]   ;;  %v2638_v2 = vld [vmem:[%s2831_s7 + $0x3d8] sm:$0xff]  }
  0x56   : > { %2347 = vmatprep.subr.bf16.mxu1 %v2562_v14  ;;  %1612 = vmatprep.mubr.bf16.mxu0 %v2113_v31  ;;  %v2602_v14 = vld [vmem:[%s2831_s7 + $0x2e0] sm:$0xff]   ;;  %v2643_v7 = vld [vmem:[%s2831_s7 + $0x310] sm:$0xff]  }
  0x57   : > { %1661 = vmatprep.mubr.bf16.mxu1 %v2115_v35  ;;  %v2619_v31 = vld [vmem:[%s2831_s7 + $0x200] sm:$0xff]   ;;  %v2644_v8 = vld [vmem:[%s2831_s7 + $0x390] sm:$0xff]  }
  0x58   : > { %2320 = vmatpush3.bf16.msra.mxu0 %v2563_v15  ;;  %v2603_v15 = vld [vmem:[%s2831_s7 + $0x220] sm:$0xff]  }
  0x59   : > { %2348 = vmatpush3.bf16.msra.mxu1 %v2564_v16  ;;  %2321 = vmatprep.subr.bf16.mxu0 %v2565_v17  ;;  %v2604_v16 = vld [vmem:[%s2831_s7 + $0x2a0] sm:$0xff]   ;;  %v2605_v17 = vld [vmem:[%s2831_s7 + $0x258] sm:$0xff]  }
  0x5a   : > { %2349 = vmatprep.subr.bf16.mxu1 %v2566_v18  ;;  %v2606_v18 = vld [vmem:[%s2831_s7 + $0x2d8] sm:$0xff]  }
  0x5b   : > { %1613 = vmatmul.mubr.bf16.gmra.mxu0 %v2112_v34  ;;  %v368_v34 = vld [vmem:[%s2833_s8 + $0x60] sm:$0xff] }
  0x5c   : > { %2322 = vmatpush3.bf16.msra.mxu0 %v2567_v19  ;;  %1662 = vmatmul.mubr.bf16.gmra.mxu1 %v2114_v36  ;;  %v2607_v19 = vld [vmem:[%s2831_s7 + $0x218] sm:$0xff]   ;;  %v2104_v35 = vcombine.low %v360_v33, %v368_v34  ;;  %v2105_v36 = vcombine.high %v360_v33, %v368_v34 }
  0x5d   : > { %2350 = vmatpush3.bf16.msra.mxu1 %v2568_v20  ;;  %2323 = vmatprep.subr.bf16.mxu0 %v2569_v21  ;;  %v2608_v20 = vld [vmem:[%s2831_s7 + $0x298] sm:$0xff]   ;;  %v2609_v21 = vld [vmem:[%s2831_s7 + $0x250] sm:$0xff]  }
  0x5e   : > { %2351 = vmatprep.subr.bf16.mxu1 %v2570_v22  ;;  %1702 = vmatprep.mubr.bf16.mxu0 %v2101_v54  ;;  %v2610_v22 = vld [vmem:[%s2831_s7 + $0x2d0] sm:$0xff]   ;;  %v2630_v54 = vld [vmem:[%s2831_s7 + $0x3e8] sm:$0xff]  }
  0x5f   : > { %1751 = vmatprep.mubr.bf16.mxu1 %v2103_v56  ;;  %v385_v56 = vld [vmem:[%s2833_s8 + $0xe8] sm:$0xff] }
  0x60   : > { %2324 = vmatpush3.bf16.msra.mxu0 %v2571_v23  ;;  %v2611_v23 = vld [vmem:[%s2831_s7 + $0x210] sm:$0xff]  }
  0x61   : > { %2352 = vmatpush3.bf16.msra.mxu1 %v2572_v24  ;;  %2325 = vmatprep.subr.bf16.mxu0 %v2573_v25  ;;  %v2612_v24 = vld [vmem:[%s2831_s7 + $0x290] sm:$0xff]   ;;  %v2613_v25 = vld [vmem:[%s2831_s7 + $0x248] sm:$0xff]  }
  0x62   : > { %2353 = vmatprep.subr.bf16.mxu1 %v2574_v26  ;;  %v2614_v26 = vld [vmem:[%s2831_s7 + $0x2c8] sm:$0xff]  }
  0x64   : > { %2326 = vmatpush3.bf16.msra.mxu0 %v2575_v27  ;;  %v2615_v27 = vld [vmem:[%s2831_s7 + $0x208] sm:$0xff]  }
  0x65   : > { %2354 = vmatpush3.bf16.msra.mxu1 %v2576_v28  ;;  %2327 = vmatprep.subr.bf16.mxu0 %v2577_v37  ;;  %v2616_v28 = vld [vmem:[%s2831_s7 + $0x288] sm:$0xff]  }
  0x66   : > { %2355 = vmatprep.subr.bf16.mxu1 %v2578_v38  ;;  %v361_v37 = vld [vmem:[%s2833_s8 + $0x28] sm:$0xff] }
  0x67   : > { %v369_v38 = vld [vmem:[%s2833_s8 + $0x68] sm:$0xff] }
  0x68   : > { %2328 = vmatpush3.bf16.msra.mxu0 %v2579_v39  ;;  %v2106_v39 = vcombine.low %v361_v37, %v369_v38 }
  0x69   : > { %2356 = vmatpush3.bf16.msra.mxu1 %v2580_v40  ;;  %2329 = vmatprep.subr.bf16.mxu0 %v2581_v41  ;;  %v2107_v40 = vcombine.high %v361_v37, %v369_v38  ;;  %v2621_v41 = vld [vmem:[%s2831_s7 + $0x378] sm:$0xff]  }
  0x6a   : > { %2357 = vmatprep.subr.bf16.mxu1 %v2582_v42  ;;  %v2622_v42 = vld [vmem:[%s2831_s7 + $0x3f8] sm:$0xff]  }
  0x6c   : > { %2330 = vmatpush3.bf16.msra.mxu0 %v2583_v43  ;;  %v2623_v43 = vld [vmem:[%s2831_s7 + $0x338] sm:$0xff]  }
  0x6d   : > { %2358 = vmatpush3.bf16.msra.mxu1 %v2584_v44  ;;  %2331 = vmatprep.subr.bf16.mxu0 %v2585_v45  ;;  %v2624_v44 = vld [vmem:[%s2831_s7 + $0x3b8] sm:$0xff]   ;;  %v2625_v45 = vld [vmem:[%s2831_s7 + $0x370] sm:$0xff]  }
  0x6e   : > { %2359 = vmatprep.subr.bf16.mxu1 %v2586_v46  ;;  %v2626_v46 = vld [vmem:[%s2831_s7 + $0x3f0] sm:$0xff]  }
  0x70   : > { %2332 = vmatpush3.bf16.msra.mxu0 %v2587_v47  ;;  %v2627_v47 = vld [vmem:[%s2831_s7 + $0x330] sm:$0xff]  }
  0x71   : > { %2360 = vmatpush3.bf16.msra.mxu1 %v2588_v48  ;;  %2373 = vmatprep.subr.bf16.mxu0 %v2589_v57  ;;  %v2628_v48 = vld [vmem:[%s2831_s7 + $0x3b0] sm:$0xff]  }
  0x72   : > { %2401 = vmatprep.subr.bf16.mxu1 %v2590_v58  ;;  %v2631_v58 = vld [vmem:[%s2831_s7 + $0x328] sm:$0xff]  }
  0x73   : > { %1703 = vmatmul.mubr.bf16.vlgmr.msra.gmra.mxu0 %v2100_v53  ;;  %v2629_v53 = vld [vmem:[%s2831_s7 + $0x368] sm:$0xff]  }
  0x74   : > { %1752 = vmatmul.mubr.bf16.vlgmr.msra.gmra.mxu1 %v2102_v55  ;;  %2374 = vmatpush3.bf16.msra.mxu0 %v2591_v59  ;;  %v377_v55 = vld [vmem:[%s2833_s8 + $0xa8] sm:$0xff] }
  0x75   : > { %2402 = vmatpush3.bf16.msra.mxu1 %v2592_v60  ;;  %2375 = vmatprep.subr.bf16.mxu0 %v2593_v61  ;;  %v2123_v57 = vcombine.high %v377_v55, %v385_v56  ;;  %v2122_v59 = vcombine.low %v377_v55, %v385_v56  ;;  %v2632_v60 = vld [vmem:[%s2831_s7 + $0x3a8] sm:$0xff]   ;;  %v2633_v61 = vld [vmem:[%s2831_s7 + $0x360] sm:$0xff]  }
  0x76   : > { %2403 = vmatprep.subr.bf16.mxu1 %v2594_v62  ;;  %1710 = vmatprep.mubr.bf16.mxu0 %v2117_v3  ;;  %v2634_v62 = vld [vmem:[%s2831_s7 + $0x3e0] sm:$0xff]   ;;  %v2639_v3 = vld [vmem:[%s2831_s7 + $0x318] sm:$0xff]  }
  0x77   : > { %1759 = vmatprep.mubr.bf16.mxu1 %v2119_v9  ;;  %v2645_v9 = vld [vmem:[%s2831_s7 + $0x348] sm:$0xff]  }
  0x78   : > { %2376 = vmatpush3.bf16.msra.mxu0 %v2595_v63  ;;  %v2635_v63 = vld [vmem:[%s2831_s7 + $0x320] sm:$0xff]  }
  0x79   : > { %2404 = vmatpush3.bf16.msra.mxu1 %v2596_v0  ;;  %2377 = vmatprep.subr.bf16.mxu0 %v2597_v5  ;;  %v2636_v0 = vld [vmem:[%s2831_s7 + $0x3a0] sm:$0xff]   ;;  %v2641_v5 = vld [vmem:[%s2831_s7 + $0x350] sm:$0xff]  }
  0x7a   : > { %2405 = vmatprep.subr.bf16.mxu1 %v2598_v6  ;;  %v2642_v6 = vld [vmem:[%s2831_s7 + $0x3d0] sm:$0xff]  }
  0x7b   : > { %1711 = vmatmul.mubr.bf16.gmra.mxu0 %v2116_v4  ;;  %v2640_v4 = vld [vmem:[%s2831_s7 + $0x398] sm:$0xff]  }
  0x7c   : > { %2378 = vmatpush3.bf16.msra.mxu0 %v2599_v10  ;;  %1760 = vmatmul.mubr.bf16.gmra.mxu1 %v2118_v11  ;;  %v2646_v10 = vld [vmem:[%s2831_s7 + $0x3c8] sm:$0xff]  }
  0x7d   : > { %2406 = vmatpush3.bf16.msra.mxu1 %v2600_v12  ;;  %2379 = vmatprep.subr.bf16.mxu0 %v2601_v13  ;;  %v2647_v11 = vld [vmem:[%s2831_s7 + $0x308] sm:$0xff]   ;;  %v2649_v13 = vld [vmem:[%s2831_s7 + $0x340] sm:$0xff]  }
  0x7e   : > { %2407 = vmatprep.subr.bf16.mxu1 %v2602_v14  ;;  %1800 = vmatprep.mubr.bf16.mxu0 %v2105_v36  ;;  %v2648_v12 = vld [vmem:[%s2831_s7 + $0x388] sm:$0xff]   ;;  %v2650_v14 = vld [vmem:[%s2831_s7 + $0x3c0] sm:$0xff]  }
  0x7f   : > { %1849 = vmatprep.mubr.bf16.mxu1 %v2107_v40 }
  0x80   : > { %2380 = vmatpush3.bf16.msra.mxu0 %v2603_v15  ;;  %v2651_v15 = vld [vmem:[%s2831_s7 + $0x300] sm:$0xff]  }
  0x81   : > { %2408 = vmatpush3.bf16.msra.mxu1 %v2604_v16  ;;  %2381 = vmatprep.subr.bf16.mxu0 %v2605_v17  ;;  %v2652_v16 = vld [vmem:[%s2831_s7 + $0x380] sm:$0xff]   ;;  %v362_v17 = vld [vmem:[%s2833_s8 + $0x30] sm:$0xff] }
  0x82   : > { %2409 = vmatprep.subr.bf16.mxu1 %v2606_v18  ;;  %v370_v18 = vld [vmem:[%s2833_s8 + $0x70] sm:$0xff] }
  0x84   : > { %2382 = vmatpush3.bf16.msra.mxu0 %v2607_v19  ;;  %v363_v19 = vld [vmem:[%s2833_s8 + $0x38] sm:$0xff] }
  0x85   : > { %2410 = vmatpush3.bf16.msra.mxu1 %v2608_v20  ;;  %2383 = vmatprep.subr.bf16.mxu0 %v2609_v21  ;;  %v2108_v20 = vcombine.low %v362_v17, %v370_v18  ;;  %v2109_v21 = vcombine.high %v362_v17, %v370_v18 }
  0x86   : > { %2411 = vmatprep.subr.bf16.mxu1 %v2610_v22  ;;  %v371_v22 = vld [vmem:[%s2833_s8 + $0x78] sm:$0xff] }
  0x88   : > { %2384 = vmatpush3.bf16.msra.mxu0 %v2611_v23  ;;  %v378_v23 = vld [vmem:[%s2833_s8 + $0xb0] sm:$0xff] }
  0x89   : > { %2412 = vmatpush3.bf16.msra.mxu1 %v2612_v24  ;;  %2385 = vmatprep.subr.bf16.mxu0 %v2613_v25  ;;  %v386_v24 = vld [vmem:[%s2833_s8 + $0xf0] sm:$0xff]  ;;  %v2110_v25 = vcombine.low %v363_v19, %v371_v22 }
  0x8a   : > { %2413 = vmatprep.subr.bf16.mxu1 %v2614_v26  ;;  %v2111_v26 = vcombine.high %v363_v19, %v371_v22 }
  0x8c   : > { %2386 = vmatpush3.bf16.msra.mxu0 %v2615_v27  ;;  %v2125_v27 = vcombine.high %v378_v23, %v386_v24 }
  0x8d   : > { %2414 = vmatpush3.bf16.msra.mxu1 %v2616_v28  ;;  %2387 = vmatprep.subr.bf16.mxu0 %v2617_v29  ;;  %v379_v28 = vld [vmem:[%s2833_s8 + $0xb8] sm:$0xff] }
  0x8e   : > { %2415 = vmatprep.subr.bf16.mxu1 %v2618_v30  ;;  %v387_v29 = vld [vmem:[%s2833_s8 + $0xf8] sm:$0xff] }
  0x8f   : > { %v2127_v30 = vcombine.high %v379_v28, %v387_v29 }
  0x90   : > { %2388 = vmatpush3.bf16.msra.mxu0 %v2619_v31  ;;  %v2124_v31 = vcombine.low %v378_v23, %v386_v24 }
  0x91   : > { %2416 = vmatpush3.bf16.msra.mxu1 %v2620_v32  ;;  %2429 = vmatprep.subr.bf16.mxu0 %v2621_v41  ;;  %v2126_v32 = vcombine.low %v379_v28, %v387_v29 }
  0x92   : > { %2457 = vmatprep.subr.bf16.mxu1 %v2622_v42 }
  0x93   : > { %1801 = vmatmul.mubr.bf16.vlgmr.msra.gmra.mxu0 %v2104_v35 }
  0x94   : > { %1850 = vmatmul.mubr.bf16.vlgmr.msra.gmra.mxu1 %v2106_v39  ;;  %2430 = vmatpush3.bf16.msra.mxu0 %v2623_v43 }
  0x95   : > { %2458 = vmatpush3.bf16.msra.mxu1 %v2624_v44  ;;  %2431 = vmatprep.subr.bf16.mxu0 %v2625_v45 }
  0x96   : > { %2459 = vmatprep.subr.bf16.mxu1 %v2626_v46  ;;  %1808 = vmatprep.mubr.bf16.mxu0 %v2121_v51 }
  0x97   : > { %1857 = vmatprep.mubr.bf16.mxu1 %v2123_v57 }
  0x98   : > { %2432 = vmatpush3.bf16.msra.mxu0 %v2627_v47 }
  0x99   : > { %2460 = vmatpush3.bf16.msra.mxu1 %v2628_v48  ;;  %2433 = vmatprep.subr.bf16.mxu0 %v2629_v53 }
  0x9a   : > { %2461 = vmatprep.subr.bf16.mxu1 %v2630_v54 }
  0x9b   : > { %1809 = vmatmul.mubr.bf16.gmra.mxu0 %v2120_v52 }
  0x9c   : > { %2434 = vmatpush3.bf16.msra.mxu0 %v2631_v58  ;;  %1858 = vmatmul.mubr.bf16.gmra.mxu1 %v2122_v59 }
  0x9d   : > { %2462 = vmatpush3.bf16.msra.mxu1 %v2632_v60  ;;  %2435 = vmatprep.subr.bf16.mxu0 %v2633_v61 }
  0x9e   : > { %2463 = vmatprep.subr.bf16.mxu1 %v2634_v62  ;;  %1898 = vmatprep.mubr.bf16.mxu0 %v2109_v21 }
  0x9f   : > { %1947 = vmatprep.mubr.bf16.mxu1 %v2111_v26 }
  0xa0   : > { %2436 = vmatpush3.bf16.msra.mxu0 %v2635_v63 }
  0xa1   : > { %2464 = vmatpush3.bf16.msra.mxu1 %v2636_v0  ;;  %2437 = vmatprep.subr.bf16.mxu0 %v2637_v1 }
  0xa2   : > { %2465 = vmatprep.subr.bf16.mxu1 %v2638_v2 }
  0xa4   : > { %2438 = vmatpush3.bf16.msra.mxu0 %v2639_v3 }
  0xa5   : > { %2466 = vmatpush3.bf16.msra.mxu1 %v2640_v4  ;;  %2439 = vmatprep.subr.bf16.mxu0 %v2641_v5 }
  0xa6   : > { %2467 = vmatprep.subr.bf16.mxu1 %v2642_v6 }
  0xa8   : > { %2440 = vmatpush3.bf16.msra.mxu0 %v2643_v7 }
  0xa9   : > { %2468 = vmatpush3.bf16.msra.mxu1 %v2644_v8  ;;  %2441 = vmatprep.subr.bf16.mxu0 %v2645_v9 }
  0xaa   : > { %2469 = vmatprep.subr.bf16.mxu1 %v2646_v10 }
  0xac   : > { %2442 = vmatpush3.bf16.msra.mxu0 %v2647_v11 }
  0xad   : > { %2470 = vmatpush3.bf16.msra.mxu1 %v2648_v12  ;;  %2443 = vmatprep.subr.bf16.mxu0 %v2649_v13 }
  0xae   : > { %2471 = vmatprep.subr.bf16.mxu1 %v2650_v14 }
  0xb0   : > { %2444 = vmatpush3.bf16.msra.mxu0 %v2651_v15 }
  0xb1   : > { %2472 = vmatpush3.bf16.msra.mxu1 %v2652_v16 }
  0xb3   : > { %1899 = vmatmul.mubr.bf16.vlgmr.msra.gmra.mxu0 %v2108_v20 }
  0xb4   : > { %1948 = vmatmul.mubr.bf16.vlgmr.msra.gmra.mxu1 %v2110_v25  ;;  %1906 = vmatprep.mubr.bf16.mxu0 %v2125_v27 }
  0xb5   : > { %1955 = vmatprep.mubr.bf16.mxu1 %v2127_v30 }
  0xbb   : > { %1907 = vmatmul.mubr.bf16.gmra.mxu0 %v2124_v31 }
  0xbc   : > { %1956 = vmatmul.mubr.bf16.gmra.mxu1 %v2126_v32 }
 0x113   : > { %v2277_v33 = vpop.f32.mrf.mxu0 }
 0x114   : > { %v2305_v35 = vpop.f32.mrf.mxu1 }
 0x115   : > { %v2278_v34 = vpop.f32.mrf.mxu0 }
 0x116   : > { %v2306_v37 = vpop.f32.mrf.mxu1  ;;  %v2279_v10 = vadd.f32 %v2278_v34, %v2277_v33 }
 0x117   : > { %v2280_v36 = vpop.f32.mrf.mxu0  ;;  %v2307_v11 = vadd.f32 %v2306_v37, %v2305_v35 }
 0x118   : > { %v2308_v39 = vpop.f32.mrf.mxu1 }
 0x119   : > { %v2281_v38 = vpop.f32.mrf.mxu0  ;;  %v1656_v15 = vadd.f32 %v2307_v11, %v2279_v10 }
 0x11a   : > { %v2309_v41 = vpop.f32.mrf.mxu1  ;;  %v2282_v16 = vadd.f32 %v2281_v38, %v2280_v36 }
 0x11b   : > { %v2283_v40 = vpop.f32.mrf.mxu0  ;;  %v2310_v17 = vadd.f32 %v2309_v41, %v2308_v39 }
 0x11c   : > { %v2311_v43 = vpop.f32.mrf.mxu1 }
 0x11d   : > { %v2284_v42 = vpop.f32.mrf.mxu0  ;;  %v1659_v25 = vadd.f32 %v2310_v17, %v2282_v16 }
 0x11e   : > { %v2312_v45 = vpop.f32.mrf.mxu1  ;;  %v2285_v22 = vadd.f32 %v2284_v42, %v2283_v40 }
 0x11f   : > { %v2286_v44 = vpop.f32.mrf.mxu0  ;;  %v2313_v23 = vadd.f32 %v2312_v45, %v2311_v43 }
 0x120   : > { %v2314_v47 = vpop.f32.mrf.mxu1 }
 0x121   : > { %v2287_v46 = vpop.f32.mrf.mxu0  ;;  %v1664_v31 = vadd.f32 %v2313_v23, %v2285_v22 }
 0x122   : > { %v2315_v49 = vpop.f32.mrf.mxu1  ;;  %v2288_v32 = vadd.f32 %v2287_v46, %v2286_v44 }
 0x123   : > { %v2316_v33 = vadd.f32 %v2315_v49, %v2314_v47 }
 0x133   : > { %v2333_v48 = vpop.f32.mrf.mxu0 }
 0x134   : > { %v2361_v51 = vpop.f32.mrf.mxu1 }
 0x135   : > { %v2334_v50 = vpop.f32.mrf.mxu0 }
 0x136   : > { %v2362_v53 = vpop.f32.mrf.mxu1  ;;  %v2335_v13 = vadd.f32 %v2334_v50, %v2333_v48  ;;  %v1667_v50 = vadd.f32 %v2316_v33, %v2288_v32 }
 0x137   : > { %v2336_v52 = vpop.f32.mrf.mxu0  ;;  %v2363_v20 = vadd.f32 %v2362_v53, %v2361_v51 }
 0x138   : > { %v2364_v55 = vpop.f32.mrf.mxu1  ;;  %v1705_v19 = vadd.f32 %v2335_v13, %v1656_v15 }
 0x139   : > { %v2337_v54 = vpop.f32.mrf.mxu0 }
 0x13a   : > { %v2365_v57 = vpop.f32.mrf.mxu1  ;;  %v2338_v21 = vadd.f32 %v2337_v54, %v2336_v52  ;;  %v1754_v29 = vadd.f32 %v2363_v20, %v1705_v19 }
 0x13b   : > { %v2339_v56 = vpop.f32.mrf.mxu0  ;;  %v2366_v35 = vadd.f32 %v2365_v57, %v2364_v55 }
 0x13c   : > { %v2367_v58 = vpop.f32.mrf.mxu1  ;;  %v1708_v30 = vadd.f32 %v2338_v21, %v1659_v25  ;;  %v354_v25 = vld [vmem:[%s3053_s3 + $0x10] sm:$0xff] }
 0x13d   : > { %v2340_v59 = vpop.f32.mrf.mxu0 }
 0x13e   : > { %v2368_v60 = vpop.f32.mrf.mxu1  ;;  %v2341_v28 = vadd.f32 %v2340_v59, %v2339_v56  ;;  %v1757_v43 = vadd.f32 %v2366_v35, %v1708_v30 }
 0x13f   : > { %v2342_v61 = vpop.f32.mrf.mxu0  ;;  %v2369_v48 = vadd.f32 %v2368_v60, %v2367_v58 }
 0x140   : > { %v2370_v62 = vpop.f32.mrf.mxu1  ;;  %v1713_v41 = vadd.f32 %v2341_v28, %v1664_v31 }
 0x141   : > { %v2343_v63 = vpop.f32.mrf.mxu0 }
 0x142   : > { %v2371_v1 = vpop.f32.mrf.mxu1  ;;  %v2344_v40 = vadd.f32 %v2343_v63, %v2342_v61  ;;  %v1762_v46 = vadd.f32 %v2369_v48, %v1713_v41  ;;  %v352_v61 = vld [vmem:[%s3053_s3] sm:$0xff] }
 0x143   : > { %v2372_v55 = vadd.f32 %v2371_v1, %v2370_v62 }
 0x144   : > { %v1716_v47 = vadd.f32 %v2344_v40, %v1667_v50 }
 0x146   : > { %v1765_v11 = vadd.f32 %v2372_v55, %v1716_v47 }
 0x153   : > { %v2389_v0 = vpop.f32.mrf.mxu0 }
 0x154   : > { %v2417_v2 = vpop.f32.mrf.mxu1 }
 0x155   : > { %v2390_v3 = vpop.f32.mrf.mxu0 }
 0x156   : > { %v2418_v4 = vpop.f32.mrf.mxu1  ;;  %v2391_v26 = vadd.f32 %v2390_v3, %v2389_v0 }
 0x157   : > { %v2392_v5 = vpop.f32.mrf.mxu0  ;;  %v2419_v37 = vadd.f32 %v2418_v4, %v2417_v2 }
 0x158   : > { %v2420_v6 = vpop.f32.mrf.mxu1  ;;  %v1803_v36 = vadd.f32 %v2391_v26, %v1754_v29 }
 0x159   : > { %v2393_v7 = vpop.f32.mrf.mxu0 }
 0x15a   : > { %v2421_v8 = vpop.f32.mrf.mxu1  ;;  %v2394_v38 = vadd.f32 %v2393_v7, %v2392_v5  ;;  %v1852_v53 = vadd.f32 %v2419_v37, %v1803_v36 }
 0x15b   : > { %v2395_v9 = vpop.f32.mrf.mxu0  ;;  %v2422_v57 = vadd.f32 %v2421_v8, %v2420_v6 }
 0x15c   : > { %v2423_v12 = vpop.f32.mrf.mxu1  ;;  %v1806_v54 = vadd.f32 %v2394_v38, %v1757_v43 }
 0x15d   : > { %v2396_v14 = vpop.f32.mrf.mxu0 }
 0x15e   : > { %v2424_v18 = vpop.f32.mrf.mxu1  ;;  %v2397_v51 = vadd.f32 %v2396_v14, %v2395_v9  ;;  %v1855_v3 = vadd.f32 %v2422_v57, %v1806_v54 }
 0x15f   : > { %v2398_v24 = vpop.f32.mrf.mxu0  ;;  %v2425_v60 = vadd.f32 %v2424_v18, %v2423_v12  ;;  %v353_v12 = vld [vmem:[%s3053_s3 + $0x8] sm:$0xff] }
 0x160   : > { %v2426_v27 = vpop.f32.mrf.mxu1  ;;  %v1811_v58 = vadd.f32 %v2397_v51, %v1762_v46 }
 0x161   : > { %v2399_v34 = vpop.f32.mrf.mxu0 }
 0x162   : > { %v2427_v39 = vpop.f32.mrf.mxu1  ;;  %v2400_v4 = vadd.f32 %v2399_v34, %v2398_v24  ;;  %v1860_v8 = vadd.f32 %v2425_v60, %v1811_v58  ;;  %v355_v34 = vld [vmem:[%s3053_s3 + $0x18] sm:$0xff] }
 0x163   : > { %v2428_v16 = vadd.f32 %v2427_v39, %v2426_v27 }
 0x164   : > { %v1814_v15 = vadd.f32 %v2400_v4, %v1765_v11 }
 0x166   : > { %v1863_v28 = vadd.f32 %v2428_v16, %v1814_v15 }
 0x173   : > { %v2445_v42 = vpop.f32.mrf.mxu0 }
 0x174   : > { %v2473_v45 = vpop.f32.mrf.mxu1 }
 0x175   : > { %v2446_v52 = vpop.f32.mrf.mxu0 }
 0x176   : > { %v2447_v56 = vadd.f32 %v2446_v52, %v2445_v42  ;;  %v2474_v44 = vpop.f32.mrf.mxu1 }
 0x177   : > { %v2448_v49 = vpop.f32.mrf.mxu0  ;;  %v2475_v0 = vadd.f32 %v2474_v44, %v2473_v45 }
 0x178   : > { %v1901_v59 = vadd.f32 %v2447_v56, %v1852_v53  ;;  %v2476_v2 = vpop.f32.mrf.mxu1 }
 0x179   : > { %v2449_v63 = vpop.f32.mrf.mxu0 }
 0x17a   : > { %v1950_v5 = vadd.f32 %v2475_v0, %v1901_v59  ;;  %v2450_v7 = vadd.f32 %v2449_v63, %v2448_v49  ;;  %v2477_v9 = vpop.f32.mrf.mxu1 }
 0x17b   : > { %v2451_v10 = vpop.f32.mrf.mxu0  ;;  %v2478_v1 = vadd.f32 %v2477_v9, %v2476_v2 }
 0x17c   : > { %v1964_v13 = vadd.f32 %v1950_v5, %v352_v61  ;;  %v1904_v62 = vadd.f32 %v2450_v7, %v1855_v3  ;;  %v2479_v6 = vpop.f32.mrf.mxu1 }
 0x17d   : > { %v2452_v14 = vpop.f32.mrf.mxu0 }
 0x17e   : > { %1968 = vst [vmem:[%s3053_s3] sm:$0xff] %v1964_v13  ;;  %v1953_v17 = vadd.f32 %v2478_v1, %v1904_v62  ;;  %v2453_v18 = vadd.f32 %v2452_v14, %v2451_v10  ;;  %v2480_v19 = vpop.f32.mrf.mxu1 }
 0x17f   : > { %v2454_v20 = vpop.f32.mrf.mxu0  ;;  %v2481_v23 = vadd.f32 %v2480_v19, %v2479_v6 }
 0x180   : > { %v1965_v21 = vadd.f32 %v1953_v17, %v353_v12  ;;  %v1909_v22 = vadd.f32 %v2453_v18, %v1860_v8  ;;  %v2482_v24 = vpop.f32.mrf.mxu1 }
 0x181   : > { %v2455_v26 = vpop.f32.mrf.mxu0 }
 0x182   : > { %1969 = vst [vmem:[%s3053_s3 + $0x8] sm:$0xff] %v1965_v21  ;;  %v1958_v27 = vadd.f32 %v2481_v23, %v1909_v22  ;;  %v2456_v29 = vadd.f32 %v2455_v26, %v2454_v20  ;;  %v2483_v30 = vpop.f32.mrf.mxu1 }
 0x183   : > { %v2484_v33 = vadd.f32 %v2483_v30, %v2482_v24 }
 0x184   : > { %v1966_v31 = vadd.f32 %v1958_v27, %v354_v25  ;;  %v1912_v32 = vadd.f32 %v2456_v29, %v1863_v28 }
 0x186   : > { %1970 = vst [vmem:[%s3053_s3 + $0x10] sm:$0xff] %v1966_v31  ;;  %v1961_v35 = vadd.f32 %v2484_v33, %v1912_v32 }
 0x188   : > { %v1967_v36 = vadd.f32 %v1961_v35, %v355_v34 }
 0x18a   : > { %1971 = vst [vmem:[%s3053_s3 + $0x18] sm:$0xff] %v1967_v36 }
 0x18b PF: > { %s13_s16 = sadd.s32 1, %s2691_s16   ;;  %s3054_s12 = smov %s2679_s13 }
 0x18c   : > { %p10_p11 = scmp.ge.s32.totalorder %s13_s16, 4   ;;  %s3055_s13 = smov %s2748_s20 }
 0x18d   : > { %s3056_s14 = smov %s2687_s15  ;;  %s3057_s15 = smov %s3059_s17 }
 0x18e   :  { %12 = sbr.rel (!%p10_p11) target bundleno = 3 (0x3), region = 100 }

</bundles_post_ra>
